<compile_context>
chip_gen: v6e
topology: v6e:2x2x1
jax: 0.10.0
libtpu: 0.0.40
codegen_flags: <defaults>
</compile_context>

<pallas_src>
import math

import jax
import jax.numpy as jnp
from jax import lax
from jax.experimental import pallas as pl
from jax.experimental.pallas import tpu as pltpu


_R_SCALE = 1.0 / math.sqrt(1.0 + 1e-5)   # frozen BN scale, resnet eps=1e-5
_E_SCALE = 1.0 / math.sqrt(1.0 + 1e-3)   # frozen BN scale, efficientnet eps=1e-3

_PALLAS_MIN_ROWS = 512                   # use Pallas only for >=16x16 maps (B*H*W >= 512)


# ----------------------------------------------------------------------------- #
# Pallas kernel: fused 1x1 conv = [SE scale] -> matmul -> [act] -> [residual add]
# ----------------------------------------------------------------------------- #
def _make_conv1x1_kernel(act, has_se, has_res):
    # NOTE: activation is applied before the residual add. The only user combining
    # a residual is the MBConv project conv, which has act=None, so order is correct.
    def kernel(*refs):
        i = 0
        x_ref = refs[i]; i += 1                       # (HW, C) bf16
        if has_se:
            s_ref = refs[i]; i += 1                   # (1, C)  bf16, per-batch SE gate
        w_ref = refs[i]; i += 1                       # (C, N)  bf16
        if has_res:
            r_ref = refs[i]; i += 1                   # (HW, N) bf16
        o_ref = refs[i]                               # (HW, N) bf16

        x = x_ref[...]
        if has_se:
            x = x * s_ref[...]                        # sublane-broadcast channel scale
        acc = jnp.dot(x, w_ref[...], preferred_element_type=jnp.float32)
        if act == "relu":
            acc = jnp.maximum(acc, 0.0)
        elif act == "silu":
            acc = acc * jax.nn.sigmoid(acc)           # EUP sigmoid
        if has_res:
            acc = acc + r_ref[...].astype(jnp.float32)
        o_ref[...] = acc.astype(o_ref.dtype)
    return kernel


def _conv1x1_pallas(x3, w, act, s3, r3):
    """x3 (B, HW, C) bf16; w (C, N) bf16; s3 (B, 1, C) bf16 | None; r3 (B, HW, N) bf16 | None."""
    B, HW, C = x3.shape
    N = w.shape[1]
    M = B * HW

    in_specs = [pl.BlockSpec((None, HW, C), lambda i: (i, 0, 0))]
    args = [x3]
    if s3 is not None:
        in_specs.append(pl.BlockSpec((None, 1, C), lambda i: (i, 0, 0)))
        args.append(s3)
    in_specs.append(pl.BlockSpec((C, N), lambda i: (0, 0)))   # constant weight block
    args.append(w)
    if r3 is not None:
        in_specs.append(pl.BlockSpec((None, HW, N), lambda i: (i, 0, 0)))
        args.append(r3)

    bytes_accessed = 2 * (M * C + C * N + M * N)              # bf16 everywhere
    if r3 is not None:
        bytes_accessed += 2 * M * N
    if s3 is not None:
        bytes_accessed += 2 * B * C
    cost = pl.CostEstimate(
        flops=2 * M * C * N,
        transcendentals=(M * N) if act == "silu" else 0,
        bytes_accessed=bytes_accessed)

    # Megacore-shard over batch only when the call is big enough (32x32 maps);
    # small calls stay a 2-step serial loop on one core (v5e/v6e have 1 TC anyway).
    sem = ("parallel",) if M >= 1024 else ("arbitrary",)

    return pl.pallas_call(
        _make_conv1x1_kernel(act, s3 is not None, r3 is not None),
        out_shape=jax.ShapeDtypeStruct((B, HW, N), jnp.bfloat16),
        grid=(B,),
        in_specs=in_specs,
        out_specs=pl.BlockSpec((None, HW, N), lambda i: (i, 0, 0)),
        compiler_params=pltpu.CompilerParams(dimension_semantics=sem),
        cost_estimate=cost,
    )(*args)


def conv1x1(x, w, act=None, se=None, residual=None):
    """1x1 conv on NHWC bf16 x with folded BN, optional SE scale / act / residual.

    Large (>=16x16) feature maps use the fused Pallas kernel; tiny ones go through
    plain jnp so XLA fuses them with the surrounding dw-conv / SE / ReLU ops.
    """
    B, H, W, C = x.shape
    N = w.shape[1]
    M = B * H * W
    if M < _PALLAS_MIN_ROWS:
        h = x
        if se is not None:
            h = h * se.astype(h.dtype)[:, None, None, :]
        y = jnp.dot(h.reshape(M, C), w, preferred_element_type=jnp.float32)
        if act == "relu":
            y = jnp.maximum(y, 0.0)
        elif act == "silu":
            y = jax.nn.silu(y)
        y = y.reshape(B, H, W, N)
        if residual is not None:
            y = y + residual.astype(jnp.float32)
        return y.astype(jnp.bfloat16)

    x3 = x.reshape(B, H * W, C)
    s3 = se.astype(jnp.bfloat16).reshape(B, 1, C) if se is not None else None
    r3 = residual.reshape(B, H * W, N) if residual is not None else None
    y3 = _conv1x1_pallas(x3, w, act, s3, r3)
    return y3.reshape(B, H, W, N)


# ----------------------------------------------------------------------------- #
# Plain-JAX glue: kxk / depthwise convs + pooling (XLA-lowered)
# ----------------------------------------------------------------------------- #
def conv2d(x, w, stride, padding, groups=1):
    return lax.conv_general_dilated(
        x, w, window_strides=(stride, stride),
        padding=((padding, padding), (padding, padding)),
        dimension_numbers=("NHWC", "HWIO", "NHWC"),
        feature_group_count=groups,
        preferred_element_type=jnp.float32)


def maxpool3x3s2(x):
    init = jnp.array(-jnp.inf, dtype=x.dtype)
    return lax.reduce_window(x, init, lax.max, (1, 3, 3, 1), (1, 2, 2, 1),
                             ((0, 0), (1, 1), (1, 1), (0, 0)))


# ----------------------------------------------------------------------------- #
# Deterministic parameter initialization (frozen backbones, BN pre-folded, bf16)
# ----------------------------------------------------------------------------- #
class KeyGen:
    def __init__(self, seed=0):
        self.key = jax.random.PRNGKey(seed)

    def __call__(self):
        self.key, sub = jax.random.split(self.key)
        return sub


def conv_w(kg, k, cin, cout, groups=1):
    fan_in = k * k * (cin // groups)
    std = (2.0 / fan_in) ** 0.5
    return std * jax.random.normal(kg(), (k, k, cin // groups, cout), jnp.float32)


def mat_w(kg, cin, cout):  # 1x1 conv / pointwise weight as (Cin, Cout) matrix
    std = (2.0 / cin) ** 0.5
    return std * jax.random.normal(kg(), (cin, cout), jnp.float32)


def init_resnet18(kg):
    s = _R_SCALE
    p = {"conv1": (conv_w(kg, 7, 3, 64) * s).astype(jnp.bfloat16)}   # BN folded into weight
    blocks = []
    in_c = 64
    for out_c, stride in [(64, 1), (128, 2), (256, 2), (512, 2)]:
        for bi in range(2):
            st = stride if bi == 0 else 1
            blk = {"stride": st,
                   "conv1": (conv_w(kg, 3, in_c, out_c) * s).astype(jnp.bfloat16),
                   "conv2": (conv_w(kg, 3, out_c, out_c) * s).astype(jnp.bfloat16)}
            if st != 1 or in_c != out_c:
                blk["down"] = (mat_w(kg, in_c, out_c) * s).astype(jnp.bfloat16)
            blocks.append(blk)
            in_c = out_c
    p["blocks"] = blocks
    return p


# (expand_ratio, kernel, stride, in_ch, out_ch, num_layers) — EfficientNet-B0
_EFFNET_B0_CFG = [
    (1, 3, 1, 32, 16, 1),
    (6, 3, 2, 16, 24, 2),
    (6, 5, 2, 24, 40, 2),
    (6, 3, 2, 40, 80, 3),
    (6, 5, 1, 80, 112, 3),
    (6, 5, 2, 112, 192, 4),
    (6, 3, 1, 192, 320, 1),
]


def init_effnet_b0(kg):
    s = _E_SCALE
    p = {"stem": (conv_w(kg, 3, 3, 32) * s).astype(jnp.bfloat16)}
    blocks = []
    for (er, k, st, cin, cout, n) in _EFFNET_B0_CFG:
        for i in range(n):
            in_c = cin if i == 0 else cout
            stride = st if i == 0 else 1
            exp_c = in_c * er
            sq_c = max(1, in_c // 4)
            blk = {"stride": stride, "in": in_c, "out": cout, "exp": exp_c, "k": k}
            if er != 1:
                blk["expand"] = (mat_w(kg, in_c, exp_c) * s).astype(jnp.bfloat16)
            blk["dw"] = (conv_w(kg, k, exp_c, exp_c, groups=exp_c) * s).astype(jnp.bfloat16)
            blk["se_rw"] = mat_w(kg, exp_c, sq_c)                 # SE stays tiny f32
            blk["se_rb"] = jnp.zeros((sq_c,), jnp.float32)
            blk["se_ew"] = mat_w(kg, sq_c, exp_c)
            blk["se_eb"] = jnp.zeros((exp_c,), jnp.float32)
            blk["project"] = (mat_w(kg, exp_c, cout) * s).astype(jnp.bfloat16)
            blocks.append(blk)
    p["blocks"] = blocks
    p["head"] = (mat_w(kg, 320, 1280) * s).astype(jnp.bfloat16)
    return p


# ----------------------------------------------------------------------------- #
# Backbone forwards (eval mode: dropout / stochastic depth = identity)
# ----------------------------------------------------------------------------- #
def resnet18_forward(p, x):  # x NHWC bf16
    x = jax.nn.relu(conv2d(x, p["conv1"], 2, 3)).astype(jnp.bfloat16)
    x = maxpool3x3s2(x)
    for blk in p["blocks"]:
        identity = x
        out = jax.nn.relu(conv2d(x, blk["conv1"], blk["stride"], 1)).astype(jnp.bfloat16)
        out = conv2d(out, blk["conv2"], 1, 1)                       # f32 acc
        if "down" in blk:
            st = blk["stride"]
            # stride-s 1x1 conv == 1x1 conv on a strided slice (tiny M -> XLA fuses)
            identity = conv1x1(x[:, ::st, ::st, :], blk["down"])
        x = jax.nn.relu(out + identity.astype(jnp.float32)).astype(jnp.bfloat16)
    return jnp.mean(x.astype(jnp.float32), axis=(1, 2))            # avgpool(1,1) -> (B, 512)


def effnet_b0_forward(p, x):  # x NHWC bf16
    x = jax.nn.silu(conv2d(x, p["stem"], 2, 1)).astype(jnp.bfloat16)
    for blk in p["blocks"]:
        inp = x
        h = x
        if "expand" in blk:
            h = conv1x1(h, blk["expand"], act="silu")               # conv+BN+SiLU fused
        pad = (blk["k"] - 1) // 2
        h = jax.nn.silu(
            conv2d(h, blk["dw"], blk["stride"], pad, groups=blk["exp"])
        ).astype(jnp.bfloat16)
        # Squeeze-Excitation gate (tiny (B,C) matmuls stay in XLA)
        s = jnp.mean(h.astype(jnp.float32), axis=(1, 2))            # (B, Cexp)
        s = jax.nn.silu(s @ blk["se_rw"] + blk["se_rb"])
        s = jax.nn.sigmoid(s @ blk["se_ew"] + blk["se_eb"])
        use_res = blk["stride"] == 1 and blk["in"] == blk["out"]
        # SE scale + project conv + BN (folded) + residual add fused in one call
        h = conv1x1(h, blk["project"], act=None, se=s,
                    residual=inp if use_res else None)
        x = h
    x = conv1x1(x, p["head"], act="silu")                           # head (M=8 -> XLA path)
    return jnp.mean(x.astype(jnp.float32), axis=(1, 2))             # (B, 1280)


# ----------------------------------------------------------------------------- #
# Full module
# ----------------------------------------------------------------------------- #
def build_model():
    kg = KeyGen(0)
    res_p = init_resnet18(kg)
    eff_p = init_effnet_b0(kg)
    # concat_fc: Linear(1792 -> 8), xavier_uniform weight, bias ~ U(-0.01, 0.01)
    fan_in, fan_out = 512 + 1280, 8
    limit = (6.0 / (fan_in + fan_out)) ** 0.5
    fc_w = jax.random.uniform(kg(), (8, 1792), jnp.float32, -limit, limit)
    fc_b = jax.random.uniform(kg(), (8,), jnp.float32, -0.01, 0.01)
    fc_wt = jnp.asarray(fc_w.T)                                     # (1792, 8) f32

    @jax.jit
    def forward(x_nchw):
        x = jnp.transpose(x_nchw, (0, 2, 3, 1)).astype(jnp.bfloat16)  # NCHW -> NHWC bf16
        x_res = resnet18_forward(res_p, x)                             # (B, 512)  dropout=id
        x_eff = effnet_b0_forward(eff_p, x)                            # (B, 1280) dropout=id
        x_cat = jnp.concatenate([x_res, x_eff], axis=1)                # (B, 1792) f32
        # concat + Linear: 2x1792x8 — launch-overhead dominated, keep in XLA (fuses).
        return jnp.dot(x_cat, fc_wt, preferred_element_type=jnp.float32) + fc_b

    return forward


if __name__ == "__main__":
    forward = build_model()
    x = jax.random.normal(jax.random.PRNGKey(0), (2, 3, 64, 64), jnp.float32)
    out = jax.block_until_ready(forward(x))
    assert out.shape == (2, 8) and out.dtype == jnp.float32
    print("KERNEL_OK")
</pallas_src>

<mosaic_0001>
module attributes {stable_mosaic.version = 11 : i64} {
  func.func @kernel(%arg0: i32, %arg1: memref<1x1024x32xbf16, #tpu.memory_space<vmem>>, %arg2: memref<1x1x32xbf16, #tpu.memory_space<vmem>>, %arg3: memref<32x16xbf16, #tpu.memory_space<vmem>>, %arg4: memref<1x1024x16xbf16, #tpu.memory_space<vmem>>) attributes {dimension_semantics = [#tpu.dimension_semantics<parallel>], iteration_bounds = array<i64: 2>, scalar_prefetch = 0 : i64, scratch_operands = 0 : i64, tpu.core_type = #tpu.core_type<tc>, window_params = [{transform_indices = @transform_0, window_bounds = array<i64: 1, 1024, 32>}, {transform_indices = @transform_1, window_bounds = array<i64: 1, 1, 32>}, {pipeline_mode = #tpu.pipeline_mode<synchronous>, transform_indices = @transform_2, window_bounds = array<i64: 32, 16>}, {transform_indices = @transform_3, window_bounds = array<i64: 1, 1024, 16>}]} {
    %c0 = arith.constant 0 : index
    %c0_0 = arith.constant 0 : index
    %c0_1 = arith.constant 0 : index
    %0 = vector.load %arg1[%c0, %c0_0, %c0_1] : memref<1x1024x32xbf16, #tpu.memory_space<vmem>>, vector<1x1024x32xbf16>
    %1 = vector.shape_cast %0 : vector<1x1024x32xbf16> to vector<1024x32xbf16>
    %c0_2 = arith.constant 0 : index
    %c0_3 = arith.constant 0 : index
    %c0_4 = arith.constant 0 : index
    %2 = vector.load %arg2[%c0_2, %c0_3, %c0_4] : memref<1x1x32xbf16, #tpu.memory_space<vmem>>, vector<1x1x32xbf16>
    %3 = vector.shape_cast %2 : vector<1x1x32xbf16> to vector<1x32xbf16>
    %4 = vector.broadcast %3 : vector<1x32xbf16> to vector<1024x32xbf16>
    %5 = arith.mulf %1, %4 : vector<1024x32xbf16>
    %c0_5 = arith.constant 0 : index
    %c0_6 = arith.constant 0 : index
    %6 = vector.load %arg3[%c0_5, %c0_6] : memref<32x16xbf16, #tpu.memory_space<vmem>>, vector<32x16xbf16>
    %cst = arith.constant dense<0.000000e+00> : vector<1024x16xf32>
    %7 = tpu.matmul %5, %6, %cst {dimension_numbers = #tpu.dot_dimension_numbers<[1], [0], [0], [1], [0, 0, 1, 1], [], []>} : vector<1024x32xbf16>, vector<32x16xbf16>, vector<1024x16xf32> -> vector<1024x16xf32>
    %8 = arith.truncf %7 : vector<1024x16xf32> to vector<1024x16xbf16>
    %c0_7 = arith.constant 0 : index
    %c0_8 = arith.constant 0 : index
    %c0_9 = arith.constant 0 : index
    %9 = vector.load %arg4[%c0_7, %c0_8, %c0_9] : memref<1x1024x16xbf16, #tpu.memory_space<vmem>>, vector<1x1024x16xbf16>
    %10 = vector.shape_cast %9 : vector<1x1024x16xbf16> to vector<1024x16xbf16>
    %11 = vector.shape_cast %8 : vector<1024x16xbf16> to vector<1x1024x16xbf16>
    tpu.vector_store %arg4[%c0_7, %c0_8, %c0_9], %11 {strides = array<i32>} : memref<1x1024x16xbf16, #tpu.memory_space<vmem>>, vector<1x1024x16xbf16>,
    return
  }
  func.func @transform_0(%arg0: i32) -> (i32, i32, i32) {
    %c0_i32 = arith.constant 0 : i32
    %c0_i32_0 = arith.constant 0 : i32
    %c0_i32_1 = arith.constant 0 : i32
    return %arg0, %c0_i32, %c0_i32_0 : i32, i32, i32
  }
  func.func @transform_1(%arg0: i32) -> (i32, i32, i32) {
    %c0_i32 = arith.constant 0 : i32
    %c0_i32_0 = arith.constant 0 : i32
    %c0_i32_1 = arith.constant 0 : i32
    return %arg0, %c0_i32, %c0_i32_0 : i32, i32, i32
  }
  func.func @transform_2(%arg0: i32) -> (i32, i32) {
    %c0_i32 = arith.constant 0 : i32
    %c0_i32_0 = arith.constant 0 : i32
    %c0_i32_1 = arith.constant 0 : i32
    return %c0_i32, %c0_i32_0 : i32, i32
  }
  func.func @transform_3(%arg0: i32) -> (i32, i32, i32) {
    %c0_i32 = arith.constant 0 : i32
    %c0_i32_0 = arith.constant 0 : i32
    %c0_i32_1 = arith.constant 0 : i32
    return %arg0, %c0_i32, %c0_i32_0 : i32, i32, i32
  }
}

module attributes {stable_mosaic.version = 11 : i64} {
  func.func @kernel(%arg0: i32, %arg1: memref<1x1024x16xbf16, #tpu.memory_space<vmem>>, %arg2: memref<16x96xbf16, #tpu.memory_space<vmem>>, %arg3: memref<1x1024x96xbf16, #tpu.memory_space<vmem>>) attributes {dimension_semantics = [#tpu.dimension_semantics<parallel>], iteration_bounds = array<i64: 2>, scalar_prefetch = 0 : i64, scratch_operands = 0 : i64, tpu.core_type = #tpu.core_type<tc>, window_params = [{transform_indices = @transform_0, window_bounds = array<i64: 1, 1024, 16>}, {pipeline_mode = #tpu.pipeline_mode<synchronous>, transform_indices = @transform_1, window_bounds = array<i64: 16, 96>}, {transform_indices = @transform_2, window_bounds = array<i64: 1, 1024, 96>}]} {
    %c0 = arith.constant 0 : index
    %c0_0 = arith.constant 0 : index
    %c0_1 = arith.constant 0 : index
    %0 = vector.load %arg1[%c0, %c0_0, %c0_1] : memref<1x1024x16xbf16, #tpu.memory_space<vmem>>, vector<1x1024x16xbf16>
    %1 = vector.shape_cast %0 : vector<1x1024x16xbf16> to vector<1024x16xbf16>
    %c0_2 = arith.constant 0 : index
    %c0_3 = arith.constant 0 : index
    %2 = vector.load %arg2[%c0_2, %c0_3] : memref<16x96xbf16, #tpu.memory_space<vmem>>, vector<16x96xbf16>
    %cst = arith.constant dense<0.000000e+00> : vector<1024x96xf32>
    %3 = tpu.matmul %1, %2, %cst {dimension_numbers = #tpu.dot_dimension_numbers<[1], [0], [0], [1], [0, 0, 1, 1], [], []>} : vector<1024x16xbf16>, vector<16x96xbf16>, vector<1024x96xf32> -> vector<1024x96xf32>
    %4 = arith.negf %3 : vector<1024x96xf32>
    %5 = math.exp %4 : vector<1024x96xf32>
    %cst_4 = arith.constant 1.000000e+00 : f32
    %6 = vector.broadcast %cst_4 : f32 to vector<1024x96xf32>
    %7 = arith.addf %6, %5 : vector<1024x96xf32>
    %8 = arith.divf %6, %7 : vector<1024x96xf32>
    %9 = arith.mulf %3, %8 : vector<1024x96xf32>
    %10 = arith.truncf %9 : vector<1024x96xf32> to vector<1024x96xbf16>
    %c0_5 = arith.constant 0 : index
    %c0_6 = arith.constant 0 : index
    %c0_7 = arith.constant 0 : index
    %11 = vector.load %arg3[%c0_5, %c0_6, %c0_7] : memref<1x1024x96xbf16, #tpu.memory_space<vmem>>, vector<1x1024x96xbf16>
    %12 = vector.shape_cast %11 : vector<1x1024x96xbf16> to vector<1024x96xbf16>
    %13 = vector.shape_cast %10 : vector<1024x96xbf16> to vector<1x1024x96xbf16>
    tpu.vector_store %arg3[%c0_5, %c0_6, %c0_7], %13 {strides = array<i32>} : memref<1x1024x96xbf16, #tpu.memory_space<vmem>>, vector<1x1024x96xbf16>,
    return
  }
  func.func @transform_0(%arg0: i32) -> (i32, i32, i32) {
    %c0_i32 = arith.constant 0 : i32
    %c0_i32_0 = arith.constant 0 : i32
    %c0_i32_1 = arith.constant 0 : i32
    return %arg0, %c0_i32, %c0_i32_0 : i32, i32, i32
  }
  func.func @transform_1(%arg0: i32) -> (i32, i32) {
    %c0_i32 = arith.constant 0 : i32
    %c0_i32_0 = arith.constant 0 : i32
    %c0_i32_1 = arith.constant 0 : i32
    return %c0_i32, %c0_i32_0 : i32, i32
  }
  func.func @transform_2(%arg0: i32) -> (i32, i32, i32) {
    %c0_i32 = arith.constant 0 : i32
    %c0_i32_0 = arith.constant 0 : i32
    %c0_i32_1 = arith.constant 0 : i32
    return %arg0, %c0_i32, %c0_i32_0 : i32, i32, i32
  }
}

module attributes {stable_mosaic.version = 11 : i64} {
  func.func @kernel(%arg0: i32, %arg1: memref<1x256x96xbf16, #tpu.memory_space<vmem>>, %arg2: memref<1x1x96xbf16, #tpu.memory_space<vmem>>, %arg3: memref<96x24xbf16, #tpu.memory_space<vmem>>, %arg4: memref<1x256x24xbf16, #tpu.memory_space<vmem>>) attributes {dimension_semantics = [#tpu.dimension_semantics<arbitrary>], iteration_bounds = array<i64: 2>, scalar_prefetch = 0 : i64, scratch_operands = 0 : i64, tpu.core_type = #tpu.core_type<tc>, window_params = [{transform_indices = @transform_0, window_bounds = array<i64: 1, 256, 96>}, {transform_indices = @transform_1, window_bounds = array<i64: 1, 1, 96>}, {pipeline_mode = #tpu.pipeline_mode<synchronous>, transform_indices = @transform_2, window_bounds = array<i64: 96, 24>}, {transform_indices = @transform_3, window_bounds = array<i64: 1, 256, 24>}]} {
    %c0 = arith.constant 0 : index
    %c0_0 = arith.constant 0 : index
    %c0_1 = arith.constant 0 : index
    %0 = vector.load %arg1[%c0, %c0_0, %c0_1] : memref<1x256x96xbf16, #tpu.memory_space<vmem>>, vector<1x256x96xbf16>
    %1 = vector.shape_cast %0 : vector<1x256x96xbf16> to vector<256x96xbf16>
    %c0_2 = arith.constant 0 : index
    %c0_3 = arith.constant 0 : index
    %c0_4 = arith.constant 0 : index
    %2 = vector.load %arg2[%c0_2, %c0_3, %c0_4] : memref<1x1x96xbf16, #tpu.memory_space<vmem>>, vector<1x1x96xbf16>
    %3 = vector.shape_cast %2 : vector<1x1x96xbf16> to vector<1x96xbf16>
    %4 = vector.broadcast %3 : vector<1x96xbf16> to vector<256x96xbf16>
    %5 = arith.mulf %1, %4 : vector<256x96xbf16>
    %c0_5 = arith.constant 0 : index
    %c0_6 = arith.constant 0 : index
    %6 = vector.load %arg3[%c0_5, %c0_6] : memref<96x24xbf16, #tpu.memory_space<vmem>>, vector<96x24xbf16>
    %cst = arith.constant dense<0.000000e+00> : vector<256x24xf32>
    %7 = tpu.matmul %5, %6, %cst {dimension_numbers = #tpu.dot_dimension_numbers<[1], [0], [0], [1], [0, 0, 1, 1], [], []>} : vector<256x96xbf16>, vector<96x24xbf16>, vector<256x24xf32> -> vector<256x24xf32>
    %8 = arith.truncf %7 : vector<256x24xf32> to vector<256x24xbf16>
    %c0_7 = arith.constant 0 : index
    %c0_8 = arith.constant 0 : index
    %c0_9 = arith.constant 0 : index
    %9 = vector.load %arg4[%c0_7, %c0_8, %c0_9] : memref<1x256x24xbf16, #tpu.memory_space<vmem>>, vector<1x256x24xbf16>
    %10 = vector.shape_cast %9 : vector<1x256x24xbf16> to vector<256x24xbf16>
    %11 = vector.shape_cast %8 : vector<256x24xbf16> to vector<1x256x24xbf16>
    tpu.vector_store %arg4[%c0_7, %c0_8, %c0_9], %11 {strides = array<i32>} : memref<1x256x24xbf16, #tpu.memory_space<vmem>>, vector<1x256x24xbf16>,
    return
  }
  func.func @transform_0(%arg0: i32) -> (i32, i32, i32) {
    %c0_i32 = arith.constant 0 : i32
    %c0_i32_0 = arith.constant 0 : i32
    %c0_i32_1 = arith.constant 0 : i32
    return %arg0, %c0_i32, %c0_i32_0 : i32, i32, i32
  }
  func.func @transform_1(%arg0: i32) -> (i32, i32, i32) {
    %c0_i32 = arith.constant 0 : i32
    %c0_i32_0 = arith.constant 0 : i32
    %c0_i32_1 = arith.constant 0 : i32
    return %arg0, %c0_i32, %c0_i32_0 : i32, i32, i32
  }
  func.func @transform_2(%arg0: i32) -> (i32, i32) {
    %c0_i32 = arith.constant 0 : i32
    %c0_i32_0 = arith.constant 0 : i32
    %c0_i32_1 = arith.constant 0 : i32
    return %c0_i32, %c0_i32_0 : i32, i32
  }
  func.func @transform_3(%arg0: i32) -> (i32, i32, i32) {
    %c0_i32 = arith.constant 0 : i32
    %c0_i32_0 = arith.constant 0 : i32
    %c0_i32_1 = arith.constant 0 : i32
    return %arg0, %c0_i32, %c0_i32_0 : i32, i32, i32
  }
}

module attributes {stable_mosaic.version = 11 : i64} {
  func.func @kernel(%arg0: i32, %arg1: memref<1x256x24xbf16, #tpu.memory_space<vmem>>, %arg2: memref<24x144xbf16, #tpu.memory_space<vmem>>, %arg3: memref<1x256x144xbf16, #tpu.memory_space<vmem>>) attributes {dimension_semantics = [#tpu.dimension_semantics<arbitrary>], iteration_bounds = array<i64: 2>, scalar_prefetch = 0 : i64, scratch_operands = 0 : i64, tpu.core_type = #tpu.core_type<tc>, window_params = [{transform_indices = @transform_0, window_bounds = array<i64: 1, 256, 24>}, {pipeline_mode = #tpu.pipeline_mode<synchronous>, transform_indices = @transform_1, window_bounds = array<i64: 24, 144>}, {transform_indices = @transform_2, window_bounds = array<i64: 1, 256, 144>}]} {
    %c0 = arith.constant 0 : index
    %c0_0 = arith.constant 0 : index
    %c0_1 = arith.constant 0 : index
    %0 = vector.load %arg1[%c0, %c0_0, %c0_1] : memref<1x256x24xbf16, #tpu.memory_space<vmem>>, vector<1x256x24xbf16>
    %1 = vector.shape_cast %0 : vector<1x256x24xbf16> to vector<256x24xbf16>
    %c0_2 = arith.constant 0 : index
    %c0_3 = arith.constant 0 : index
    %2 = vector.load %arg2[%c0_2, %c0_3] : memref<24x144xbf16, #tpu.memory_space<vmem>>, vector<24x144xbf16>
    %cst = arith.constant dense<0.000000e+00> : vector<256x144xf32>
    %3 = tpu.matmul %1, %2, %cst {dimension_numbers = #tpu.dot_dimension_numbers<[1], [0], [0], [1], [0, 0, 1, 1], [], []>} : vector<256x24xbf16>, vector<24x144xbf16>, vector<256x144xf32> -> vector<256x144xf32>
    %4 = arith.negf %3 : vector<256x144xf32>
    %5 = math.exp %4 : vector<256x144xf32>
    %cst_4 = arith.constant 1.000000e+00 : f32
    %6 = vector.broadcast %cst_4 : f32 to vector<256x144xf32>
    %7 = arith.addf %6, %5 : vector<256x144xf32>
    %8 = arith.divf %6, %7 : vector<256x144xf32>
    %9 = arith.mulf %3, %8 : vector<256x144xf32>
    %10 = arith.truncf %9 : vector<256x144xf32> to vector<256x144xbf16>
    %c0_5 = arith.constant 0 : index
    %c0_6 = arith.constant 0 : index
    %c0_7 = arith.constant 0 : index
    %11 = vector.load %arg3[%c0_5, %c0_6, %c0_7] : memref<1x256x144xbf16, #tpu.memory_space<vmem>>, vector<1x256x144xbf16>
    %12 = vector.shape_cast %11 : vector<1x256x144xbf16> to vector<256x144xbf16>
    %13 = vector.shape_cast %10 : vector<256x144xbf16> to vector<1x256x144xbf16>
    tpu.vector_store %arg3[%c0_5, %c0_6, %c0_7], %13 {strides = array<i32>} : memref<1x256x144xbf16, #tpu.memory_space<vmem>>, vector<1x256x144xbf16>,
    return
  }
  func.func @transform_0(%arg0: i32) -> (i32, i32, i32) {
    %c0_i32 = arith.constant 0 : i32
    %c0_i32_0 = arith.constant 0 : i32
    %c0_i32_1 = arith.constant 0 : i32
    return %arg0, %c0_i32, %c0_i32_0 : i32, i32, i32
  }
  func.func @transform_1(%arg0: i32) -> (i32, i32) {
    %c0_i32 = arith.constant 0 : i32
    %c0_i32_0 = arith.constant 0 : i32
    %c0_i32_1 = arith.constant 0 : i32
    return %c0_i32, %c0_i32_0 : i32, i32
  }
  func.func @transform_2(%arg0: i32) -> (i32, i32, i32) {
    %c0_i32 = arith.constant 0 : i32
    %c0_i32_0 = arith.constant 0 : i32
    %c0_i32_1 = arith.constant 0 : i32
    return %arg0, %c0_i32, %c0_i32_0 : i32, i32, i32
  }
}

module attributes {stable_mosaic.version = 11 : i64} {
  func.func @kernel(%arg0: i32, %arg1: memref<1x256x144xbf16, #tpu.memory_space<vmem>>, %arg2: memref<1x1x144xbf16, #tpu.memory_space<vmem>>, %arg3: memref<144x24xbf16, #tpu.memory_space<vmem>>, %arg4: memref<1x256x24xbf16, #tpu.memory_space<vmem>>, %arg5: memref<1x256x24xbf16, #tpu.memory_space<vmem>>) attributes {dimension_semantics = [#tpu.dimension_semantics<arbitrary>], iteration_bounds = array<i64: 2>, scalar_prefetch = 0 : i64, scratch_operands = 0 : i64, tpu.core_type = #tpu.core_type<tc>, window_params = [{transform_indices = @transform_0, window_bounds = array<i64: 1, 256, 144>}, {transform_indices = @transform_1, window_bounds = array<i64: 1, 1, 144>}, {pipeline_mode = #tpu.pipeline_mode<synchronous>, transform_indices = @transform_2, window_bounds = array<i64: 144, 24>}, {transform_indices = @transform_3, window_bounds = array<i64: 1, 256, 24>}, {transform_indices = @transform_4, window_bounds = array<i64: 1, 256, 24>}]} {
    %c0 = arith.constant 0 : index
    %c0_0 = arith.constant 0 : index
    %c0_1 = arith.constant 0 : index
    %0 = vector.load %arg1[%c0, %c0_0, %c0_1] : memref<1x256x144xbf16, #tpu.memory_space<vmem>>, vector<1x256x144xbf16>
    %1 = vector.shape_cast %0 : vector<1x256x144xbf16> to vector<256x144xbf16>
    %c0_2 = arith.constant 0 : index
    %c0_3 = arith.constant 0 : index
    %c0_4 = arith.constant 0 : index
    %2 = vector.load %arg2[%c0_2, %c0_3, %c0_4] : memref<1x1x144xbf16, #tpu.memory_space<vmem>>, vector<1x1x144xbf16>
    %3 = vector.shape_cast %2 : vector<1x1x144xbf16> to vector<1x144xbf16>
    %4 = vector.broadcast %3 : vector<1x144xbf16> to vector<256x144xbf16>
    %5 = arith.mulf %1, %4 : vector<256x144xbf16>
    %c0_5 = arith.constant 0 : index
    %c0_6 = arith.constant 0 : index
    %6 = vector.load %arg3[%c0_5, %c0_6] : memref<144x24xbf16, #tpu.memory_space<vmem>>, vector<144x24xbf16>
    %cst = arith.constant dense<0.000000e+00> : vector<256x24xf32>
    %7 = tpu.matmul %5, %6, %cst {dimension_numbers = #tpu.dot_dimension_numbers<[1], [0], [0], [1], [0, 0, 1, 1], [], []>} : vector<256x144xbf16>, vector<144x24xbf16>, vector<256x24xf32> -> vector<256x24xf32>
    %c0_7 = arith.constant 0 : index
    %c0_8 = arith.constant 0 : index
    %c0_9 = arith.constant 0 : index
    %8 = vector.load %arg4[%c0_7, %c0_8, %c0_9] : memref<1x256x24xbf16, #tpu.memory_space<vmem>>, vector<1x256x24xbf16>
    %9 = vector.shape_cast %8 : vector<1x256x24xbf16> to vector<256x24xbf16>
    %10 = arith.extf %9 : vector<256x24xbf16> to vector<256x24xf32>
    %11 = arith.addf %7, %10 : vector<256x24xf32>
    %12 = arith.truncf %11 : vector<256x24xf32> to vector<256x24xbf16>
    %c0_10 = arith.constant 0 : index
    %c0_11 = arith.constant 0 : index
    %c0_12 = arith.constant 0 : index
    %13 = vector.load %arg5[%c0_10, %c0_11, %c0_12] : memref<1x256x24xbf16, #tpu.memory_space<vmem>>, vector<1x256x24xbf16>
    %14 = vector.shape_cast %13 : vector<1x256x24xbf16> to vector<256x24xbf16>
    %15 = vector.shape_cast %12 : vector<256x24xbf16> to vector<1x256x24xbf16>
    tpu.vector_store %arg5[%c0_10, %c0_11, %c0_12], %15 {strides = array<i32>} : memref<1x256x24xbf16, #tpu.memory_space<vmem>>, vector<1x256x24xbf16>,
    return
  }
  func.func @transform_0(%arg0: i32) -> (i32, i32, i32) {
    %c0_i32 = arith.constant 0 : i32
    %c0_i32_0 = arith.constant 0 : i32
    %c0_i32_1 = arith.constant 0 : i32
    return %arg0, %c0_i32, %c0_i32_0 : i32, i32, i32
  }
  func.func @transform_1(%arg0: i32) -> (i32, i32, i32) {
    %c0_i32 = arith.constant 0 : i32
    %c0_i32_0 = arith.constant 0 : i32
    %c0_i32_1 = arith.constant 0 : i32
    return %arg0, %c0_i32, %c0_i32_0 : i32, i32, i32
  }
  func.func @transform_2(%arg0: i32) -> (i32, i32) {
    %c0_i32 = arith.constant 0 : i32
    %c0_i32_0 = arith.constant 0 : i32
    %c0_i32_1 = arith.constant 0 : i32
    return %c0_i32, %c0_i32_0 : i32, i32
  }
  func.func @transform_3(%arg0: i32) -> (i32, i32, i32) {
    %c0_i32 = arith.constant 0 : i32
    %c0_i32_0 = arith.constant 0 : i32
    %c0_i32_1 = arith.constant 0 : i32
    return %arg0, %c0_i32, %c0_i32_0 : i32, i32, i32
  }
  func.func @transform_4(%arg0: i32) -> (i32, i32, i32) {
    %c0_i32 = arith.constant 0 : i32
    %c0_i32_0 = arith.constant 0 : i32
    %c0_i32_1 = arith.constant 0 : i32
    return %arg0, %c0_i32, %c0_i32_0 : i32, i32, i32
  }
}

</mosaic_0001>

<bundles_post_ra>
// kernel: forward.6
= control target key start
LH: loop header
LB: loop body
LE: loop exit
PB: predicated region body
PF: predicated region fallthrough
CT: control target
= control target key end

     0   :  { %s2873_s12 = smov 0   ;;  %s3630_s0 = inlined_call_operand.vmem [shape: bf16[2,1024,32], index: 0, kind: input, shape index: {}]   ;;  %s3631_s1 = inlined_call_operand.vmem [shape: bf16[2,1,32], index: 1, kind: input, shape index: {}]   ;;  %s3632_s2 = inlined_call_operand.vmem [shape: bf16[32,16], index: 2, kind: input, shape index: {}]   ;;  %s3633_s3 = inlined_call_operand.vmem [shape: bf16[2,1024,16], index: 3, kind: output, shape index: {}]  }
   0x1 LB: > { %s2233_s13 = sadd.s32 4294967295, %s2851_s12   ;;  %p2237_p0 = scmp.ge.s32.totalorder %s2851_s12, 1  ;;  %s2851_s12 = sphi %s2873_s12, %s13_s12  }
   0x2   : > { %p145_p1 = scmp.lt.s32.totalorder %s2851_s12, 3 }
   0x4   : > { %p146_p2 = pnand %p2237_p0, %p145_p1 }
   0x5   : > { %p172_p3 = scmp.lt.s32.totalorder (!%p146_p2), %s2233_s13, 1 }
   0x6   : > { %149 = sbr.rel (%p146_p2) target bundleno = 348 (0x15c), region = 32 }
   0xb   : > { %v2843_v0 = vld [vmem:[%s3632_s2 + $0x8] sm:$0xff]   ;;  %v318_v1 = vlaneseq  ;;  %v2844_v2 = vld [vmem:[%s3632_s2] sm:$0xff]   ;;  %s3635_s13 = smov (!%p172_p3, %s2233_s13), 1  ;;  %vm790_vm0 = vcmask 261120   ;;  %vm2040_vm1 = vcmask 125952  }
   0xc   : > { %2699 = vmatprep.subr.bf16.mxu0 %v2843_v0  ;;  %2831 = vmatprep.subr.bf16.mxu1 %v2843_v0  ;;  %s2503_s18 = sshll.u32 %s3635_s13, 9  ;;  %s179_s21 = scalar_lea.vmem %s3631_s1, %s3635_s13 }
   0xd   : > { %v319_v3 = vshrl.u32 %v318_v1, 7  ;;  %2700 = vmatpush3.bf16.msra.mxu0 %v2843_v0  ;;  %2833 = vmatpush3.bf16.msra.mxu1 %v2843_v0  ;;  %s2899_s24 = scalar_lea.vmem %s3630_s0, %s2503_s18  ;;  %v314_v5 = vld [vmem:[%s179_s21] sm:$0x1]  ;;  %s3369_s27 = scalar_lea.vmem %s3633_s3, %s2503_s18 }
   0xe   : > { %2701 = vmatprep.subr.bf16.mxu0 %v2844_v2  ;;  %2832 = vmatprep.subr.bf16.mxu1 %v2844_v2  ;;  %v316_v6 = vpack.i.b16 %v314_v5, %v314_v5  ;;  %v186_v7 = vld [vmem:[%s2899_s24] sm:$0xf]  ;;  %v187_v8 = vld [vmem:[%s2899_s24 + $0x4] sm:$0xf]  ;;  %v188_v12 = vld [vmem:[%s2899_s24 + $0x8] sm:$0xf] }
   0xf   : > { %v320_v4 = vsub.s32 0, %v319_v3  ;;  %v250_v10 = vld [vmem:[%s2899_s24 + $0x100] sm:$0xf]  ;;  %v251_v11 = vld [vmem:[%s2899_s24 + $0x104] sm:$0xf] }
  0x10   : > { %v189_v14 = vld [vmem:[%s2899_s24 + $0xc] sm:$0xf]  ;;  %v252_v15 = vld [vmem:[%s2899_s24 + $0x108] sm:$0xf]  ;;  %v190_v17 = vld [vmem:[%s2899_s24 + $0x10] sm:$0xf] }
  0x11   : > { %2702 = vmatpush3.bf16.msra.mxu0 %v2844_v2  ;;  %2834 = vmatpush3.bf16.msra.mxu1 %v2844_v2  ;;  %v321_v9 = vrot.slane %v316_v6, %v320_v4  ;;  %v253_v16 = vld [vmem:[%s2899_s24 + $0x10c] sm:$0xf]  ;;  %v191_v18 = vld [vmem:[%s2899_s24 + $0x14] sm:$0xf]  ;;  %v254_v23 = vld [vmem:[%s2899_s24 + $0x110] sm:$0xf] }
  0x12   : > { %v255_v24 = vld [vmem:[%s2899_s24 + $0x114] sm:$0xf]  ;;  %v192_v29 = vld [vmem:[%s2899_s24 + $0x18] sm:$0xf]  ;;  %v193_v30 = vld [vmem:[%s2899_s24 + $0x1c] sm:$0xf] }
  0x13   : > { %v2906_v13 = vcombine.low %v321_v9, %v321_v9  ;;  %v256_v35 = vld [vmem:[%s2899_s24 + $0x118] sm:$0xf]  ;;  %v257_v36 = vld [vmem:[%s2899_s24 + $0x11c] sm:$0xf]  ;;  %v194_v41 = vld [vmem:[%s2899_s24 + $0x20] sm:$0xf] }
  0x14   : > { %v195_v42 = vld [vmem:[%s2899_s24 + $0x24] sm:$0xf]  ;;  %v258_v43 = vld [vmem:[%s2899_s24 + $0x120] sm:$0xf]  ;;  %v196_v54 = vld [vmem:[%s2899_s24 + $0x28] sm:$0xf] }
  0x15   : > { %v326_v19 = vmul.bf16 %v2906_v13, %v186_v7  ;;  %v327_v20 = vmul.bf16 %v2906_v13, %v187_v8  ;;  %v390_v21 = vmul.bf16 %v2906_v13, %v250_v10  ;;  %v391_v22 = vmul.bf16 %v2906_v13, %v251_v11  ;;  %v259_v47 = vld [vmem:[%s2899_s24 + $0x124] sm:$0xf]  ;;  %v197_v55 = vld [vmem:[%s2899_s24 + $0x2c] sm:$0xf]  ;;  %v260_v57 = vld [vmem:[%s2899_s24 + $0x128] sm:$0xf] }
  0x16   : > { %v328_v25 = vmul.bf16 %v2906_v13, %v188_v12  ;;  %v329_v26 = vmul.bf16 %v2906_v13, %v189_v14  ;;  %v392_v27 = vmul.bf16 %v2906_v13, %v252_v15  ;;  %v393_v28 = vmul.bf16 %v2906_v13, %v253_v16  ;;  %v261_v58 = vld [vmem:[%s2899_s24 + $0x12c] sm:$0xf]  ;;  %v198_v59 = vld [vmem:[%s2899_s24 + $0x30] sm:$0xf]  ;;  %v199_v60 = vld [vmem:[%s2899_s24 + $0x34] sm:$0xf] }
  0x17   : > { %v2243_v31 = vcombine.low %v326_v19, %v327_v20  ;;  %v2275_v32 = vcombine.low %v390_v21, %v391_v22  ;;  %v330_v33 = vmul.bf16 %v2906_v13, %v190_v17  ;;  %v331_v34 = vmul.bf16 %v2906_v13, %v191_v18  ;;  %v262_v61 = vld [vmem:[%s2899_s24 + $0x130] sm:$0xf]  ;;  %v263_v2 = vld [vmem:[%s2899_s24 + $0x134] sm:$0xf]  ;;  %v200_v3 = vld [vmem:[%s2899_s24 + $0x38] sm:$0xf] }
  0x18   : > { %v2244_v37 = vcombine.low %v328_v25, %v329_v26  ;;  %v2276_v38 = vcombine.low %v392_v27, %v393_v28  ;;  %v394_v39 = vmul.bf16 %v2906_v13, %v254_v23  ;;  %v395_v40 = vmul.bf16 %v2906_v13, %v255_v24  ;;  %v201_v4 = vld [vmem:[%s2899_s24 + $0x3c] sm:$0xf]  ;;  %v2966_v11 = vld [vmem:[%s2899_s24 + $0x138] sm:$0xf]  ;;  %v2972_v14 = vld [vmem:[%s2899_s24 + $0x40] sm:$0xf] }
  0x19   : > { %2703 = vmatprep.mubr.msk.bf16.mxu0 %vm790_vm0, %v2243_v31  ;;  %2767 = vmatprep.mubr.msk.bf16.mxu1 %vm790_vm0, %v2275_v32  ;;  %v2245_v44 = vcombine.low %v330_v33, %v331_v34  ;;  %v332_v45 = vmul.bf16 %v2906_v13, %v192_v29  ;;  %v333_v46 = vmul.bf16 %v2906_v13, %v193_v30  ;;  %v2969_v12 = vld [vmem:[%s2899_s24 + $0x13c] sm:$0xf]  ;;  %v203_v19 = vld [vmem:[%s2899_s24 + $0x44] sm:$0xf]  ;;  %v266_v20 = vld [vmem:[%s2899_s24 + $0x140] sm:$0xf] }
  0x1a   : > { %2704 = vmatmul.mubr.msk.bf16.vlgmr.msra.gmra.mxu0 %vm790_vm0, %v2244_v37  ;;  %2768 = vmatmul.mubr.msk.bf16.vlgmr.msra.gmra.mxu1 %vm790_vm0, %v2276_v38  ;;  %v2277_v48 = vcombine.low %v394_v39, %v395_v40  ;;  %v396_v49 = vmul.bf16 %v2906_v13, %v256_v35  ;;  %v397_v50 = vmul.bf16 %v2906_v13, %v257_v36  ;;  %v267_v21 = vld [vmem:[%s2899_s24 + $0x144] sm:$0xf]  ;;  %v204_v22 = vld [vmem:[%s2899_s24 + $0x48] sm:$0xf]  ;;  %v205_v23 = vld [vmem:[%s2899_s24 + $0x4c] sm:$0xf] }
  0x1b   : > { %2707 = vmatprep.mubr.msk.bf16.mxu0 %vm790_vm0, %v2245_v44  ;;  %v334_v51 = vmul.bf16 %v2906_v13, %v194_v41  ;;  %v335_v52 = vmul.bf16 %v2906_v13, %v195_v42  ;;  %v398_v53 = vmul.bf16 %v2906_v13, %v258_v43  ;;  %v399_v56 = vmul.bf16 %v2906_v13, %v259_v47  ;;  %v268_v24 = vld [vmem:[%s2899_s24 + $0x148] sm:$0xf]  ;;  %v269_v27 = vld [vmem:[%s2899_s24 + $0x14c] sm:$0xf]  ;;  %v206_v28 = vld [vmem:[%s2899_s24 + $0x50] sm:$0xf] }
  0x1c   : > { %2771 = vmatprep.mubr.msk.bf16.mxu1 %vm790_vm0, %v2277_v48  ;;  %v2246_v62 = vcombine.low %v332_v45, %v333_v46  ;;  %v2278_v63 = vcombine.low %v396_v49, %v397_v50  ;;  %v336_v0 = vmul.bf16 %v2906_v13, %v196_v54  ;;  %v337_v1 = vmul.bf16 %v2906_v13, %v197_v55  ;;  %v207_v29 = vld [vmem:[%s2899_s24 + $0x54] sm:$0xf]  ;;  %v270_v34 = vld [vmem:[%s2899_s24 + $0x150] sm:$0xf]  ;;  %v208_v36 = vld [vmem:[%s2899_s24 + $0x58] sm:$0xf] }
  0x1d   : > { %v2247_v5 = vcombine.low %v334_v51, %v335_v52  ;;  %v2279_v6 = vcombine.low %v398_v53, %v399_v56  ;;  %v400_v7 = vmul.bf16 %v2906_v13, %v260_v57  ;;  %v401_v8 = vmul.bf16 %v2906_v13, %v261_v58  ;;  %v271_v35 = vld [vmem:[%s2899_s24 + $0x154] sm:$0xf]  ;;  %v209_v41 = vld [vmem:[%s2899_s24 + $0x5c] sm:$0xf]  ;;  %v272_v42 = vld [vmem:[%s2899_s24 + $0x158] sm:$0xf] }
  0x1e   : > { %v338_v9 = vmul.bf16 %v2906_v13, %v198_v59  ;;  %v339_v10 = vmul.bf16 %v2906_v13, %v199_v60  ;;  %v402_v15 = vmul.bf16 %v2906_v13, %v262_v61  ;;  %v403_v16 = vmul.bf16 %v2906_v13, %v263_v2  ;;  %v273_v43 = vld [vmem:[%s2899_s24 + $0x15c] sm:$0xf]  ;;  %v210_v48 = vld [vmem:[%s2899_s24 + $0x60] sm:$0xf]  ;;  %v211_v49 = vld [vmem:[%s2899_s24 + $0x64] sm:$0xf] }
  0x1f   : > { %v340_v17 = vmul.bf16 %v2906_v13, %v200_v3  ;;  %v341_v18 = vmul.bf16 %v2906_v13, %v201_v4  ;;  %v2248_v25 = vcombine.low %v336_v0, %v337_v1  ;;  %v2280_v26 = vcombine.low %v400_v7, %v401_v8  ;;  %v274_v50 = vld [vmem:[%s2899_s24 + $0x160] sm:$0xf]  ;;  %v275_v55 = vld [vmem:[%s2899_s24 + $0x164] sm:$0xf]  ;;  %v212_v56 = vld [vmem:[%s2899_s24 + $0x68] sm:$0xf] }
  0x20   : > { %v2249_v30 = vcombine.low %v338_v9, %v339_v10  ;;  %v404_v31 = vmul.bf16 %v2906_v13, %v2966_v11  ;;  %v405_v32 = vmul.bf16 %v2906_v13, %v2969_v12  ;;  %v342_v33 = vmul.bf16 %v2906_v13, %v2972_v14  ;;  %v213_v57 = vld [vmem:[%s2899_s24 + $0x6c] sm:$0xf]  ;;  %v276_v2 = vld [vmem:[%s2899_s24 + $0x168] sm:$0xf]  ;;  %v3039_v10 = vld [vmem:[%s2899_s24 + $0x70] sm:$0xf] }
  0x21   : > { %v2281_v37 = vcombine.low %v402_v15, %v403_v16  ;;  %v3000_v38 = vcombine.low %v340_v17, %v341_v18  ;;  %v343_v39 = vmul.bf16 %v2906_v13, %v203_v19  ;;  %v406_v40 = vmul.bf16 %v2906_v13, %v266_v20  ;;  %v277_v3 = vld [vmem:[%s2899_s24 + $0x16c] sm:$0xf]  ;;  %v3042_v11 = vld [vmem:[%s2899_s24 + $0x74] sm:$0xf]  ;;  %v3051_v17 = vld [vmem:[%s2899_s24 + $0x170] sm:$0xf] }
  0x22   : > { %2708 = vmatmul.mubr.msk.bf16.gmra.mxu0 %vm790_vm0, %v2246_v62  ;;  %2772 = vmatmul.mubr.msk.bf16.gmra.mxu1 %vm790_vm0, %v2278_v63  ;;  %v407_v44 = vmul.bf16 %v2906_v13, %v267_v21  ;;  %v344_v45 = vmul.bf16 %v2906_v13, %v204_v22  ;;  %v345_v46 = vmul.bf16 %v2906_v13, %v205_v23  ;;  %v220_v18 = vld [vmem:[%s2899_s24 + $0x88] sm:$0xf]  ;;  %v221_v19 = vld [vmem:[%s2899_s24 + $0x8c] sm:$0xf] }
  0x23   : > { %2711 = vmatprep.mubr.msk.bf16.mxu0 %vm790_vm0, %v2247_v5  ;;  %2775 = vmatprep.mubr.msk.bf16.mxu1 %vm790_vm0, %v2279_v6  ;;  %v408_v47 = vmul.bf16 %v2906_v13, %v268_v24  ;;  %v409_v51 = vmul.bf16 %v2906_v13, %v269_v27  ;;  %v346_v52 = vmul.bf16 %v2906_v13, %v206_v28  ;;  %v284_v24 = vld [vmem:[%s2899_s24 + $0x188] sm:$0xf] }
  0x24   : > { %v347_v53 = vmul.bf16 %v2906_v13, %v207_v29  ;;  %v410_v54 = vmul.bf16 %v2906_v13, %v270_v34  ;;  %v411_v58 = vmul.bf16 %v2906_v13, %v271_v35  ;;  %v348_v59 = vmul.bf16 %v2906_v13, %v208_v36 }
  0x25   : > { %v349_v60 = vmul.bf16 %v2906_v13, %v209_v41  ;;  %v412_v61 = vmul.bf16 %v2906_v13, %v272_v42  ;;  %v413_v62 = vmul.bf16 %v2906_v13, %v273_v43  ;;  %v350_v63 = vmul.bf16 %v2906_v13, %v210_v48 }
  0x26   : > { %v351_v0 = vmul.bf16 %v2906_v13, %v211_v49  ;;  %v414_v1 = vmul.bf16 %v2906_v13, %v274_v50  ;;  %v415_v4 = vmul.bf16 %v2906_v13, %v275_v55  ;;  %v352_v5 = vmul.bf16 %v2906_v13, %v212_v56 }
  0x27   : > { %v353_v6 = vmul.bf16 %v2906_v13, %v213_v57  ;;  %v2282_v7 = vcombine.low %v404_v31, %v405_v32  ;;  %v2251_v8 = vcombine.low %v342_v33, %v343_v39  ;;  %v2283_v9 = vcombine.low %v406_v40, %v407_v44  ;;  %v3075_v31 = vld [vmem:[%s2899_s24 + $0x174] sm:$0xf]  ;;  %v286_v33 = vld [vmem:[%s2899_s24 + $0x190] sm:$0xf]  ;;  %v224_v40 = vld [vmem:[%s2899_s24 + $0x98] sm:$0xf] }
  0x28   : > { %v3044_v12 = vcombine.low %v344_v45, %v345_v46  ;;  %v3046_v14 = vcombine.low %v408_v47, %v409_v51  ;;  %v416_v15 = vmul.bf16 %v2906_v13, %v276_v2  ;;  %v417_v16 = vmul.bf16 %v2906_v13, %v277_v3  ;;  %v223_v32 = vld [vmem:[%s2899_s24 + $0x94] sm:$0xf]  ;;  %v225_v45 = vld [vmem:[%s2899_s24 + $0x9c] sm:$0xf]  ;;  %v288_v46 = vld [vmem:[%s2899_s24 + $0x198] sm:$0xf] }
  0x29   : > { %v3055_v20 = vcombine.low %v346_v52, %v347_v53  ;;  %v3057_v21 = vcombine.low %v410_v54, %v411_v58  ;;  %v3059_v22 = vcombine.low %v348_v59, %v349_v60  ;;  %v3061_v23 = vcombine.low %v412_v61, %v413_v62  ;;  %v287_v39 = vld [vmem:[%s2899_s24 + $0x194] sm:$0xf]  ;;  %v289_v51 = vld [vmem:[%s2899_s24 + $0x19c] sm:$0xf]  ;;  %v226_v52 = vld [vmem:[%s2899_s24 + $0xa0] sm:$0xf] }
  0x2a   : > { %2712 = vmatmul.mubr.msk.bf16.gmra.mxu0 %vm790_vm0, %v2248_v25  ;;  %2776 = vmatmul.mubr.msk.bf16.gmra.mxu1 %vm790_vm0, %v2280_v26  ;;  %v285_v25 = vld [vmem:[%s2899_s24 + $0x18c] sm:$0xf]  ;;  %v222_v26 = vld [vmem:[%s2899_s24 + $0x90] sm:$0xf]  ;;  %v3066_v27 = vcombine.low %v350_v63, %v351_v0  ;;  %v3068_v28 = vcombine.low %v414_v1, %v415_v4  ;;  %v3070_v29 = vcombine.low %v352_v5, %v353_v6  ;;  %v227_v53 = vld [vmem:[%s2899_s24 + $0xa4] sm:$0xf] }
  0x2b   : > { %2715 = vmatprep.mubr.msk.bf16.mxu0 %vm790_vm0, %v2249_v30  ;;  %2779 = vmatprep.mubr.msk.bf16.mxu1 %vm790_vm0, %v2281_v37  ;;  %v354_v30 = vmul.bf16 %v2906_v13, %v3039_v10  ;;  %v355_v34 = vmul.bf16 %v2906_v13, %v3042_v11  ;;  %v418_v35 = vmul.bf16 %v2906_v13, %v3051_v17  ;;  %v290_v57 = vld [vmem:[%s2899_s24 + $0x1a0] sm:$0xf]  ;;  %v291_v58 = vld [vmem:[%s2899_s24 + $0x1a4] sm:$0xf]  ;;  %v228_v59 = vld [vmem:[%s2899_s24 + $0xa8] sm:$0xf] }
  0x2c   : > { %v360_v36 = vmul.bf16 %v2906_v13, %v220_v18  ;;  %v361_v37 = vmul.bf16 %v2906_v13, %v221_v19  ;;  %v3087_v41 = vcombine.low %v416_v15, %v417_v16  ;;  %v424_v42 = vmul.bf16 %v2906_v13, %v284_v24  ;;  %v229_v62 = vld [vmem:[%s2899_s24 + $0xac] sm:$0xf]  ;;  %v292_v63 = vld [vmem:[%s2899_s24 + $0x1a8] sm:$0xf]  ;;  %v230_v5 = vld [vmem:[%s2899_s24 + $0xb0] sm:$0xf] }
  0x2d   : > { %v425_v43 = vmul.bf16 %v2906_v13, %v285_v25  ;;  %v362_v44 = vmul.bf16 %v2906_v13, %v222_v26  ;;  %v419_v47 = vmul.bf16 %v2906_v13, %v3075_v31  ;;  %v363_v49 = vmul.bf16 %v2906_v13, %v223_v32  ;;  %v293_v4 = vld [vmem:[%s2899_s24 + $0x1ac] sm:$0xf]  ;;  %v231_v6 = vld [vmem:[%s2899_s24 + $0xb4] sm:$0xf]  ;;  %v294_v16 = vld [vmem:[%s2899_s24 + $0x1b0] sm:$0xf] }
  0x2e   : > { %v3096_v48 = vcombine.low %v360_v36, %v361_v37  ;;  %v426_v50 = vmul.bf16 %v2906_v13, %v286_v33  ;;  %v427_v55 = vmul.bf16 %v2906_v13, %v287_v39  ;;  %v364_v56 = vmul.bf16 %v2906_v13, %v224_v40  ;;  %v295_v18 = vld [vmem:[%s2899_s24 + $0x1b4] sm:$0xf]  ;;  %v232_v19 = vld [vmem:[%s2899_s24 + $0xb8] sm:$0xf]  ;;  %v233_v33 = vld [vmem:[%s2899_s24 + $0xbc] sm:$0xf] }
  0x2f   : > { %v3106_v54 = vcombine.low %v424_v42, %v425_v43  ;;  %v3115_v60 = vcombine.low %v362_v44, %v363_v49  ;;  %v428_v61 = vmul.bf16 %v2906_v13, %v288_v46  ;;  %v429_v1 = vmul.bf16 %v2906_v13, %v289_v51  ;;  %v296_v36 = vld [vmem:[%s2899_s24 + $0x1b8] sm:$0xf]  ;;  %v297_v43 = vld [vmem:[%s2899_s24 + $0x1bc] sm:$0xf]  ;;  %v234_v44 = vld [vmem:[%s2899_s24 + $0xc0] sm:$0xf] }
  0x30   : > { %v3121_v0 = vcombine.low %v426_v50, %v427_v55  ;;  %v366_v2 = vmul.bf16 %v2906_v13, %v226_v52  ;;  %v367_v3 = vmul.bf16 %v2906_v13, %v227_v53  ;;  %v368_v15 = vmul.bf16 %v2906_v13, %v228_v59  ;;  %v235_v51 = vld [vmem:[%s2899_s24 + $0xc4] sm:$0xf]  ;;  %v298_v52 = vld [vmem:[%s2899_s24 + $0x1c0] sm:$0xf]  ;;  %v236_v59 = vld [vmem:[%s2899_s24 + $0xc8] sm:$0xf] }
  0x31   : > { %v3137_v24 = vcombine.low %v428_v61, %v429_v1  ;;  %v369_v26 = vmul.bf16 %v2906_v13, %v229_v62  ;;  %v432_v32 = vmul.bf16 %v2906_v13, %v292_v63  ;;  %v433_v39 = vmul.bf16 %v2906_v13, %v293_v4  ;;  %v300_v1 = vld [vmem:[%s2899_s24 + $0x1c8] sm:$0xf]  ;;  %v283_v11 = vld [vmem:[%s2899_s24 + $0x184] sm:$0xf] }
  0x32   : > { %2716 = vmatmul.mubr.msk.bf16.gmra.mxu0 %vm790_vm0, %v3000_v38  ;;  %2780 = vmatmul.mubr.msk.bf16.gmra.mxu1 %vm790_vm0, %v2282_v7  ;;  %v365_v38 = vmul.bf16 %v2906_v13, %v225_v45  ;;  %v3139_v25 = vcombine.low %v366_v2, %v367_v3  ;;  %v370_v40 = vmul.bf16 %v2906_v13, %v230_v5  ;;  %v301_v2 = vld [vmem:[%s2899_s24 + $0x1cc] sm:$0xf]  ;;  %v238_v3 = vld [vmem:[%s2899_s24 + $0xd0] sm:$0xf]  ;;  %v239_v5 = vld [vmem:[%s2899_s24 + $0xd4] sm:$0xf] }
  0x33   : > { %2719 = vmatprep.mubr.msk.bf16.mxu0 %vm790_vm0, %v2251_v8  ;;  %2783 = vmatprep.mubr.msk.bf16.mxu1 %vm790_vm0, %v2283_v9  ;;  %v430_v8 = vmul.bf16 %v2906_v13, %v290_v57  ;;  %v431_v9 = vmul.bf16 %v2906_v13, %v291_v58  ;;  %v371_v42 = vmul.bf16 %v2906_v13, %v231_v6  ;;  %v299_v58 = vld [vmem:[%s2899_s24 + $0x1c4] sm:$0xf]  ;;  %v302_v6 = vld [vmem:[%s2899_s24 + $0x1d0] sm:$0xf] }
  0x34   : > { %v3129_v7 = vcombine.low %v364_v56, %v365_v38  ;;  %v3152_v45 = vcombine.low %v368_v15, %v369_v26  ;;  %v434_v46 = vmul.bf16 %v2906_v13, %v294_v16  ;;  %v435_v49 = vmul.bf16 %v2906_v13, %v295_v18  ;;  %v237_v38 = vld [vmem:[%s2899_s24 + $0xcc] sm:$0xf]  ;;  %v303_v15 = vld [vmem:[%s2899_s24 + $0x1d4] sm:$0xf]  ;;  %v240_v16 = vld [vmem:[%s2899_s24 + $0xd8] sm:$0xf] }
  0x35   : > { %v3145_v37 = vcombine.low %v430_v8, %v431_v9  ;;  %v372_v50 = vmul.bf16 %v2906_v13, %v232_v19  ;;  %v3159_v53 = vcombine.low %v432_v32, %v433_v39  ;;  %v3161_v55 = vcombine.low %v370_v40, %v371_v42  ;;  %v241_v18 = vld [vmem:[%s2899_s24 + $0xdc] sm:$0xf]  ;;  %v242_v40 = vld [vmem:[%s2899_s24 + $0xe0] sm:$0xf] }
  0x36   : > { %v373_v56 = vmul.bf16 %v2906_v13, %v233_v33  ;;  %v436_v57 = vmul.bf16 %v2906_v13, %v296_v36  ;;  %v3172_v61 = vcombine.low %v434_v46, %v435_v49  ;;  %v437_v62 = vmul.bf16 %v2906_v13, %v297_v43  ;;  %v304_v36 = vld [vmem:[%s2899_s24 + $0x1d8] sm:$0xf]  ;;  %v305_v39 = vld [vmem:[%s2899_s24 + $0x1dc] sm:$0xf]  ;;  %v243_v49 = vld [vmem:[%s2899_s24 + $0xe4] sm:$0xf] }
  0x37   : > { %v374_v63 = vmul.bf16 %v2906_v13, %v234_v44  ;;  %v438_v4 = vmul.bf16 %v2906_v13, %v298_v52  ;;  %v439_v9 = vmul.bf16 %v2906_v13, %v299_v58  ;;  %v440_v26 = vmul.bf16 %v2906_v13, %v300_v1  ;;  %v307_v58 = vld [vmem:[%s2899_s24 + $0x1e4] sm:$0xf] }
  0x38   : > { %v3189_v8 = vcombine.low %v436_v57, %v437_v62  ;;  %v441_v32 = vmul.bf16 %v2906_v13, %v301_v2  ;;  %v378_v33 = vmul.bf16 %v2906_v13, %v238_v3  ;;  %v379_v44 = vmul.bf16 %v2906_v13, %v239_v5  ;;  %v245_v2 = vld [vmem:[%s2899_s24 + $0xec] sm:$0xf]  ;;  %v308_v3 = vld [vmem:[%s2899_s24 + $0x1e8] sm:$0xf] }
  0x39   : > { %v3205_v42 = vcombine.low %v438_v4, %v439_v9  ;;  %v442_v46 = vmul.bf16 %v2906_v13, %v302_v6  ;;  %v443_v52 = vmul.bf16 %v2906_v13, %v303_v15  ;;  %v381_v57 = vmul.bf16 %v2906_v13, %v241_v18  ;;  %v309_v9 = vld [vmem:[%s2899_s24 + $0x1ec] sm:$0xf] }
  0x3a   : > { %2720 = vmatmul.mubr.msk.bf16.gmra.mxu0 %vm790_vm0, %v3044_v12  ;;  %2784 = vmatmul.mubr.msk.bf16.gmra.mxu1 %vm790_vm0, %v3046_v14  ;;  %v3183_v12 = vcombine.low %v372_v50, %v373_v56  ;;  %v375_v14 = vmul.bf16 %v2906_v13, %v235_v51  ;;  %v306_v50 = vld [vmem:[%s2899_s24 + $0x1e0] sm:$0xf]  ;;  %v3213_v51 = vcombine.low %v440_v26, %v441_v32  ;;  %v310_v26 = vld [vmem:[%s2899_s24 + $0x1f0] sm:$0xf]  ;;  %v311_v32 = vld [vmem:[%s2899_s24 + $0x1f4] sm:$0xf] }
  0x3b   : > { %2723 = vmatprep.mubr.msk.bf16.mxu0 %vm790_vm0, %v3055_v20  ;;  %2787 = vmatprep.mubr.msk.bf16.mxu1 %vm790_vm0, %v3057_v21  ;;  %v376_v20 = vmul.bf16 %v2906_v13, %v236_v59  ;;  %v377_v21 = vmul.bf16 %v2906_v13, %v237_v38  ;;  %v380_v56 = vmul.bf16 %v2906_v13, %v240_v16  ;;  %v244_v59 = vld [vmem:[%s2899_s24 + $0xe8] sm:$0xf] }
  0x3c   : > { %v3197_v19 = vcombine.low %v374_v63, %v375_v14  ;;  %v3220_v38 = vcombine.low %v378_v33, %v379_v44  ;;  %v444_v62 = vmul.bf16 %v2906_v13, %v304_v36  ;;  %v445_v63 = vmul.bf16 %v2906_v13, %v305_v39  ;;  %v248_v33 = vld [vmem:[%s2899_s24 + $0xf8] sm:$0xf]  ;;  %v249_v39 = vld [vmem:[%s2899_s24 + $0xfc] sm:$0xf] }
  0x3d   : > { %v3207_v43 = vcombine.low %v376_v20, %v377_v21  ;;  %v382_v1 = vmul.bf16 %v2906_v13, %v242_v40  ;;  %v3227_v14 = vcombine.low %v442_v46, %v443_v52  ;;  %v3229_v4 = vcombine.low %v380_v56, %v381_v57  ;;  %v246_v20 = vld [vmem:[%s2899_s24 + $0xf0] sm:$0xf]  ;;  %v247_v21 = vld [vmem:[%s2899_s24 + $0xf4] sm:$0xf]  ;;  %v312_v40 = vld [vmem:[%s2899_s24 + $0x1f8] sm:$0xf] }
  0x3e   : > { %v383_v5 = vmul.bf16 %v2906_v13, %v243_v49  ;;  %v446_v6 = vmul.bf16 %v2906_v13, %v306_v50  ;;  %v3240_v15 = vcombine.low %v444_v62, %v445_v63  ;;  %v447_v16 = vmul.bf16 %v2906_v13, %v307_v58  ;;  %v216_v58 = vld [vmem:[%s2899_s24 + $0x78] sm:$0xf] }
  0x3f   : > { %v384_v18 = vmul.bf16 %v2906_v13, %v244_v59  ;;  %v448_v36 = vmul.bf16 %v2906_v13, %v308_v3  ;;  %v449_v46 = vmul.bf16 %v2906_v13, %v309_v9  ;;  %v387_v49 = vmul.bf16 %v2906_v13, %v247_v21  ;;  %v217_v59 = vld [vmem:[%s2899_s24 + $0x7c] sm:$0xf] }
  0x40   : > { %v3257_v44 = vcombine.low %v446_v6, %v447_v16  ;;  %v450_v52 = vmul.bf16 %v2906_v13, %v310_v26  ;;  %v451_v56 = vmul.bf16 %v2906_v13, %v311_v32  ;;  %v388_v57 = vmul.bf16 %v2906_v13, %v248_v33  ;;  %v280_v6 = vld [vmem:[%s2899_s24 + $0x178] sm:$0xf]  ;;  %v281_v9 = vld [vmem:[%s2899_s24 + $0x17c] sm:$0xf]  ;;  %v282_v26 = vld [vmem:[%s2899_s24 + $0x180] sm:$0xf] }
  0x41   : > { %v2304_v62 = vcombine.low %v448_v36, %v449_v46  ;;  %v2257_v3 = vcombine.low %v354_v30, %v355_v34  ;;  %v356_v10 = vmul.bf16 %v2906_v13, %v216_v58  ;;  %v357_v30 = vmul.bf16 %v2906_v13, %v217_v59 }
  0x42   : > { %2724 = vmatmul.mubr.msk.bf16.gmra.mxu0 %vm790_vm0, %v3059_v22  ;;  %2788 = vmatmul.mubr.msk.bf16.gmra.mxu1 %vm790_vm0, %v3061_v23  ;;  %v3251_v22 = vcombine.low %v382_v1, %v383_v5  ;;  %v385_v23 = vmul.bf16 %v2906_v13, %v245_v2  ;;  %v389_v1 = vmul.bf16 %v2906_v13, %v249_v39 }
  0x43   : > { %2727 = vmatprep.mubr.msk.bf16.mxu0 %vm790_vm0, %v3066_v27  ;;  %2791 = vmatprep.mubr.msk.bf16.mxu1 %vm790_vm0, %v3068_v28  ;;  %v386_v27 = vmul.bf16 %v2906_v13, %v246_v20  ;;  %v313_v28 = vld [vmem:[%s2899_s24 + $0x1fc] sm:$0xf]  ;;  %v452_v2 = vmul.bf16 %v2906_v13, %v312_v40  ;;  %v2289_v5 = vcombine.low %v418_v35, %v419_v47  ;;  %v218_v20 = vld [vmem:[%s2899_s24 + $0x80] sm:$0xf] }
  0x44   : > { %v3263_v50 = vcombine.low %v384_v18, %v385_v23  ;;  %v2305_v21 = vcombine.low %v450_v52, %v451_v56  ;;  %v453_v16 = vmul.bf16 %v2906_v13, %v313_v28  ;;  %v219_v18 = vld [vmem:[%s2899_s24 + $0x84] sm:$0xf]  ;;  %v2274_v32 = vcombine.low %v388_v57, %v389_v1 }
  0x45   : > { %v2273_v63 = vcombine.low %v386_v27, %v387_v49  ;;  %v420_v17 = vmul.bf16 %v2906_v13, %v280_v6  ;;  %v421_v31 = vmul.bf16 %v2906_v13, %v281_v9  ;;  %v358_v35 = vmul.bf16 %v2906_v13, %v218_v20 }
  0x46   : > { %v2306_v34 = vcombine.low %v452_v2, %v453_v16  ;;  %v359_v47 = vmul.bf16 %v2906_v13, %v219_v18  ;;  %v422_v33 = vmul.bf16 %v2906_v13, %v282_v26  ;;  %v423_v23 = vmul.bf16 %v2906_v13, %v283_v11 }
  0x47   : > { %v2290_v36 = vcombine.low %v420_v17, %v421_v31 }
  0x48   : > { %v2259_v39 = vcombine.low %v358_v35, %v359_v47 }
  0x4a   : > { %2728 = vmatmul.mubr.msk.bf16.gmra.mxu0 %vm790_vm0, %v3070_v29  ;;  %2792 = vmatmul.mubr.msk.bf16.gmra.mxu1 %vm790_vm0, %v3087_v41  ;;  %v2258_v29 = vcombine.low %v356_v10, %v357_v30  ;;  %v2291_v41 = vcombine.low %v422_v33, %v423_v23 }
  0x4b   : > { %2731 = vmatprep.mubr.msk.bf16.mxu0 %vm790_vm0, %v2257_v3  ;;  %2795 = vmatprep.mubr.msk.bf16.mxu1 %vm790_vm0, %v2289_v5 }
  0x52   : > { %2732 = vmatmul.mubr.msk.bf16.gmra.mxu0 %vm790_vm0, %v2258_v29  ;;  %2796 = vmatmul.mubr.msk.bf16.gmra.mxu1 %vm790_vm0, %v2290_v36 }
  0x53   : > { %2735 = vmatprep.mubr.msk.bf16.mxu0 %vm790_vm0, %v2259_v39  ;;  %2799 = vmatprep.mubr.msk.bf16.mxu1 %vm790_vm0, %v2291_v41 }
  0x5a   : > { %2736 = vmatmul.mubr.msk.bf16.gmra.mxu0 %vm790_vm0, %v3096_v48  ;;  %2800 = vmatmul.mubr.msk.bf16.gmra.mxu1 %vm790_vm0, %v3106_v54 }
  0x5b   : > { %2739 = vmatprep.mubr.msk.bf16.mxu0 %vm790_vm0, %v3115_v60  ;;  %2803 = vmatprep.mubr.msk.bf16.mxu1 %vm790_vm0, %v3121_v0 }
  0x62   : > { %2740 = vmatmul.mubr.msk.bf16.gmra.mxu0 %vm790_vm0, %v3129_v7  ;;  %2804 = vmatmul.mubr.msk.bf16.gmra.mxu1 %vm790_vm0, %v3137_v24 }
  0x63   : > { %2743 = vmatprep.mubr.msk.bf16.mxu0 %vm790_vm0, %v3139_v25  ;;  %2807 = vmatprep.mubr.msk.bf16.mxu1 %vm790_vm0, %v3145_v37 }
  0x6a   : > { %2744 = vmatmul.mubr.msk.bf16.gmra.mxu0 %vm790_vm0, %v3152_v45  ;;  %2808 = vmatmul.mubr.msk.bf16.gmra.mxu1 %vm790_vm0, %v3159_v53 }
  0x6b   : > { %2747 = vmatprep.mubr.msk.bf16.mxu0 %vm790_vm0, %v3161_v55  ;;  %2811 = vmatprep.mubr.msk.bf16.mxu1 %vm790_vm0, %v3172_v61 }
  0x72   : > { %2748 = vmatmul.mubr.msk.bf16.gmra.mxu0 %vm790_vm0, %v3183_v12  ;;  %2812 = vmatmul.mubr.msk.bf16.gmra.mxu1 %vm790_vm0, %v3189_v8 }
  0x73   : > { %2751 = vmatprep.mubr.msk.bf16.mxu0 %vm790_vm0, %v3197_v19  ;;  %2815 = vmatprep.mubr.msk.bf16.mxu1 %vm790_vm0, %v3205_v42 }
  0x7a   : > { %2752 = vmatmul.mubr.msk.bf16.gmra.mxu0 %vm790_vm0, %v3207_v43  ;;  %2816 = vmatmul.mubr.msk.bf16.gmra.mxu1 %vm790_vm0, %v3213_v51 }
  0x7b   : > { %2755 = vmatprep.mubr.msk.bf16.mxu0 %vm790_vm0, %v3220_v38  ;;  %2819 = vmatprep.mubr.msk.bf16.mxu1 %vm790_vm0, %v3227_v14 }
  0x82   : > { %2756 = vmatmul.mubr.msk.bf16.gmra.mxu0 %vm790_vm0, %v3229_v4  ;;  %2820 = vmatmul.mubr.msk.bf16.gmra.mxu1 %vm790_vm0, %v3240_v15 }
  0x83   : > { %2759 = vmatprep.mubr.msk.bf16.mxu0 %vm790_vm0, %v3251_v22  ;;  %2823 = vmatprep.mubr.msk.bf16.mxu1 %vm790_vm0, %v3257_v44 }
  0x8a   : > { %2760 = vmatmul.mubr.msk.bf16.gmra.mxu0 %vm790_vm0, %v3263_v50  ;;  %2824 = vmatmul.mubr.msk.bf16.gmra.mxu1 %vm790_vm0, %v2304_v62 }
  0x8b   : > { %2763 = vmatprep.mubr.msk.bf16.mxu0 %vm790_vm0, %v2273_v63  ;;  %2827 = vmatprep.mubr.msk.bf16.mxu1 %vm790_vm0, %v2305_v21 }
  0x92   : > { %2764 = vmatmul.mubr.msk.bf16.gmra.mxu0 %vm790_vm0, %v2274_v32  ;;  %2828 = vmatmul.mubr.msk.bf16.gmra.mxu1 %vm790_vm0, %v2306_v34 }
  0xda   : > { %v2705_v13 = vpop.f32.mrf.mxu0  ;;  %v2769_v48 = vpop.f32.mrf.mxu1 }
  0xdb   : > { %v2507_v54 = vpack.c.bf16 %v2705_v13, %v2705_v13  ;;  %v2571_v60 = vpack.c.bf16 %v2769_v48, %v2769_v48 }
  0xdc   : > { %v1017_v0 = vpop.f32.mrf.mxu0  ;;  %v1273_v7 = vpop.f32.mrf.mxu1 }
  0xdd   : > { %2043 = vst.msk [vmem:[%s3369_s27 + $0x8] sm:$0xf] %vm2040_vm1, %v2507_v54  ;;  %2107 = vst.msk [vmem:[%s3369_s27 + $0x108] sm:$0xf] %vm2040_vm1, %v2571_v60  ;;  %v2505_v24 = vpack.c.bf16 %v1017_v0, %v1017_v0  ;;  %v2569_v25 = vpack.c.bf16 %v1273_v7, %v1273_v7 }
  0xde   : > { %v2706_v37 = vpop.f32.mrf.mxu0  ;;  %v2770_v45 = vpop.f32.mrf.mxu1 }
  0xdf   : > { %2041 = vst.msk [vmem:[%s3369_s27] sm:$0xf] %vm2040_vm1, %v2505_v24  ;;  %2105 = vst.msk [vmem:[%s3369_s27 + $0x100] sm:$0xf] %vm2040_vm1, %v2569_v25  ;;  %v2508_v53 = vpack.c.bf16 %v2706_v37, %v2706_v37  ;;  %v2572_v55 = vpack.c.bf16 %v2770_v45, %v2770_v45 }
  0xe0   : > { %v1020_v61 = vpop.f32.mrf.mxu0  ;;  %v1276_v12 = vpop.f32.mrf.mxu1 }
  0xe1   : > { %2044 = vst.msk [vmem:[%s3369_s27 + $0xc] sm:$0xf] %vm2040_vm1, %v2508_v53  ;;  %2108 = vst.msk [vmem:[%s3369_s27 + $0x10c] sm:$0xf] %vm2040_vm1, %v2572_v55  ;;  %v2506_v8 = vpack.c.bf16 %v1020_v61, %v1020_v61  ;;  %v2570_v19 = vpack.c.bf16 %v1276_v12, %v1276_v12 }
  0xe2   : > { %v2709_v42 = vpop.f32.mrf.mxu0  ;;  %v2773_v43 = vpop.f32.mrf.mxu1 }
  0xe3   : > { %2042 = vst.msk [vmem:[%s3369_s27 + $0x4] sm:$0xf] %vm2040_vm1, %v2506_v8  ;;  %2106 = vst.msk [vmem:[%s3369_s27 + $0x104] sm:$0xf] %vm2040_vm1, %v2570_v19  ;;  %v2511_v51 = vpack.c.bf16 %v2709_v42, %v2709_v42  ;;  %v2575_v38 = vpack.c.bf16 %v2773_v43, %v2773_v43 }
  0xe4   : > { %v1033_v14 = vpop.f32.mrf.mxu0  ;;  %v1289_v4 = vpop.f32.mrf.mxu1 }
  0xe5   : > { %2047 = vst.msk [vmem:[%s3369_s27 + $0x18] sm:$0xf] %vm2040_vm1, %v2511_v51  ;;  %2111 = vst.msk [vmem:[%s3369_s27 + $0x118] sm:$0xf] %vm2040_vm1, %v2575_v38  ;;  %v2509_v15 = vpack.c.bf16 %v1033_v14, %v1033_v14  ;;  %v2573_v22 = vpack.c.bf16 %v1289_v4, %v1289_v4 }
  0xe6   : > { %v2710_v40 = vpop.f32.mrf.mxu0  ;;  %v2774_v44 = vpop.f32.mrf.mxu1 }
  0xe7   : > { %2045 = vst.msk [vmem:[%s3369_s27 + $0x10] sm:$0xf] %vm2040_vm1, %v2509_v15  ;;  %2109 = vst.msk [vmem:[%s3369_s27 + $0x110] sm:$0xf] %vm2040_vm1, %v2573_v22  ;;  %v2512_v46 = vpack.c.bf16 %v2710_v40, %v2710_v40  ;;  %v2576_v27 = vpack.c.bf16 %v2774_v44, %v2774_v44 }
  0xe8   : > { %v1036_v49 = vpop.f32.mrf.mxu0  ;;  %v1292_v28 = vpop.f32.mrf.mxu1 }
  0xe9   : > { %2048 = vst.msk [vmem:[%s3369_s27 + $0x1c] sm:$0xf] %vm2040_vm1, %v2512_v46  ;;  %2112 = vst.msk [vmem:[%s3369_s27 + $0x11c] sm:$0xf] %vm2040_vm1, %v2576_v27  ;;  %v2510_v50 = vpack.c.bf16 %v1036_v49, %v1036_v49  ;;  %v2574_v52 = vpack.c.bf16 %v1292_v28, %v1292_v28 }
  0xea   : > { %v2713_v56 = vpop.f32.mrf.mxu0  ;;  %v2777_v57 = vpop.f32.mrf.mxu1 }
  0xeb   : > { %2046 = vst.msk [vmem:[%s3369_s27 + $0x14] sm:$0xf] %vm2040_vm1, %v2510_v50  ;;  %2110 = vst.msk [vmem:[%s3369_s27 + $0x114] sm:$0xf] %vm2040_vm1, %v2574_v52  ;;  %v2515_v58 = vpack.c.bf16 %v2713_v56, %v2713_v56  ;;  %v2579_v59 = vpack.c.bf16 %v2777_v57, %v2777_v57 }
  0xec   : > { %v1049_v62 = vpop.f32.mrf.mxu0  ;;  %v1305_v63 = vpop.f32.mrf.mxu1 }
  0xed   : > { %2051 = vst.msk [vmem:[%s3369_s27 + $0x28] sm:$0xf] %vm2040_vm1, %v2515_v58  ;;  %2115 = vst.msk [vmem:[%s3369_s27 + $0x128] sm:$0xf] %vm2040_vm1, %v2579_v59  ;;  %v2513_v1 = vpack.c.bf16 %v1049_v62, %v1049_v62  ;;  %v2577_v2 = vpack.c.bf16 %v1305_v63, %v1305_v63 }
  0xee   : > { %v2714_v3 = vpop.f32.mrf.mxu0  ;;  %v2778_v5 = vpop.f32.mrf.mxu1 }
  0xef   : > { %2049 = vst.msk [vmem:[%s3369_s27 + $0x20] sm:$0xf] %vm2040_vm1, %v2513_v1  ;;  %2113 = vst.msk [vmem:[%s3369_s27 + $0x120] sm:$0xf] %vm2040_vm1, %v2577_v2  ;;  %v2516_v6 = vpack.c.bf16 %v2714_v3, %v2714_v3  ;;  %v2580_v9 = vpack.c.bf16 %v2778_v5, %v2778_v5 }
  0xf0   : > { %v1052_v20 = vpop.f32.mrf.mxu0  ;;  %v1308_v21 = vpop.f32.mrf.mxu1 }
  0xf1   : > { %2052 = vst.msk [vmem:[%s3369_s27 + $0x2c] sm:$0xf] %vm2040_vm1, %v2516_v6  ;;  %2116 = vst.msk [vmem:[%s3369_s27 + $0x12c] sm:$0xf] %vm2040_vm1, %v2580_v9  ;;  %v2514_v16 = vpack.c.bf16 %v1052_v20, %v1052_v20  ;;  %v2578_v18 = vpack.c.bf16 %v1308_v21, %v1308_v21 }
  0xf2   : > { %v2717_v26 = vpop.f32.mrf.mxu0  ;;  %v2781_v11 = vpop.f32.mrf.mxu1 }
  0xf3   : > { %2050 = vst.msk [vmem:[%s3369_s27 + $0x24] sm:$0xf] %vm2040_vm1, %v2514_v16  ;;  %2114 = vst.msk [vmem:[%s3369_s27 + $0x124] sm:$0xf] %vm2040_vm1, %v2578_v18  ;;  %v2519_v32 = vpack.c.bf16 %v2717_v26, %v2717_v26  ;;  %v2583_v10 = vpack.c.bf16 %v2781_v11, %v2781_v11 }
  0xf4   : > { %v1065_v30 = vpop.f32.mrf.mxu0  ;;  %v1321_v34 = vpop.f32.mrf.mxu1 }
  0xf5   : > { %2055 = vst.msk [vmem:[%s3369_s27 + $0x38] sm:$0xf] %vm2040_vm1, %v2519_v32  ;;  %2119 = vst.msk [vmem:[%s3369_s27 + $0x138] sm:$0xf] %vm2040_vm1, %v2583_v10  ;;  %v2517_v17 = vpack.c.bf16 %v1065_v30, %v1065_v30  ;;  %v2581_v31 = vpack.c.bf16 %v1321_v34, %v1321_v34 }
  0xf6   : > { %v2718_v35 = vpop.f32.mrf.mxu0  ;;  %v2782_v47 = vpop.f32.mrf.mxu1 }
  0xf7   : > { %2053 = vst.msk [vmem:[%s3369_s27 + $0x30] sm:$0xf] %vm2040_vm1, %v2517_v17  ;;  %2117 = vst.msk [vmem:[%s3369_s27 + $0x130] sm:$0xf] %vm2040_vm1, %v2581_v31  ;;  %v2520_v33 = vpack.c.bf16 %v2718_v35, %v2718_v35  ;;  %v2584_v23 = vpack.c.bf16 %v2782_v47, %v2782_v47 }
  0xf8   : > { %v1068_v29 = vpop.f32.mrf.mxu0  ;;  %v1324_v36 = vpop.f32.mrf.mxu1 }
  0xf9   : > { %2056 = vst.msk [vmem:[%s3369_s27 + $0x3c] sm:$0xf] %vm2040_vm1, %v2520_v33  ;;  %2120 = vst.msk [vmem:[%s3369_s27 + $0x13c] sm:$0xf] %vm2040_vm1, %v2584_v23  ;;  %v2518_v39 = vpack.c.bf16 %v1068_v29, %v1068_v29  ;;  %v2582_v41 = vpack.c.bf16 %v1324_v36, %v1324_v36 }
  0xfa   : > { %v2721_v13 = vpop.f32.mrf.mxu0  ;;  %v2785_v48 = vpop.f32.mrf.mxu1 }
  0xfb   : > { %2054 = vst.msk [vmem:[%s3369_s27 + $0x34] sm:$0xf] %vm2040_vm1, %v2518_v39  ;;  %2118 = vst.msk [vmem:[%s3369_s27 + $0x134] sm:$0xf] %vm2040_vm1, %v2582_v41  ;;  %v2523_v54 = vpack.c.bf16 %v2721_v13, %v2721_v13  ;;  %v2587_v60 = vpack.c.bf16 %v2785_v48, %v2785_v48 }
  0xfc   : > { %v1081_v0 = vpop.f32.mrf.mxu0  ;;  %v1337_v7 = vpop.f32.mrf.mxu1 }
  0xfd   : > { %2059 = vst.msk [vmem:[%s3369_s27 + $0x48] sm:$0xf] %vm2040_vm1, %v2523_v54  ;;  %2123 = vst.msk [vmem:[%s3369_s27 + $0x148] sm:$0xf] %vm2040_vm1, %v2587_v60  ;;  %v2521_v24 = vpack.c.bf16 %v1081_v0, %v1081_v0  ;;  %v2585_v25 = vpack.c.bf16 %v1337_v7, %v1337_v7 }
  0xfe   : > { %v2722_v37 = vpop.f32.mrf.mxu0  ;;  %v2786_v45 = vpop.f32.mrf.mxu1 }
  0xff   : > { %2057 = vst.msk [vmem:[%s3369_s27 + $0x40] sm:$0xf] %vm2040_vm1, %v2521_v24  ;;  %2121 = vst.msk [vmem:[%s3369_s27 + $0x140] sm:$0xf] %vm2040_vm1, %v2585_v25  ;;  %v2524_v53 = vpack.c.bf16 %v2722_v37, %v2722_v37  ;;  %v2588_v55 = vpack.c.bf16 %v2786_v45, %v2786_v45 }
 0x100   : > { %v1084_v61 = vpop.f32.mrf.mxu0  ;;  %v1340_v12 = vpop.f32.mrf.mxu1 }
 0x101   : > { %2060 = vst.msk [vmem:[%s3369_s27 + $0x4c] sm:$0xf] %vm2040_vm1, %v2524_v53  ;;  %2124 = vst.msk [vmem:[%s3369_s27 + $0x14c] sm:$0xf] %vm2040_vm1, %v2588_v55  ;;  %v2522_v8 = vpack.c.bf16 %v1084_v61, %v1084_v61  ;;  %v2586_v19 = vpack.c.bf16 %v1340_v12, %v1340_v12 }
 0x102   : > { %v2725_v42 = vpop.f32.mrf.mxu0  ;;  %v2789_v43 = vpop.f32.mrf.mxu1 }
 0x103   : > { %2058 = vst.msk [vmem:[%s3369_s27 + $0x44] sm:$0xf] %vm2040_vm1, %v2522_v8  ;;  %2122 = vst.msk [vmem:[%s3369_s27 + $0x144] sm:$0xf] %vm2040_vm1, %v2586_v19  ;;  %v2527_v51 = vpack.c.bf16 %v2725_v42, %v2725_v42  ;;  %v2591_v38 = vpack.c.bf16 %v2789_v43, %v2789_v43 }
 0x104   : > { %v1097_v14 = vpop.f32.mrf.mxu0  ;;  %v1353_v4 = vpop.f32.mrf.mxu1 }
 0x105   : > { %2063 = vst.msk [vmem:[%s3369_s27 + $0x58] sm:$0xf] %vm2040_vm1, %v2527_v51  ;;  %2127 = vst.msk [vmem:[%s3369_s27 + $0x158] sm:$0xf] %vm2040_vm1, %v2591_v38  ;;  %v2525_v15 = vpack.c.bf16 %v1097_v14, %v1097_v14  ;;  %v2589_v22 = vpack.c.bf16 %v1353_v4, %v1353_v4 }
 0x106   : > { %v2726_v40 = vpop.f32.mrf.mxu0  ;;  %v2790_v44 = vpop.f32.mrf.mxu1 }
 0x107   : > { %2061 = vst.msk [vmem:[%s3369_s27 + $0x50] sm:$0xf] %vm2040_vm1, %v2525_v15  ;;  %2125 = vst.msk [vmem:[%s3369_s27 + $0x150] sm:$0xf] %vm2040_vm1, %v2589_v22  ;;  %v2528_v46 = vpack.c.bf16 %v2726_v40, %v2726_v40  ;;  %v2592_v27 = vpack.c.bf16 %v2790_v44, %v2790_v44 }
 0x108   : > { %v1100_v49 = vpop.f32.mrf.mxu0  ;;  %v1356_v28 = vpop.f32.mrf.mxu1 }
 0x109   : > { %2064 = vst.msk [vmem:[%s3369_s27 + $0x5c] sm:$0xf] %vm2040_vm1, %v2528_v46  ;;  %2128 = vst.msk [vmem:[%s3369_s27 + $0x15c] sm:$0xf] %vm2040_vm1, %v2592_v27  ;;  %v2526_v50 = vpack.c.bf16 %v1100_v49, %v1100_v49  ;;  %v2590_v52 = vpack.c.bf16 %v1356_v28, %v1356_v28 }
 0x10a   : > { %v2729_v56 = vpop.f32.mrf.mxu0  ;;  %v2793_v57 = vpop.f32.mrf.mxu1 }
 0x10b   : > { %2062 = vst.msk [vmem:[%s3369_s27 + $0x54] sm:$0xf] %vm2040_vm1, %v2526_v50  ;;  %2126 = vst.msk [vmem:[%s3369_s27 + $0x154] sm:$0xf] %vm2040_vm1, %v2590_v52  ;;  %v2531_v58 = vpack.c.bf16 %v2729_v56, %v2729_v56  ;;  %v2595_v59 = vpack.c.bf16 %v2793_v57, %v2793_v57 }
 0x10c   : > { %v1113_v62 = vpop.f32.mrf.mxu0  ;;  %v1369_v63 = vpop.f32.mrf.mxu1 }
 0x10d   : > { %2067 = vst.msk [vmem:[%s3369_s27 + $0x68] sm:$0xf] %vm2040_vm1, %v2531_v58  ;;  %2131 = vst.msk [vmem:[%s3369_s27 + $0x168] sm:$0xf] %vm2040_vm1, %v2595_v59  ;;  %v2529_v1 = vpack.c.bf16 %v1113_v62, %v1113_v62  ;;  %v2593_v2 = vpack.c.bf16 %v1369_v63, %v1369_v63 }
 0x10e   : > { %v2730_v3 = vpop.f32.mrf.mxu0  ;;  %v2794_v5 = vpop.f32.mrf.mxu1 }
 0x10f   : > { %2065 = vst.msk [vmem:[%s3369_s27 + $0x60] sm:$0xf] %vm2040_vm1, %v2529_v1  ;;  %2129 = vst.msk [vmem:[%s3369_s27 + $0x160] sm:$0xf] %vm2040_vm1, %v2593_v2  ;;  %v2532_v6 = vpack.c.bf16 %v2730_v3, %v2730_v3  ;;  %v2596_v9 = vpack.c.bf16 %v2794_v5, %v2794_v5 }
 0x110   : > { %v1116_v20 = vpop.f32.mrf.mxu0  ;;  %v1372_v21 = vpop.f32.mrf.mxu1 }
 0x111   : > { %2068 = vst.msk [vmem:[%s3369_s27 + $0x6c] sm:$0xf] %vm2040_vm1, %v2532_v6  ;;  %2132 = vst.msk [vmem:[%s3369_s27 + $0x16c] sm:$0xf] %vm2040_vm1, %v2596_v9  ;;  %v2530_v16 = vpack.c.bf16 %v1116_v20, %v1116_v20  ;;  %v2594_v18 = vpack.c.bf16 %v1372_v21, %v1372_v21 }
 0x112   : > { %v2733_v26 = vpop.f32.mrf.mxu0  ;;  %v2797_v11 = vpop.f32.mrf.mxu1 }
 0x113   : > { %2066 = vst.msk [vmem:[%s3369_s27 + $0x64] sm:$0xf] %vm2040_vm1, %v2530_v16  ;;  %2130 = vst.msk [vmem:[%s3369_s27 + $0x164] sm:$0xf] %vm2040_vm1, %v2594_v18  ;;  %v2535_v32 = vpack.c.bf16 %v2733_v26, %v2733_v26  ;;  %v2599_v10 = vpack.c.bf16 %v2797_v11, %v2797_v11 }
 0x114   : > { %v1129_v30 = vpop.f32.mrf.mxu0  ;;  %v1385_v34 = vpop.f32.mrf.mxu1 }
 0x115   : > { %2071 = vst.msk [vmem:[%s3369_s27 + $0x78] sm:$0xf] %vm2040_vm1, %v2535_v32  ;;  %2135 = vst.msk [vmem:[%s3369_s27 + $0x178] sm:$0xf] %vm2040_vm1, %v2599_v10  ;;  %v2533_v17 = vpack.c.bf16 %v1129_v30, %v1129_v30  ;;  %v2597_v31 = vpack.c.bf16 %v1385_v34, %v1385_v34 }
 0x116   : > { %v2734_v35 = vpop.f32.mrf.mxu0  ;;  %v2798_v47 = vpop.f32.mrf.mxu1 }
 0x117   : > { %2069 = vst.msk [vmem:[%s3369_s27 + $0x70] sm:$0xf] %vm2040_vm1, %v2533_v17  ;;  %2133 = vst.msk [vmem:[%s3369_s27 + $0x170] sm:$0xf] %vm2040_vm1, %v2597_v31  ;;  %v2536_v33 = vpack.c.bf16 %v2734_v35, %v2734_v35  ;;  %v2600_v23 = vpack.c.bf16 %v2798_v47, %v2798_v47 }
 0x118   : > { %v1132_v29 = vpop.f32.mrf.mxu0  ;;  %v1388_v36 = vpop.f32.mrf.mxu1 }
 0x119   : > { %2072 = vst.msk [vmem:[%s3369_s27 + $0x7c] sm:$0xf] %vm2040_vm1, %v2536_v33  ;;  %2136 = vst.msk [vmem:[%s3369_s27 + $0x17c] sm:$0xf] %vm2040_vm1, %v2600_v23  ;;  %v2534_v39 = vpack.c.bf16 %v1132_v29, %v1132_v29  ;;  %v2598_v41 = vpack.c.bf16 %v1388_v36, %v1388_v36 }
 0x11a   : > { %v2737_v13 = vpop.f32.mrf.mxu0  ;;  %v2801_v48 = vpop.f32.mrf.mxu1 }
 0x11b   : > { %2070 = vst.msk [vmem:[%s3369_s27 + $0x74] sm:$0xf] %vm2040_vm1, %v2534_v39  ;;  %2134 = vst.msk [vmem:[%s3369_s27 + $0x174] sm:$0xf] %vm2040_vm1, %v2598_v41  ;;  %v2539_v54 = vpack.c.bf16 %v2737_v13, %v2737_v13  ;;  %v2603_v60 = vpack.c.bf16 %v2801_v48, %v2801_v48 }
 0x11c   : > { %v1145_v0 = vpop.f32.mrf.mxu0  ;;  %v1401_v7 = vpop.f32.mrf.mxu1 }
 0x11d   : > { %2075 = vst.msk [vmem:[%s3369_s27 + $0x88] sm:$0xf] %vm2040_vm1, %v2539_v54  ;;  %2139 = vst.msk [vmem:[%s3369_s27 + $0x188] sm:$0xf] %vm2040_vm1, %v2603_v60  ;;  %v2537_v24 = vpack.c.bf16 %v1145_v0, %v1145_v0  ;;  %v2601_v25 = vpack.c.bf16 %v1401_v7, %v1401_v7 }
 0x11e   : > { %v2738_v37 = vpop.f32.mrf.mxu0  ;;  %v2802_v45 = vpop.f32.mrf.mxu1 }
 0x11f   : > { %2073 = vst.msk [vmem:[%s3369_s27 + $0x80] sm:$0xf] %vm2040_vm1, %v2537_v24  ;;  %2137 = vst.msk [vmem:[%s3369_s27 + $0x180] sm:$0xf] %vm2040_vm1, %v2601_v25  ;;  %v2540_v53 = vpack.c.bf16 %v2738_v37, %v2738_v37  ;;  %v2604_v55 = vpack.c.bf16 %v2802_v45, %v2802_v45 }
 0x120   : > { %v1148_v61 = vpop.f32.mrf.mxu0  ;;  %v1404_v12 = vpop.f32.mrf.mxu1 }
 0x121   : > { %2076 = vst.msk [vmem:[%s3369_s27 + $0x8c] sm:$0xf] %vm2040_vm1, %v2540_v53  ;;  %2140 = vst.msk [vmem:[%s3369_s27 + $0x18c] sm:$0xf] %vm2040_vm1, %v2604_v55  ;;  %v2538_v8 = vpack.c.bf16 %v1148_v61, %v1148_v61  ;;  %v2602_v19 = vpack.c.bf16 %v1404_v12, %v1404_v12 }
 0x122   : > { %v2741_v42 = vpop.f32.mrf.mxu0  ;;  %v2805_v43 = vpop.f32.mrf.mxu1 }
 0x123   : > { %2074 = vst.msk [vmem:[%s3369_s27 + $0x84] sm:$0xf] %vm2040_vm1, %v2538_v8  ;;  %2138 = vst.msk [vmem:[%s3369_s27 + $0x184] sm:$0xf] %vm2040_vm1, %v2602_v19  ;;  %v2543_v51 = vpack.c.bf16 %v2741_v42, %v2741_v42  ;;  %v2607_v38 = vpack.c.bf16 %v2805_v43, %v2805_v43 }
 0x124   : > { %v1161_v14 = vpop.f32.mrf.mxu0  ;;  %v1417_v4 = vpop.f32.mrf.mxu1 }
 0x125   : > { %2079 = vst.msk [vmem:[%s3369_s27 + $0x98] sm:$0xf] %vm2040_vm1, %v2543_v51  ;;  %2143 = vst.msk [vmem:[%s3369_s27 + $0x198] sm:$0xf] %vm2040_vm1, %v2607_v38  ;;  %v2541_v15 = vpack.c.bf16 %v1161_v14, %v1161_v14  ;;  %v2605_v22 = vpack.c.bf16 %v1417_v4, %v1417_v4 }
 0x126   : > { %v2742_v40 = vpop.f32.mrf.mxu0  ;;  %v2806_v44 = vpop.f32.mrf.mxu1 }
 0x127   : > { %2077 = vst.msk [vmem:[%s3369_s27 + $0x90] sm:$0xf] %vm2040_vm1, %v2541_v15  ;;  %2141 = vst.msk [vmem:[%s3369_s27 + $0x190] sm:$0xf] %vm2040_vm1, %v2605_v22  ;;  %v2544_v46 = vpack.c.bf16 %v2742_v40, %v2742_v40  ;;  %v2608_v27 = vpack.c.bf16 %v2806_v44, %v2806_v44 }
 0x128   : > { %v1164_v49 = vpop.f32.mrf.mxu0  ;;  %v1420_v28 = vpop.f32.mrf.mxu1 }
 0x129   : > { %2080 = vst.msk [vmem:[%s3369_s27 + $0x9c] sm:$0xf] %vm2040_vm1, %v2544_v46  ;;  %2144 = vst.msk [vmem:[%s3369_s27 + $0x19c] sm:$0xf] %vm2040_vm1, %v2608_v27  ;;  %v2542_v50 = vpack.c.bf16 %v1164_v49, %v1164_v49  ;;  %v2606_v52 = vpack.c.bf16 %v1420_v28, %v1420_v28 }
 0x12a   : > { %v2745_v56 = vpop.f32.mrf.mxu0  ;;  %v2809_v57 = vpop.f32.mrf.mxu1 }
 0x12b   : > { %2078 = vst.msk [vmem:[%s3369_s27 + $0x94] sm:$0xf] %vm2040_vm1, %v2542_v50  ;;  %2142 = vst.msk [vmem:[%s3369_s27 + $0x194] sm:$0xf] %vm2040_vm1, %v2606_v52  ;;  %v2547_v58 = vpack.c.bf16 %v2745_v56, %v2745_v56  ;;  %v2611_v59 = vpack.c.bf16 %v2809_v57, %v2809_v57 }
 0x12c   : > { %v1177_v62 = vpop.f32.mrf.mxu0  ;;  %v1433_v63 = vpop.f32.mrf.mxu1 }
 0x12d   : > { %2083 = vst.msk [vmem:[%s3369_s27 + $0xa8] sm:$0xf] %vm2040_vm1, %v2547_v58  ;;  %2147 = vst.msk [vmem:[%s3369_s27 + $0x1a8] sm:$0xf] %vm2040_vm1, %v2611_v59  ;;  %v2545_v1 = vpack.c.bf16 %v1177_v62, %v1177_v62  ;;  %v2609_v2 = vpack.c.bf16 %v1433_v63, %v1433_v63 }
 0x12e   : > { %v2746_v3 = vpop.f32.mrf.mxu0  ;;  %v2810_v5 = vpop.f32.mrf.mxu1 }
 0x12f   : > { %2081 = vst.msk [vmem:[%s3369_s27 + $0xa0] sm:$0xf] %vm2040_vm1, %v2545_v1  ;;  %2145 = vst.msk [vmem:[%s3369_s27 + $0x1a0] sm:$0xf] %vm2040_vm1, %v2609_v2  ;;  %v2548_v6 = vpack.c.bf16 %v2746_v3, %v2746_v3  ;;  %v2612_v9 = vpack.c.bf16 %v2810_v5, %v2810_v5 }
 0x130   : > { %v1180_v20 = vpop.f32.mrf.mxu0  ;;  %v1436_v21 = vpop.f32.mrf.mxu1 }
 0x131   : > { %2084 = vst.msk [vmem:[%s3369_s27 + $0xac] sm:$0xf] %vm2040_vm1, %v2548_v6  ;;  %2148 = vst.msk [vmem:[%s3369_s27 + $0x1ac] sm:$0xf] %vm2040_vm1, %v2612_v9  ;;  %v2546_v16 = vpack.c.bf16 %v1180_v20, %v1180_v20  ;;  %v2610_v18 = vpack.c.bf16 %v1436_v21, %v1436_v21 }
 0x132   : > { %v2749_v26 = vpop.f32.mrf.mxu0  ;;  %v2813_v11 = vpop.f32.mrf.mxu1 }
 0x133   : > { %2082 = vst.msk [vmem:[%s3369_s27 + $0xa4] sm:$0xf] %vm2040_vm1, %v2546_v16  ;;  %2146 = vst.msk [vmem:[%s3369_s27 + $0x1a4] sm:$0xf] %vm2040_vm1, %v2610_v18  ;;  %v2551_v32 = vpack.c.bf16 %v2749_v26, %v2749_v26  ;;  %v2615_v10 = vpack.c.bf16 %v2813_v11, %v2813_v11 }
 0x134   : > { %v1193_v30 = vpop.f32.mrf.mxu0  ;;  %v1449_v34 = vpop.f32.mrf.mxu1 }
 0x135   : > { %2087 = vst.msk [vmem:[%s3369_s27 + $0xb8] sm:$0xf] %vm2040_vm1, %v2551_v32  ;;  %2151 = vst.msk [vmem:[%s3369_s27 + $0x1b8] sm:$0xf] %vm2040_vm1, %v2615_v10  ;;  %v2549_v17 = vpack.c.bf16 %v1193_v30, %v1193_v30  ;;  %v2613_v31 = vpack.c.bf16 %v1449_v34, %v1449_v34 }
 0x136   : > { %v2750_v35 = vpop.f32.mrf.mxu0  ;;  %v2814_v47 = vpop.f32.mrf.mxu1 }
 0x137   : > { %2085 = vst.msk [vmem:[%s3369_s27 + $0xb0] sm:$0xf] %vm2040_vm1, %v2549_v17  ;;  %2149 = vst.msk [vmem:[%s3369_s27 + $0x1b0] sm:$0xf] %vm2040_vm1, %v2613_v31  ;;  %v2552_v33 = vpack.c.bf16 %v2750_v35, %v2750_v35  ;;  %v2616_v23 = vpack.c.bf16 %v2814_v47, %v2814_v47 }
 0x138   : > { %v1196_v29 = vpop.f32.mrf.mxu0  ;;  %v1452_v36 = vpop.f32.mrf.mxu1 }
 0x139   : > { %2088 = vst.msk [vmem:[%s3369_s27 + $0xbc] sm:$0xf] %vm2040_vm1, %v2552_v33  ;;  %2152 = vst.msk [vmem:[%s3369_s27 + $0x1bc] sm:$0xf] %vm2040_vm1, %v2616_v23  ;;  %v2550_v39 = vpack.c.bf16 %v1196_v29, %v1196_v29  ;;  %v2614_v41 = vpack.c.bf16 %v1452_v36, %v1452_v36 }
 0x13a   : > { %v2753_v13 = vpop.f32.mrf.mxu0  ;;  %v2817_v48 = vpop.f32.mrf.mxu1 }
 0x13b   : > { %2086 = vst.msk [vmem:[%s3369_s27 + $0xb4] sm:$0xf] %vm2040_vm1, %v2550_v39  ;;  %2150 = vst.msk [vmem:[%s3369_s27 + $0x1b4] sm:$0xf] %vm2040_vm1, %v2614_v41  ;;  %v2555_v54 = vpack.c.bf16 %v2753_v13, %v2753_v13  ;;  %v2619_v60 = vpack.c.bf16 %v2817_v48, %v2817_v48 }
 0x13c   : > { %v1209_v0 = vpop.f32.mrf.mxu0  ;;  %v1465_v7 = vpop.f32.mrf.mxu1 }
 0x13d   : > { %2091 = vst.msk [vmem:[%s3369_s27 + $0xc8] sm:$0xf] %vm2040_vm1, %v2555_v54  ;;  %2155 = vst.msk [vmem:[%s3369_s27 + $0x1c8] sm:$0xf] %vm2040_vm1, %v2619_v60  ;;  %v2553_v24 = vpack.c.bf16 %v1209_v0, %v1209_v0  ;;  %v2617_v25 = vpack.c.bf16 %v1465_v7, %v1465_v7 }
 0x13e   : > { %v2754_v37 = vpop.f32.mrf.mxu0  ;;  %v2818_v45 = vpop.f32.mrf.mxu1 }
 0x13f   : > { %2089 = vst.msk [vmem:[%s3369_s27 + $0xc0] sm:$0xf] %vm2040_vm1, %v2553_v24  ;;  %2153 = vst.msk [vmem:[%s3369_s27 + $0x1c0] sm:$0xf] %vm2040_vm1, %v2617_v25  ;;  %v2556_v53 = vpack.c.bf16 %v2754_v37, %v2754_v37  ;;  %v2620_v55 = vpack.c.bf16 %v2818_v45, %v2818_v45 }
 0x140   : > { %v1212_v61 = vpop.f32.mrf.mxu0  ;;  %v1468_v12 = vpop.f32.mrf.mxu1 }
 0x141   : > { %2092 = vst.msk [vmem:[%s3369_s27 + $0xcc] sm:$0xf] %vm2040_vm1, %v2556_v53  ;;  %2156 = vst.msk [vmem:[%s3369_s27 + $0x1cc] sm:$0xf] %vm2040_vm1, %v2620_v55  ;;  %v2554_v8 = vpack.c.bf16 %v1212_v61, %v1212_v61  ;;  %v2618_v19 = vpack.c.bf16 %v1468_v12, %v1468_v12 }
 0x142   : > { %v2757_v42 = vpop.f32.mrf.mxu0  ;;  %v2821_v43 = vpop.f32.mrf.mxu1 }
 0x143   : > { %2090 = vst.msk [vmem:[%s3369_s27 + $0xc4] sm:$0xf] %vm2040_vm1, %v2554_v8  ;;  %2154 = vst.msk [vmem:[%s3369_s27 + $0x1c4] sm:$0xf] %vm2040_vm1, %v2618_v19  ;;  %v2559_v51 = vpack.c.bf16 %v2757_v42, %v2757_v42  ;;  %v2623_v38 = vpack.c.bf16 %v2821_v43, %v2821_v43 }
 0x144   : > { %v1225_v14 = vpop.f32.mrf.mxu0  ;;  %v1481_v4 = vpop.f32.mrf.mxu1 }
 0x145   : > { %2095 = vst.msk [vmem:[%s3369_s27 + $0xd8] sm:$0xf] %vm2040_vm1, %v2559_v51  ;;  %2159 = vst.msk [vmem:[%s3369_s27 + $0x1d8] sm:$0xf] %vm2040_vm1, %v2623_v38  ;;  %v2557_v15 = vpack.c.bf16 %v1225_v14, %v1225_v14  ;;  %v2621_v22 = vpack.c.bf16 %v1481_v4, %v1481_v4 }
 0x146   : > { %v2758_v40 = vpop.f32.mrf.mxu0  ;;  %v2822_v44 = vpop.f32.mrf.mxu1 }
 0x147   : > { %2093 = vst.msk [vmem:[%s3369_s27 + $0xd0] sm:$0xf] %vm2040_vm1, %v2557_v15  ;;  %2157 = vst.msk [vmem:[%s3369_s27 + $0x1d0] sm:$0xf] %vm2040_vm1, %v2621_v22  ;;  %v2560_v46 = vpack.c.bf16 %v2758_v40, %v2758_v40  ;;  %v2624_v27 = vpack.c.bf16 %v2822_v44, %v2822_v44 }
 0x148   : > { %v1228_v49 = vpop.f32.mrf.mxu0  ;;  %v1484_v28 = vpop.f32.mrf.mxu1 }
 0x149   : > { %2096 = vst.msk [vmem:[%s3369_s27 + $0xdc] sm:$0xf] %vm2040_vm1, %v2560_v46  ;;  %2160 = vst.msk [vmem:[%s3369_s27 + $0x1dc] sm:$0xf] %vm2040_vm1, %v2624_v27  ;;  %v2558_v50 = vpack.c.bf16 %v1228_v49, %v1228_v49  ;;  %v2622_v52 = vpack.c.bf16 %v1484_v28, %v1484_v28 }
 0x14a   : > { %v2761_v56 = vpop.f32.mrf.mxu0  ;;  %v2825_v57 = vpop.f32.mrf.mxu1 }
 0x14b   : > { %2094 = vst.msk [vmem:[%s3369_s27 + $0xd4] sm:$0xf] %vm2040_vm1, %v2558_v50  ;;  %2158 = vst.msk [vmem:[%s3369_s27 + $0x1d4] sm:$0xf] %vm2040_vm1, %v2622_v52  ;;  %v2563_v58 = vpack.c.bf16 %v2761_v56, %v2761_v56  ;;  %v2627_v59 = vpack.c.bf16 %v2825_v57, %v2825_v57 }
 0x14c   : > { %v1241_v62 = vpop.f32.mrf.mxu0  ;;  %v1497_v63 = vpop.f32.mrf.mxu1 }
 0x14d   : > { %2099 = vst.msk [vmem:[%s3369_s27 + $0xe8] sm:$0xf] %vm2040_vm1, %v2563_v58  ;;  %2163 = vst.msk [vmem:[%s3369_s27 + $0x1e8] sm:$0xf] %vm2040_vm1, %v2627_v59  ;;  %v2561_v1 = vpack.c.bf16 %v1241_v62, %v1241_v62  ;;  %v2625_v2 = vpack.c.bf16 %v1497_v63, %v1497_v63 }
 0x14e   : > { %v2762_v3 = vpop.f32.mrf.mxu0  ;;  %v2826_v5 = vpop.f32.mrf.mxu1 }
 0x14f   : > { %2097 = vst.msk [vmem:[%s3369_s27 + $0xe0] sm:$0xf] %vm2040_vm1, %v2561_v1  ;;  %2161 = vst.msk [vmem:[%s3369_s27 + $0x1e0] sm:$0xf] %vm2040_vm1, %v2625_v2  ;;  %v2564_v6 = vpack.c.bf16 %v2762_v3, %v2762_v3  ;;  %v2628_v9 = vpack.c.bf16 %v2826_v5, %v2826_v5 }
 0x150   : > { %v1244_v20 = vpop.f32.mrf.mxu0  ;;  %v1500_v21 = vpop.f32.mrf.mxu1 }
 0x151   : > { %2100 = vst.msk [vmem:[%s3369_s27 + $0xec] sm:$0xf] %vm2040_vm1, %v2564_v6  ;;  %2164 = vst.msk [vmem:[%s3369_s27 + $0x1ec] sm:$0xf] %vm2040_vm1, %v2628_v9  ;;  %v2562_v16 = vpack.c.bf16 %v1244_v20, %v1244_v20  ;;  %v2626_v18 = vpack.c.bf16 %v1500_v21, %v1500_v21 }
 0x152   : > { %v2765_v26 = vpop.f32.mrf.mxu0  ;;  %v2829_v11 = vpop.f32.mrf.mxu1 }
 0x153   : > { %2098 = vst.msk [vmem:[%s3369_s27 + $0xe4] sm:$0xf] %vm2040_vm1, %v2562_v16  ;;  %2162 = vst.msk [vmem:[%s3369_s27 + $0x1e4] sm:$0xf] %vm2040_vm1, %v2626_v18  ;;  %v2567_v32 = vpack.c.bf16 %v2765_v26, %v2765_v26  ;;  %v2631_v10 = vpack.c.bf16 %v2829_v11, %v2829_v11 }
 0x154   : > { %v1257_v30 = vpop.f32.mrf.mxu0  ;;  %v1513_v34 = vpop.f32.mrf.mxu1 }
 0x155   : > { %2103 = vst.msk [vmem:[%s3369_s27 + $0xf8] sm:$0xf] %vm2040_vm1, %v2567_v32  ;;  %2167 = vst.msk [vmem:[%s3369_s27 + $0x1f8] sm:$0xf] %vm2040_vm1, %v2631_v10  ;;  %v2565_v17 = vpack.c.bf16 %v1257_v30, %v1257_v30  ;;  %v2629_v31 = vpack.c.bf16 %v1513_v34, %v1513_v34 }
 0x156   : > { %v2766_v35 = vpop.f32.mrf.mxu0  ;;  %v2830_v47 = vpop.f32.mrf.mxu1 }
 0x157   : > { %2101 = vst.msk [vmem:[%s3369_s27 + $0xf0] sm:$0xf] %vm2040_vm1, %v2565_v17  ;;  %2165 = vst.msk [vmem:[%s3369_s27 + $0x1f0] sm:$0xf] %vm2040_vm1, %v2629_v31  ;;  %v2568_v33 = vpack.c.bf16 %v2766_v35, %v2766_v35  ;;  %v2632_v23 = vpack.c.bf16 %v2830_v47, %v2830_v47 }
 0x158   : > { %v1260_v29 = vpop.f32.mrf.mxu0  ;;  %v1516_v36 = vpop.f32.mrf.mxu1 }
 0x159   : > { %2104 = vst.msk [vmem:[%s3369_s27 + $0xfc] sm:$0xf] %vm2040_vm1, %v2568_v33  ;;  %2168 = vst.msk [vmem:[%s3369_s27 + $0x1fc] sm:$0xf] %vm2040_vm1, %v2632_v23  ;;  %v2566_v39 = vpack.c.bf16 %v1260_v29, %v1260_v29  ;;  %v2630_v41 = vpack.c.bf16 %v1516_v36, %v1516_v36 }
 0x15b   : > { %2102 = vst.msk [vmem:[%s3369_s27 + $0xf4] sm:$0xf] %vm2040_vm1, %v2566_v39  ;;  %2166 = vst.msk [vmem:[%s3369_s27 + $0x1f4] sm:$0xf] %vm2040_vm1, %v2630_v41 }
 0x15c PF: > { %s13_s12 = sadd.s32 1, %s2851_s12  }
 0x15d   : > { %p10_p4 = scmp.ge.s32.totalorder %s13_s12, 4  }
 0x15f   :  { %12 = sbr.rel (!%p10_p4) target bundleno = 1 (0x1), region = 65 }

// kernel: forward.7
= control target key start
LH: loop header
LB: loop body
LE: loop exit
PB: predicated region body
PF: predicated region fallthrough
CT: control target
= control target key end

     0   :  { %s4262_s9 = smov 0   ;;  %s5189_s0 = inlined_call_operand.vmem [shape: bf16[2,1024,16], index: 0, kind: input, shape index: {}]   ;;  %s5190_s1 = inlined_call_operand.vmem [shape: bf16[16,96], index: 1, kind: input, shape index: {}]   ;;  %s5191_s2 = inlined_call_operand.vmem [shape: bf16[2,1024,96], index: 2, kind: output, shape index: {}]  }
   0x1 LB: > { %s2931_s10 = sadd.s32 4294967295, %s4245_s9   ;;  %p2935_p0 = scmp.ge.s32.totalorder %s4245_s9, 1  ;;  %s4245_s9 = sphi %s4262_s9, %s12_s9  }
   0x2   : > { %p112_p1 = scmp.lt.s32.totalorder %s4245_s9, 3 }
   0x4   : > { %p113_p2 = pnand %p2935_p0, %p112_p1 }
   0x5   : > { %p134_p3 = scmp.lt.s32.totalorder (!%p113_p2), %s2931_s10, 1 }
   0x6   : > { %116 = sbr.rel (%p113_p2) target bundleno = 485 (0x1e5), region = 28 }
   0xb   : > { %v3662_v0 = vld [vmem:[%s5190_s1] sm:$0xff]   ;;  %s5193_s10 = smov (!%p134_p3, %s2931_s10), 1  ;;  %vm601_vm0 = vcmask 130048   ;;  %vm2747_vm1 = vcmask 781312  }
   0xc   : > { %3522 = vmatprep.subr.bf16.mxu0 %v3662_v0  ;;  %3652 = vmatprep.subr.bf16.mxu1 %v3662_v0  ;;  %s3327_s13 = sshll.u32 %s5193_s10, 9 }
   0xd   : > { %3523 = vmatpush3.bf16.msra.mxu0 %v3662_v0  ;;  %3653 = vmatpush3.bf16.msra.mxu1 %v3662_v0  ;;  %s4281_s16 = scalar_lea.vmem %s5189_s0, %s3327_s13  ;;  %s4488_s19 = scalar_lea.vmem %s5191_s2, %s3327_s13 }
   0xe   : > { %v3663_v1 = vld [vmem:[%s4281_s16] sm:$0xff]   ;;  %v3665_v3 = vld [vmem:[%s4281_s16 + $0x8] sm:$0xff]   ;;  %v3667_v5 = vld [vmem:[%s4281_s16 + $0x10] sm:$0xff]  }
   0xf   : > { %v3664_v2 = vld [vmem:[%s4281_s16 + $0x100] sm:$0xff]   ;;  %3524 = vmatprep.mubr.msk.bf16.mxu0 %vm601_vm0, %v3663_v1  ;;  %v3666_v4 = vld [vmem:[%s4281_s16 + $0x108] sm:$0xff]   ;;  %v3668_v6 = vld [vmem:[%s4281_s16 + $0x110] sm:$0xff]  }
  0x10   : > { %3588 = vmatprep.mubr.msk.bf16.mxu1 %vm601_vm0, %v3664_v2  ;;  %3525 = vmatmul.mubr.msk.bf16.vlgmr.msra.gmra.mxu0 %vm601_vm0, %v3665_v3  ;;  %v3669_v7 = vld [vmem:[%s4281_s16 + $0x18] sm:$0xff]   ;;  %v3671_v9 = vld [vmem:[%s4281_s16 + $0x20] sm:$0xff]   ;;  %v3673_v11 = vld [vmem:[%s4281_s16 + $0x28] sm:$0xff]  }
  0x11   : > { %3589 = vmatmul.mubr.msk.bf16.vlgmr.msra.gmra.mxu1 %vm601_vm0, %v3666_v4  ;;  %3528 = vmatprep.mubr.msk.bf16.mxu0 %vm601_vm0, %v3667_v5  ;;  %v3670_v8 = vld [vmem:[%s4281_s16 + $0x118] sm:$0xff]   ;;  %v3672_v10 = vld [vmem:[%s4281_s16 + $0x120] sm:$0xff]   ;;  %v3674_v12 = vld [vmem:[%s4281_s16 + $0x128] sm:$0xff]  }
  0x12   : > { %3592 = vmatprep.mubr.msk.bf16.mxu1 %vm601_vm0, %v3668_v6  ;;  %v3675_v13 = vld [vmem:[%s4281_s16 + $0x30] sm:$0xff]   ;;  %v3677_v15 = vld [vmem:[%s4281_s16 + $0x38] sm:$0xff]   ;;  %v3679_v17 = vld [vmem:[%s4281_s16 + $0x40] sm:$0xff]  }
  0x13   : > { %v3676_v14 = vld [vmem:[%s4281_s16 + $0x130] sm:$0xff]   ;;  %v3678_v16 = vld [vmem:[%s4281_s16 + $0x138] sm:$0xff]   ;;  %v3680_v18 = vld [vmem:[%s4281_s16 + $0x140] sm:$0xff]  }
  0x14   : > { %v3681_v19 = vld [vmem:[%s4281_s16 + $0x48] sm:$0xff]   ;;  %v3683_v21 = vld [vmem:[%s4281_s16 + $0x50] sm:$0xff]   ;;  %v3685_v23 = vld [vmem:[%s4281_s16 + $0x58] sm:$0xff]  }
  0x15   : > { %v3682_v20 = vld [vmem:[%s4281_s16 + $0x148] sm:$0xff]   ;;  %v3684_v22 = vld [vmem:[%s4281_s16 + $0x150] sm:$0xff]   ;;  %v3686_v24 = vld [vmem:[%s4281_s16 + $0x158] sm:$0xff]  }
  0x16   : > { %v3687_v25 = vld [vmem:[%s4281_s16 + $0x60] sm:$0xff]   ;;  %v3689_v27 = vld [vmem:[%s4281_s16 + $0x68] sm:$0xff]   ;;  %v3691_v29 = vld [vmem:[%s4281_s16 + $0x70] sm:$0xff]  }
  0x17   : > { %v3688_v26 = vld [vmem:[%s4281_s16 + $0x160] sm:$0xff]   ;;  %v3690_v28 = vld [vmem:[%s4281_s16 + $0x168] sm:$0xff]   ;;  %v3692_v30 = vld [vmem:[%s4281_s16 + $0x170] sm:$0xff]  }
  0x18   : > { %3529 = vmatmul.mubr.msk.bf16.gmra.mxu0 %vm601_vm0, %v3669_v7  ;;  %v3693_v31 = vld [vmem:[%s4281_s16 + $0x78] sm:$0xff]   ;;  %v3695_v33 = vld [vmem:[%s4281_s16 + $0x80] sm:$0xff]   ;;  %v3697_v35 = vld [vmem:[%s4281_s16 + $0x88] sm:$0xff]  }
  0x19   : > { %3593 = vmatmul.mubr.msk.bf16.gmra.mxu1 %vm601_vm0, %v3670_v8  ;;  %3532 = vmatprep.mubr.msk.bf16.mxu0 %vm601_vm0, %v3671_v9  ;;  %v3694_v32 = vld [vmem:[%s4281_s16 + $0x178] sm:$0xff]   ;;  %v3696_v34 = vld [vmem:[%s4281_s16 + $0x180] sm:$0xff]   ;;  %v3698_v36 = vld [vmem:[%s4281_s16 + $0x188] sm:$0xff]  }
  0x1a   : > { %3596 = vmatprep.mubr.msk.bf16.mxu1 %vm601_vm0, %v3672_v10  ;;  %v3699_v37 = vld [vmem:[%s4281_s16 + $0x90] sm:$0xff]   ;;  %v3701_v39 = vld [vmem:[%s4281_s16 + $0x98] sm:$0xff]   ;;  %v3703_v41 = vld [vmem:[%s4281_s16 + $0xa0] sm:$0xff]  }
  0x1b   : > { %v3700_v38 = vld [vmem:[%s4281_s16 + $0x190] sm:$0xff]   ;;  %v3702_v40 = vld [vmem:[%s4281_s16 + $0x198] sm:$0xff]   ;;  %v3704_v42 = vld [vmem:[%s4281_s16 + $0x1a0] sm:$0xff]  }
  0x1c   : > { %v3705_v43 = vld [vmem:[%s4281_s16 + $0xa8] sm:$0xff]   ;;  %v3707_v45 = vld [vmem:[%s4281_s16 + $0xb0] sm:$0xff]   ;;  %v3709_v47 = vld [vmem:[%s4281_s16 + $0xb8] sm:$0xff]  }
  0x1d   : > { %v3706_v44 = vld [vmem:[%s4281_s16 + $0x1a8] sm:$0xff]   ;;  %v3708_v46 = vld [vmem:[%s4281_s16 + $0x1b0] sm:$0xff]   ;;  %v3710_v48 = vld [vmem:[%s4281_s16 + $0x1b8] sm:$0xff]  }
  0x1e   : > { %v3711_v49 = vld [vmem:[%s4281_s16 + $0xc0] sm:$0xff]   ;;  %v3713_v51 = vld [vmem:[%s4281_s16 + $0xc8] sm:$0xff]   ;;  %v3715_v53 = vld [vmem:[%s4281_s16 + $0xd0] sm:$0xff]  }
  0x1f   : > { %v3712_v50 = vld [vmem:[%s4281_s16 + $0x1c0] sm:$0xff]   ;;  %v3714_v52 = vld [vmem:[%s4281_s16 + $0x1c8] sm:$0xff]   ;;  %v3716_v54 = vld [vmem:[%s4281_s16 + $0x1d0] sm:$0xff]  }
  0x20   : > { %3533 = vmatmul.mubr.msk.bf16.gmra.mxu0 %vm601_vm0, %v3673_v11  ;;  %v3717_v55 = vld [vmem:[%s4281_s16 + $0xd8] sm:$0xff]   ;;  %v3719_v57 = vld [vmem:[%s4281_s16 + $0xe0] sm:$0xff]   ;;  %v3721_v59 = vld [vmem:[%s4281_s16 + $0xe8] sm:$0xff]  }
  0x21   : > { %3597 = vmatmul.mubr.msk.bf16.gmra.mxu1 %vm601_vm0, %v3674_v12  ;;  %3536 = vmatprep.mubr.msk.bf16.mxu0 %vm601_vm0, %v3675_v13  ;;  %v3718_v56 = vld [vmem:[%s4281_s16 + $0x1d8] sm:$0xff]   ;;  %v3720_v58 = vld [vmem:[%s4281_s16 + $0x1e0] sm:$0xff]   ;;  %v3722_v60 = vld [vmem:[%s4281_s16 + $0x1e8] sm:$0xff]  }
  0x22   : > { %3600 = vmatprep.mubr.msk.bf16.mxu1 %vm601_vm0, %v3676_v14  ;;  %v3723_v61 = vld [vmem:[%s4281_s16 + $0xf0] sm:$0xff]   ;;  %v3725_v63 = vld [vmem:[%s4281_s16 + $0xf8] sm:$0xff]  }
  0x23   : > { %v3724_v62 = vld [vmem:[%s4281_s16 + $0x1f0] sm:$0xff]   ;;  %v3726_v0 = vld [vmem:[%s4281_s16 + $0x1f8] sm:$0xff]  }
  0x28   : > { %3537 = vmatmul.mubr.msk.bf16.gmra.mxu0 %vm601_vm0, %v3677_v15 }
  0x29   : > { %3601 = vmatmul.mubr.msk.bf16.gmra.mxu1 %vm601_vm0, %v3678_v16  ;;  %3540 = vmatprep.mubr.msk.bf16.mxu0 %vm601_vm0, %v3679_v17 }
  0x2a   : > { %3604 = vmatprep.mubr.msk.bf16.mxu1 %vm601_vm0, %v3680_v18 }
  0x30   : > { %3541 = vmatmul.mubr.msk.bf16.gmra.mxu0 %vm601_vm0, %v3681_v19 }
  0x31   : > { %3605 = vmatmul.mubr.msk.bf16.gmra.mxu1 %vm601_vm0, %v3682_v20  ;;  %3544 = vmatprep.mubr.msk.bf16.mxu0 %vm601_vm0, %v3683_v21 }
  0x32   : > { %3608 = vmatprep.mubr.msk.bf16.mxu1 %vm601_vm0, %v3684_v22 }
  0x38   : > { %3545 = vmatmul.mubr.msk.bf16.gmra.mxu0 %vm601_vm0, %v3685_v23 }
  0x39   : > { %3609 = vmatmul.mubr.msk.bf16.gmra.mxu1 %vm601_vm0, %v3686_v24  ;;  %3548 = vmatprep.mubr.msk.bf16.mxu0 %vm601_vm0, %v3687_v25 }
  0x3a   : > { %3612 = vmatprep.mubr.msk.bf16.mxu1 %vm601_vm0, %v3688_v26 }
  0x40   : > { %3549 = vmatmul.mubr.msk.bf16.gmra.mxu0 %vm601_vm0, %v3689_v27 }
  0x41   : > { %3613 = vmatmul.mubr.msk.bf16.gmra.mxu1 %vm601_vm0, %v3690_v28  ;;  %3552 = vmatprep.mubr.msk.bf16.mxu0 %vm601_vm0, %v3691_v29 }
  0x42   : > { %3616 = vmatprep.mubr.msk.bf16.mxu1 %vm601_vm0, %v3692_v30 }
  0x48   : > { %3553 = vmatmul.mubr.msk.bf16.gmra.mxu0 %vm601_vm0, %v3693_v31 }
  0x49   : > { %3617 = vmatmul.mubr.msk.bf16.gmra.mxu1 %vm601_vm0, %v3694_v32  ;;  %3556 = vmatprep.mubr.msk.bf16.mxu0 %vm601_vm0, %v3695_v33 }
  0x4a   : > { %3620 = vmatprep.mubr.msk.bf16.mxu1 %vm601_vm0, %v3696_v34 }
  0x50   : > { %3557 = vmatmul.mubr.msk.bf16.gmra.mxu0 %vm601_vm0, %v3697_v35 }
  0x51   : > { %3621 = vmatmul.mubr.msk.bf16.gmra.mxu1 %vm601_vm0, %v3698_v36  ;;  %3560 = vmatprep.mubr.msk.bf16.mxu0 %vm601_vm0, %v3699_v37 }
  0x52   : > { %3624 = vmatprep.mubr.msk.bf16.mxu1 %vm601_vm0, %v3700_v38 }
  0x58   : > { %3561 = vmatmul.mubr.msk.bf16.gmra.mxu0 %vm601_vm0, %v3701_v39 }
  0x59   : > { %3625 = vmatmul.mubr.msk.bf16.gmra.mxu1 %vm601_vm0, %v3702_v40  ;;  %3564 = vmatprep.mubr.msk.bf16.mxu0 %vm601_vm0, %v3703_v41 }
  0x5a   : > { %3628 = vmatprep.mubr.msk.bf16.mxu1 %vm601_vm0, %v3704_v42 }
  0x60   : > { %3565 = vmatmul.mubr.msk.bf16.gmra.mxu0 %vm601_vm0, %v3705_v43 }
  0x61   : > { %3629 = vmatmul.mubr.msk.bf16.gmra.mxu1 %vm601_vm0, %v3706_v44  ;;  %3568 = vmatprep.mubr.msk.bf16.mxu0 %vm601_vm0, %v3707_v45 }
  0x62   : > { %3632 = vmatprep.mubr.msk.bf16.mxu1 %vm601_vm0, %v3708_v46 }
  0x68   : > { %3569 = vmatmul.mubr.msk.bf16.gmra.mxu0 %vm601_vm0, %v3709_v47 }
  0x69   : > { %3633 = vmatmul.mubr.msk.bf16.gmra.mxu1 %vm601_vm0, %v3710_v48  ;;  %3572 = vmatprep.mubr.msk.bf16.mxu0 %vm601_vm0, %v3711_v49 }
  0x6a   : > { %3636 = vmatprep.mubr.msk.bf16.mxu1 %vm601_vm0, %v3712_v50 }
  0x70   : > { %3573 = vmatmul.mubr.msk.bf16.gmra.mxu0 %vm601_vm0, %v3713_v51 }
  0x71   : > { %3637 = vmatmul.mubr.msk.bf16.gmra.mxu1 %vm601_vm0, %v3714_v52  ;;  %3576 = vmatprep.mubr.msk.bf16.mxu0 %vm601_vm0, %v3715_v53 }
  0x72   : > { %3640 = vmatprep.mubr.msk.bf16.mxu1 %vm601_vm0, %v3716_v54 }
  0x78   : > { %3577 = vmatmul.mubr.msk.bf16.gmra.mxu0 %vm601_vm0, %v3717_v55 }
  0x79   : > { %3641 = vmatmul.mubr.msk.bf16.gmra.mxu1 %vm601_vm0, %v3718_v56  ;;  %3580 = vmatprep.mubr.msk.bf16.mxu0 %vm601_vm0, %v3719_v57 }
  0x7a   : > { %3644 = vmatprep.mubr.msk.bf16.mxu1 %vm601_vm0, %v3720_v58 }
  0x80   : > { %3581 = vmatmul.mubr.msk.bf16.gmra.mxu0 %vm601_vm0, %v3721_v59 }
  0x81   : > { %3645 = vmatmul.mubr.msk.bf16.gmra.mxu1 %vm601_vm0, %v3722_v60  ;;  %3584 = vmatprep.mubr.msk.bf16.mxu0 %vm601_vm0, %v3723_v61 }
  0x82   : > { %3648 = vmatprep.mubr.msk.bf16.mxu1 %vm601_vm0, %v3724_v62 }
  0x88   : > { %3585 = vmatmul.mubr.msk.bf16.gmra.mxu0 %vm601_vm0, %v3725_v63 }
  0x89   : > { %3649 = vmatmul.mubr.msk.bf16.gmra.mxu1 %vm601_vm0, %v3726_v0 }
  0xd0   : > { %v4411_v1 = vpop.f32.mrf.mxu0 }
  0xd1   : > { %v3071_v2 = vmul.f32 -1.442695, %v4411_v1  ;;  %v4414_v3 = vpop.f32.mrf.mxu1 }
  0xd2   : > { %v3135_v4 = vmul.f32 -1.442695, %v4414_v3  ;;  %v4417_v5 = vpop.f32.mrf.mxu0 }
  0xd3   : > { %3727 = vpow2.f32 %v3071_v2  ;;  %v3069_v6 = vmul.f32 -1.442695, %v4417_v5  ;;  %v4420_v7 = vpop.f32.mrf.mxu1 }
  0xd4   : > { %3729 = vpow2.f32 %v3135_v4  ;;  %v3133_v8 = vmul.f32 -1.442695, %v4420_v7  ;;  %v4423_v9 = vpop.f32.mrf.mxu0 }
  0xd5   : > { %3731 = vpow2.f32 %v3069_v6  ;;  %v3072_v10 = vmul.f32 -1.442695, %v4423_v9  ;;  %v4426_v11 = vpop.f32.mrf.mxu1 }
  0xd6   : > { %3733 = vpow2.f32 %v3133_v8  ;;  %v3136_v12 = vmul.f32 -1.442695, %v4426_v11  ;;  %v4429_v13 = vpop.f32.mrf.mxu0 }
  0xd7   : > { %3735 = vpow2.f32 %v3072_v10  ;;  %v3070_v14 = vmul.f32 -1.442695, %v4429_v13  ;;  %v4432_v15 = vpop.f32.mrf.mxu1 }
  0xd8   : > { %3737 = vpow2.f32 %v3136_v12  ;;  %v3134_v16 = vmul.f32 -1.442695, %v4432_v15  ;;  %v4435_v17 = vpop.f32.mrf.mxu0 }
  0xd9   : > { %3739 = vpow2.f32 %v3070_v14  ;;  %v3075_v18 = vmul.f32 -1.442695, %v4435_v17  ;;  %v4438_v19 = vpop.f32.mrf.mxu1 }
  0xda   : > { %3741 = vpow2.f32 %v3134_v16  ;;  %v3139_v20 = vmul.f32 -1.442695, %v4438_v19  ;;  %v4441_v21 = vpop.f32.mrf.mxu0 }
  0xdb   : > { %3743 = vpow2.f32 %v3075_v18  ;;  %v3073_v22 = vmul.f32 -1.442695, %v4441_v21  ;;  %v4444_v23 = vpop.f32.mrf.mxu1 }
  0xdc   : > { %3745 = vpow2.f32 %v3139_v20  ;;  %v3137_v24 = vmul.f32 -1.442695, %v4444_v23  ;;  %v4447_v25 = vpop.f32.mrf.mxu0 }
  0xdd   : > { %3747 = vpow2.f32 %v3073_v22  ;;  %v3076_v26 = vmul.f32 -1.442695, %v4447_v25  ;;  %v4450_v27 = vpop.f32.mrf.mxu1 }
  0xde   : > { %3749 = vpow2.f32 %v3137_v24  ;;  %v3140_v28 = vmul.f32 -1.442695, %v4450_v27  ;;  %v4453_v29 = vpop.f32.mrf.mxu0 }
  0xdf   : > { %3751 = vpow2.f32 %v3076_v26  ;;  %v3074_v30 = vmul.f32 -1.442695, %v4453_v29  ;;  %v4456_v31 = vpop.f32.mrf.mxu1 }
  0xe0   : > { %v3728_v32 = vpop.eup %3727  ;;  %3753 = vpow2.f32 %v3140_v28  ;;  %v3138_v33 = vmul.f32 -1.442695, %v4456_v31  ;;  %v4459_v34 = vpop.f32.mrf.mxu0 }
  0xe1   : > { %v3730_v35 = vpop.eup %3729  ;;  %v1725_v36 = vadd.f32 1.0, %v3728_v32  ;;  %3755 = vpow2.f32 %v3074_v30  ;;  %v4461_v37 = vpop.f32.mrf.mxu1  ;;  %v3079_v18 = vmul.f32 -1.442695, %v4459_v34 }
  0xe2   : > { %v3732_v38 = vpop.eup %3731  ;;  %v1789_v39 = vadd.f32 1.0, %v3730_v35  ;;  %3757 = vpow2.f32 %v3138_v33  ;;  %v4463_v40 = vpop.f32.mrf.mxu0  ;;  %v3143_v26 = vmul.f32 -1.442695, %v4461_v37 }
  0xe3   : > { %v3734_v41 = vpop.eup %3733  ;;  %3759 = vrcp.f32 %v1725_v36  ;;  %v1723_v42 = vadd.f32 1.0, %v3732_v38  ;;  %v4465_v43 = vpop.f32.mrf.mxu1  ;;  %v3077_v32 = vmul.f32 -1.442695, %v4463_v40 }
  0xe4   : > { %v3736_v44 = vpop.eup %3735  ;;  %3761 = vrcp.f32 %v1789_v39  ;;  %v1787_v45 = vadd.f32 1.0, %v3734_v41  ;;  %v4467_v50 = vpop.f32.mrf.mxu0  ;;  %v3141_v36 = vmul.f32 -1.442695, %v4465_v43 }
  0xe5   : > { %v3738_v46 = vpop.eup %3737  ;;  %3763 = vrcp.f32 %v1723_v42  ;;  %v1726_v47 = vadd.f32 1.0, %v3736_v44  ;;  %v4469_v53 = vpop.f32.mrf.mxu1  ;;  %v3080_v42 = vmul.f32 -1.442695, %v4467_v50 }
  0xe6   : > { %v3740_v48 = vpop.eup %3739  ;;  %3765 = vrcp.f32 %v1787_v45  ;;  %v1790_v49 = vadd.f32 1.0, %v3738_v46  ;;  %v4471_v60 = vpop.f32.mrf.mxu0 }
  0xe7   : > { %v3742_v51 = vpop.eup %3741  ;;  %3767 = vrcp.f32 %v1726_v47  ;;  %v1724_v52 = vadd.f32 1.0, %v3740_v48  ;;  %v4473_v63 = vpop.f32.mrf.mxu1  ;;  %v3144_v47 = vmul.f32 -1.442695, %v4469_v53 }
  0xe8   : > { %v3744_v54 = vpop.eup %3743  ;;  %3769 = vrcp.f32 %v1790_v49  ;;  %v1788_v55 = vadd.f32 1.0, %v3742_v51  ;;  %v4475_v12 = vpop.f32.mrf.mxu0  ;;  %v3078_v51 = vmul.f32 -1.442695, %v4471_v60 }
  0xe9   : > { %v3746_v56 = vpop.eup %3745  ;;  %3771 = vrcp.f32 %v1724_v52  ;;  %v1729_v57 = vadd.f32 1.0, %v3744_v54  ;;  %v4478_v20 = vpop.f32.mrf.mxu1 }
  0xea   : > { %v3748_v58 = vpop.eup %3747  ;;  %3773 = vrcp.f32 %v1788_v55  ;;  %v1793_v59 = vadd.f32 1.0, %v3746_v56  ;;  %v4492_v38 = vpop.f32.mrf.mxu0  ;;  %v3142_v55 = vmul.f32 -1.442695, %v4473_v63 }
  0xeb   : > { %v3750_v61 = vpop.eup %3749  ;;  %3775 = vrcp.f32 %v1729_v57  ;;  %v1727_v62 = vadd.f32 1.0, %v3748_v58  ;;  %v4496_v44 = vpop.f32.mrf.mxu1 }
  0xec   : > { %v3752_v0 = vpop.eup %3751  ;;  %3777 = vrcp.f32 %v1793_v59  ;;  %v1791_v2 = vadd.f32 1.0, %v3750_v61  ;;  %v4508_v56 = vpop.f32.mrf.mxu0  ;;  %v3083_v59 = vmul.f32 -1.442695, %v4475_v12 }
  0xed   : > { %v3754_v4 = vpop.eup %3753  ;;  %3779 = vrcp.f32 %v1727_v62  ;;  %v1730_v6 = vadd.f32 1.0, %v3752_v0  ;;  %v4514_v61 = vpop.f32.mrf.mxu1 }
  0xee   : > { %v3756_v8 = vpop.eup %3755  ;;  %3781 = vrcp.f32 %v1791_v2  ;;  %v1794_v10 = vadd.f32 1.0, %v3754_v4  ;;  %v3147_v2 = vmul.f32 -1.442695, %v4478_v20 }
  0xef   : > { %v3758_v14 = vpop.eup %3757  ;;  %3783 = vrcp.f32 %v1730_v6  ;;  %v1728_v16 = vadd.f32 1.0, %v3756_v8  ;;  %v3081_v8 = vmul.f32 -1.442695, %v4492_v38 }
  0xf0   : > { %v3760_v22 = vpop.eup %3759  ;;  %3785 = vrcp.f32 %v1794_v10  ;;  %v1792_v24 = vadd.f32 1.0, %v3758_v14 }
  0xf1   : > { %v3762_v28 = vpop.eup %3761  ;;  %v2109_v30 = vmul.f32 %v3760_v22, %v4411_v1  ;;  %3787 = vrcp.f32 %v1728_v16  ;;  %v3145_v16 = vmul.f32 -1.442695, %v4496_v44 }
  0xf2   : > { %v3764_v33 = vpop.eup %3763  ;;  %v2173_v35 = vmul.f32 %v3762_v28, %v4414_v3  ;;  %3789 = vrcp.f32 %v1792_v24  ;;  %v4534_v28 = vpop.f32.mrf.mxu1 }
  0xf3   : > { %v3766_v1 = vpop.eup %3765  ;;  %v3331_v39 = vpack.c.bf16 %v2109_v30, %v2109_v30  ;;  %v2107_v41 = vmul.f32 %v3764_v33, %v4417_v5  ;;  %3791 = vpow2.f32 %v3079_v18  ;;  %v4528_v18 = vpop.f32.mrf.mxu0  ;;  %v3148_v33 = vmul.f32 -1.442695, %v4514_v61 }
  0xf4   : > { %v3768_v45 = vpop.eup %3767  ;;  %v3395_v46 = vpack.c.bf16 %v2173_v35, %v2173_v35  ;;  %v2171_v3 = vmul.f32 %v3766_v1, %v4420_v7  ;;  %3793 = vpow2.f32 %v3143_v26  ;;  %v3084_v26 = vmul.f32 -1.442695, %v4508_v56 }
  0xf5   : > { %v3770_v48 = vpop.eup %3769  ;;  %2750 = vst.msk [vmem:[%s4488_s19 + $0x8] sm:$0xf] %vm2747_vm1, %v3331_v39  ;;  %v3329_v49 = vpack.c.bf16 %v2107_v41, %v2107_v41  ;;  %v2110_v5 = vmul.f32 %v3768_v45, %v4423_v9  ;;  %3795 = vpow2.f32 %v3077_v32  ;;  %v3082_v1 = vmul.f32 -1.442695, %v4528_v18  ;;  %v4548_v45 = vpop.f32.mrf.mxu0 }
  0xf6   : > { %v3772_v52 = vpop.eup %3771  ;;  %2814 = vst.msk [vmem:[%s4488_s19 + $0x108] sm:$0xf] %vm2747_vm1, %v3395_v46  ;;  %v3393_v54 = vpack.c.bf16 %v2171_v3, %v2171_v3  ;;  %v2174_v7 = vmul.f32 %v3770_v48, %v4426_v11  ;;  %3797 = vpow2.f32 %v3141_v36 }
  0xf7   : > { %v3774_v57 = vpop.eup %3773  ;;  %2748 = vst.msk [vmem:[%s4488_s19] sm:$0xf] %vm2747_vm1, %v3329_v49  ;;  %v3332_v9 = vpack.c.bf16 %v2110_v5, %v2110_v5  ;;  %v2108_v58 = vmul.f32 %v3772_v52, %v4429_v13  ;;  %3799 = vpow2.f32 %v3080_v42  ;;  %v3146_v42 = vmul.f32 -1.442695, %v4534_v28 }
  0xf8   : > { %v3776_v62 = vpop.eup %3775  ;;  %2812 = vst.msk [vmem:[%s4488_s19 + $0x100] sm:$0xf] %vm2747_vm1, %v3393_v54  ;;  %v3396_v11 = vpack.c.bf16 %v2174_v7, %v2174_v7  ;;  %v2172_v0 = vmul.f32 %v3774_v57, %v4432_v15  ;;  %3801 = vpow2.f32 %v3144_v47  ;;  %v4553_v47 = vpop.f32.mrf.mxu1 }
  0xf9   : > { %v3778_v4 = vpop.eup %3777  ;;  %2751 = vst.msk [vmem:[%s4488_s19 + $0xc] sm:$0xf] %vm2747_vm1, %v3332_v9  ;;  %v3330_v13 = vpack.c.bf16 %v2108_v58, %v2108_v58  ;;  %v2113_v6 = vmul.f32 %v3776_v62, %v4435_v17  ;;  %3803 = vpow2.f32 %v3078_v51 }
  0xfa   : > { %v3780_v10 = vpop.eup %3779  ;;  %2815 = vst.msk [vmem:[%s4488_s19 + $0x10c] sm:$0xf] %vm2747_vm1, %v3396_v11  ;;  %v3394_v14 = vpack.c.bf16 %v2172_v0, %v2172_v0  ;;  %v2177_v15 = vmul.f32 %v3778_v4, %v4438_v19  ;;  %3805 = vpow2.f32 %v3142_v55  ;;  %v4562_v55 = vpop.f32.mrf.mxu0 }
  0xfb   : > { %v3782_v22 = vpop.eup %3781  ;;  %2749 = vst.msk [vmem:[%s4488_s19 + $0x4] sm:$0xf] %vm2747_vm1, %v3330_v13  ;;  %v3335_v17 = vpack.c.bf16 %v2113_v6, %v2113_v6  ;;  %v2111_v24 = vmul.f32 %v3780_v10, %v4441_v21  ;;  %3807 = vpow2.f32 %v3083_v59  ;;  %v4566_v9 = vpop.f32.mrf.mxu1 }
  0xfc   : > { %v3784_v30 = vpop.eup %3783  ;;  %2813 = vst.msk [vmem:[%s4488_s19 + $0x104] sm:$0xf] %vm2747_vm1, %v3394_v14  ;;  %v3399_v19 = vpack.c.bf16 %v2177_v15, %v2177_v15  ;;  %v2175_v32 = vmul.f32 %v3782_v22, %v4444_v23  ;;  %3809 = vpow2.f32 %v3147_v2  ;;  %v4570_v4 = vpop.f32.mrf.mxu0 }
  0xfd   : > { %v3786_v35 = vpop.eup %3785  ;;  %2754 = vst.msk [vmem:[%s4488_s19 + $0x18] sm:$0xf] %vm2747_vm1, %v3335_v17  ;;  %v3333_v21 = vpack.c.bf16 %v2111_v24, %v2111_v24  ;;  %v2114_v36 = vmul.f32 %v3784_v30, %v4447_v25  ;;  %3811 = vpow2.f32 %v3081_v8  ;;  %v4572_v8 = vpop.f32.mrf.mxu1 }
  0xfe   : > { %v3788_v39 = vpop.eup %3787  ;;  %2818 = vst.msk [vmem:[%s4488_s19 + $0x118] sm:$0xf] %vm2747_vm1, %v3399_v19  ;;  %v3397_v41 = vpack.c.bf16 %v2175_v32, %v2175_v32  ;;  %v2178_v23 = vmul.f32 %v3786_v35, %v4450_v27  ;;  %3813 = vpow2.f32 %v3145_v16  ;;  %v4574_v24 = vpop.f32.mrf.mxu0 }
  0xff   : > { %v3790_v46 = vpop.eup %3789  ;;  %2752 = vst.msk [vmem:[%s4488_s19 + $0x10] sm:$0xf] %vm2747_vm1, %v3333_v21  ;;  %v3336_v25 = vpack.c.bf16 %v2114_v36, %v2114_v36  ;;  %v2112_v3 = vmul.f32 %v3788_v39, %v4453_v29  ;;  %3815 = vpow2.f32 %v3084_v26  ;;  %v4576_v19 = vpop.f32.mrf.mxu1 }
 0x100   : > { %v3792_v48 = vpop.eup %3791  ;;  %2816 = vst.msk [vmem:[%s4488_s19 + $0x110] sm:$0xf] %vm2747_vm1, %v3397_v41  ;;  %v3400_v27 = vpack.c.bf16 %v2178_v23, %v2178_v23  ;;  %v2176_v49 = vmul.f32 %v3790_v46, %v4456_v31  ;;  %3817 = vpow2.f32 %v3148_v33  ;;  %v4578_v39 = vpop.f32.mrf.mxu0 }
 0x101   : > { %v3794_v5 = vpop.eup %3793  ;;  %2755 = vst.msk [vmem:[%s4488_s19 + $0x1c] sm:$0xf] %vm2747_vm1, %v3336_v25  ;;  %v3334_v51 = vpack.c.bf16 %v2112_v3, %v2112_v3  ;;  %v1733_v52 = vadd.f32 1.0, %v3792_v48  ;;  %3819 = vpow2.f32 %v3082_v1  ;;  %v4581_v46 = vpop.f32.mrf.mxu1  ;;  %v3151_v48 = vmul.f32 -1.442695, %v4553_v47 }
 0x102   : > { %v3796_v54 = vpop.eup %3795  ;;  %2819 = vst.msk [vmem:[%s4488_s19 + $0x11c] sm:$0xf] %vm2747_vm1, %v3400_v27  ;;  %v3398_v29 = vpack.c.bf16 %v2176_v49, %v2176_v49  ;;  %v1797_v7 = vadd.f32 1.0, %v3794_v5  ;;  %3821 = vpow2.f32 %v3146_v42  ;;  %v3087_v42 = vmul.f32 -1.442695, %v4548_v45 }
 0x103   : > { %v3798_v57 = vpop.eup %3797  ;;  %2753 = vst.msk [vmem:[%s4488_s19 + $0x14] sm:$0xf] %vm2747_vm1, %v3334_v51  ;;  %3823 = vrcp.f32 %v1733_v52  ;;  %v1731_v31 = vadd.f32 1.0, %v3796_v54  ;;  %v3085_v5 = vmul.f32 -1.442695, %v4562_v55 }
 0x104   : > { %v3800_v58 = vpop.eup %3799  ;;  %2817 = vst.msk [vmem:[%s4488_s19 + $0x114] sm:$0xf] %vm2747_vm1, %v3398_v29  ;;  %3825 = vrcp.f32 %v1797_v7  ;;  %v1795_v59 = vadd.f32 1.0, %v3798_v57  ;;  %v3149_v54 = vmul.f32 -1.442695, %v4566_v9  ;;  %v4588_v29 = vpop.f32.mrf.mxu0 }
 0x105   : > { %v3802_v62 = vpop.eup %3801  ;;  %3827 = vrcp.f32 %v1731_v31  ;;  %v1734_v11 = vadd.f32 1.0, %v3800_v58  ;;  %v4592_v58 = vpop.f32.mrf.mxu1 }
 0x106   : > { %v3804_v0 = vpop.eup %3803  ;;  %3829 = vrcp.f32 %v1795_v59  ;;  %v1798_v2 = vadd.f32 1.0, %v3802_v62 }
 0x107   : > { %v3806_v13 = vpop.eup %3805  ;;  %3831 = vrcp.f32 %v1734_v11  ;;  %v1732_v6 = vadd.f32 1.0, %v3804_v0  ;;  %v3152_v11 = vmul.f32 -1.442695, %v4572_v8 }
 0x108   : > { %v3808_v10 = vpop.eup %3807  ;;  %3833 = vrcp.f32 %v1798_v2  ;;  %v1796_v14 = vadd.f32 1.0, %v3806_v13  ;;  %v3086_v13 = vmul.f32 -1.442695, %v4574_v24 }
 0x109   : > { %v3810_v15 = vpop.eup %3809  ;;  %3835 = vrcp.f32 %v1732_v6  ;;  %v1737_v16 = vadd.f32 1.0, %v3808_v10 }
 0x10a   : > { %v3812_v22 = vpop.eup %3811  ;;  %3837 = vrcp.f32 %v1796_v14  ;;  %v1801_v17 = vadd.f32 1.0, %v3810_v15  ;;  %v3150_v14 = vmul.f32 -1.442695, %v4576_v19  ;;  %v4604_v15 = vpop.f32.mrf.mxu0 }
 0x10b   : > { %v3814_v26 = vpop.eup %3813  ;;  %3839 = vrcp.f32 %v1737_v16  ;;  %v1735_v30 = vadd.f32 1.0, %v3812_v22 }
 0x10c   : > { %v3816_v32 = vpop.eup %3815  ;;  %3841 = vrcp.f32 %v1801_v17  ;;  %v1799_v33 = vadd.f32 1.0, %v3814_v26  ;;  %v3091_v17 = vmul.f32 -1.442695, %v4578_v39  ;;  %v4610_v26 = vpop.f32.mrf.mxu1 }
 0x10d   : > { %v3818_v35 = vpop.eup %3817  ;;  %3843 = vrcp.f32 %v1735_v30  ;;  %v1738_v21 = vadd.f32 1.0, %v3816_v32 }
 0x10e   : > { %v3820_v36 = vpop.eup %3819  ;;  %3845 = vrcp.f32 %v1799_v33  ;;  %v1802_v1 = vadd.f32 1.0, %v3818_v35  ;;  %v3155_v33 = vmul.f32 -1.442695, %v4581_v46 }
 0x10f   : > { %v3822_v41 = vpop.eup %3821  ;;  %3847 = vrcp.f32 %v1738_v21  ;;  %v1736_v23 = vadd.f32 1.0, %v3820_v36  ;;  %v3089_v36 = vmul.f32 -1.442695, %v4588_v29 }
 0x110   : > { %v3824_v25 = vpop.eup %3823  ;;  %3849 = vrcp.f32 %v1802_v1  ;;  %v1800_v3 = vadd.f32 1.0, %v3822_v41 }
 0x111   : > { %v3826_v27 = vpop.eup %3825  ;;  %v2117_v49 = vmul.f32 %v3824_v25, %v4459_v34  ;;  %3851 = vrcp.f32 %v1736_v23  ;;  %v3088_v34 = vmul.f32 -1.442695, %v4570_v4  ;;  %v3153_v23 = vmul.f32 -1.442695, %v4592_v58 }
 0x112   : > { %v3828_v51 = vpop.eup %3827  ;;  %v2181_v52 = vmul.f32 %v3826_v27, %v4461_v37  ;;  %3853 = vrcp.f32 %v1800_v3  ;;  %v4630_v27 = vpop.f32.mrf.mxu1 }
 0x113   : > { %v3830_v7 = vpop.eup %3829  ;;  %v3339_v57 = vpack.c.bf16 %v2117_v49, %v2117_v49  ;;  %v2115_v31 = vmul.f32 %v3828_v51, %v4463_v40  ;;  %3855 = vpow2.f32 %v3087_v42  ;;  %v4624_v42 = vpop.f32.mrf.mxu0  ;;  %v3156_v51 = vmul.f32 -1.442695, %v4610_v26 }
 0x114   : > { %v3832_v59 = vpop.eup %3831  ;;  %v3403_v62 = vpack.c.bf16 %v2181_v52, %v2181_v52  ;;  %v2179_v37 = vmul.f32 %v3830_v7, %v4465_v43  ;;  %3857 = vpow2.f32 %v3151_v48  ;;  %v3092_v48 = vmul.f32 -1.442695, %v4604_v15 }
 0x115   : > { %v3834_v0 = vpop.eup %3833  ;;  %2758 = vst.msk [vmem:[%s4488_s19 + $0x28] sm:$0xf] %vm2747_vm1, %v3339_v57  ;;  %v3337_v2 = vpack.c.bf16 %v2115_v31, %v2115_v31  ;;  %v2118_v40 = vmul.f32 %v3832_v59, %v4467_v50  ;;  %3859 = vpow2.f32 %v3085_v5  ;;  %v3090_v7 = vmul.f32 -1.442695, %v4624_v42  ;;  %v4644_v59 = vpop.f32.mrf.mxu0 }
 0x116   : > { %v3836_v6 = vpop.eup %3835  ;;  %2822 = vst.msk [vmem:[%s4488_s19 + $0x128] sm:$0xf] %vm2747_vm1, %v3403_v62  ;;  %v3401_v10 = vpack.c.bf16 %v2179_v37, %v2179_v37  ;;  %v2182_v43 = vmul.f32 %v3834_v0, %v4469_v53  ;;  %3861 = vpow2.f32 %v3149_v54 }
 0x117   : > { %v3838_v16 = vpop.eup %3837  ;;  %2756 = vst.msk [vmem:[%s4488_s19 + $0x20] sm:$0xf] %vm2747_vm1, %v3337_v2  ;;  %v3340_v50 = vpack.c.bf16 %v2118_v40, %v2118_v40  ;;  %v2116_v22 = vmul.f32 %v3836_v6, %v4471_v60  ;;  %3863 = vpow2.f32 %v3088_v34  ;;  %v3154_v34 = vmul.f32 -1.442695, %v4630_v27 }
 0x118   : > { %v3840_v30 = vpop.eup %3839  ;;  %2820 = vst.msk [vmem:[%s4488_s19 + $0x120] sm:$0xf] %vm2747_vm1, %v3401_v10  ;;  %v3404_v53 = vpack.c.bf16 %v2182_v43, %v2182_v43  ;;  %v2180_v32 = vmul.f32 %v3838_v16, %v4473_v63  ;;  %3865 = vpow2.f32 %v3152_v11  ;;  %v4649_v11 = vpop.f32.mrf.mxu1 }
 0x119   : > { %v3842_v35 = vpop.eup %3841  ;;  %2759 = vst.msk [vmem:[%s4488_s19 + $0x2c] sm:$0xf] %vm2747_vm1, %v3340_v50  ;;  %v3338_v60 = vpack.c.bf16 %v2116_v22, %v2116_v22  ;;  %v2121_v21 = vmul.f32 %v3840_v30, %v4475_v12  ;;  %3867 = vpow2.f32 %v3086_v13 }
 0x11a   : > { %v3844_v1 = vpop.eup %3843  ;;  %2823 = vst.msk [vmem:[%s4488_s19 + $0x12c] sm:$0xf] %vm2747_vm1, %v3404_v53  ;;  %v3402_v41 = vpack.c.bf16 %v2180_v32, %v2180_v32  ;;  %v2185_v63 = vmul.f32 %v3842_v35, %v4478_v20  ;;  %3869 = vpow2.f32 %v3150_v14  ;;  %v4658_v14 = vpop.f32.mrf.mxu0 }
 0x11b   : > { %v3846_v25 = vpop.eup %3845  ;;  %2757 = vst.msk [vmem:[%s4488_s19 + $0x24] sm:$0xf] %vm2747_vm1, %v3338_v60  ;;  %v3343_v12 = vpack.c.bf16 %v2121_v21, %v2121_v21  ;;  %v2119_v3 = vmul.f32 %v3844_v1, %v4492_v38  ;;  %3871 = vpow2.f32 %v3091_v17  ;;  %v4662_v50 = vpop.f32.mrf.mxu1 }
 0x11c   : > { %v3848_v49 = vpop.eup %3847  ;;  %2821 = vst.msk [vmem:[%s4488_s19 + $0x124] sm:$0xf] %vm2747_vm1, %v3402_v41  ;;  %v3407_v20 = vpack.c.bf16 %v2185_v63, %v2185_v63  ;;  %v2183_v5 = vmul.f32 %v3846_v25, %v4496_v44  ;;  %3873 = vpow2.f32 %v3155_v33  ;;  %v4666_v35 = vpop.f32.mrf.mxu0 }
 0x11d   : > { %v3850_v52 = vpop.eup %3849  ;;  %2762 = vst.msk [vmem:[%s4488_s19 + $0x38] sm:$0xf] %vm2747_vm1, %v3343_v12  ;;  %v3341_v38 = vpack.c.bf16 %v2119_v3, %v2119_v3  ;;  %v2122_v54 = vmul.f32 %v3848_v49, %v4508_v56  ;;  %3875 = vpow2.f32 %v3089_v36  ;;  %v4668_v36 = vpop.f32.mrf.mxu1 }
 0x11e   : > { %v3852_v57 = vpop.eup %3851  ;;  %2826 = vst.msk [vmem:[%s4488_s19 + $0x138] sm:$0xf] %vm2747_vm1, %v3407_v20  ;;  %v3405_v31 = vpack.c.bf16 %v2183_v5, %v2183_v5  ;;  %v2186_v44 = vmul.f32 %v3850_v52, %v4514_v61  ;;  %3877 = vpow2.f32 %v3153_v23  ;;  %v4670_v3 = vpop.f32.mrf.mxu0 }
 0x11f   : > { %v3854_v62 = vpop.eup %3853  ;;  %2760 = vst.msk [vmem:[%s4488_s19 + $0x30] sm:$0xf] %vm2747_vm1, %v3341_v38  ;;  %v3344_v56 = vpack.c.bf16 %v2122_v54, %v2122_v54  ;;  %v2120_v37 = vmul.f32 %v3852_v57, %v4528_v18  ;;  %3879 = vpow2.f32 %v3092_v48  ;;  %v4672_v20 = vpop.f32.mrf.mxu1 }
 0x120   : > { %v3856_v0 = vpop.eup %3855  ;;  %2824 = vst.msk [vmem:[%s4488_s19 + $0x130] sm:$0xf] %vm2747_vm1, %v3405_v31  ;;  %v3408_v61 = vpack.c.bf16 %v2186_v44, %v2186_v44  ;;  %v2184_v2 = vmul.f32 %v3854_v62, %v4534_v28  ;;  %3881 = vpow2.f32 %v3156_v51  ;;  %v4674_v57 = vpop.f32.mrf.mxu0 }
 0x121   : > { %v3858_v40 = vpop.eup %3857  ;;  %2763 = vst.msk [vmem:[%s4488_s19 + $0x3c] sm:$0xf] %vm2747_vm1, %v3344_v56  ;;  %v3342_v13 = vpack.c.bf16 %v2120_v37, %v2120_v37  ;;  %v1741_v6 = vadd.f32 1.0, %v3856_v0  ;;  %3883 = vpow2.f32 %v3090_v7  ;;  %v4677_v62 = vpop.f32.mrf.mxu1  ;;  %v3159_v0 = vmul.f32 -1.442695, %v4649_v11 }
 0x122   : > { %v3860_v10 = vpop.eup %3859  ;;  %2827 = vst.msk [vmem:[%s4488_s19 + $0x13c] sm:$0xf] %vm2747_vm1, %v3408_v61  ;;  %v3406_v18 = vpack.c.bf16 %v2184_v2, %v2184_v2  ;;  %v1805_v43 = vadd.f32 1.0, %v3858_v40  ;;  %3885 = vpow2.f32 %v3154_v34  ;;  %v3095_v34 = vmul.f32 -1.442695, %v4644_v59 }
 0x123   : > { %v3862_v16 = vpop.eup %3861  ;;  %2761 = vst.msk [vmem:[%s4488_s19 + $0x34] sm:$0xf] %vm2747_vm1, %v3342_v13  ;;  %3887 = vrcp.f32 %v1741_v6  ;;  %v1739_v28 = vadd.f32 1.0, %v3860_v10  ;;  %v3093_v40 = vmul.f32 -1.442695, %v4658_v14 }
 0x124   : > { %v3864_v22 = vpop.eup %3863  ;;  %2825 = vst.msk [vmem:[%s4488_s19 + $0x134] sm:$0xf] %vm2747_vm1, %v3406_v18  ;;  %3889 = vrcp.f32 %v1805_v43  ;;  %v1803_v17 = vadd.f32 1.0, %v3862_v16  ;;  %v3157_v10 = vmul.f32 -1.442695, %v4662_v50  ;;  %v4684_v18 = vpop.f32.mrf.mxu0 }
 0x125   : > { %v3866_v30 = vpop.eup %3865  ;;  %3891 = vrcp.f32 %v1739_v28  ;;  %v1742_v53 = vadd.f32 1.0, %v3864_v22  ;;  %v4688_v22 = vpop.f32.mrf.mxu1 }
 0x126   : > { %v3868_v32 = vpop.eup %3867  ;;  %3893 = vrcp.f32 %v1803_v17  ;;  %v1806_v33 = vadd.f32 1.0, %v3866_v30 }
 0x127   : > { %v3870_v60 = vpop.eup %3869  ;;  %3895 = vrcp.f32 %v1742_v53  ;;  %v1740_v21 = vadd.f32 1.0, %v3868_v32  ;;  %v3160_v53 = vmul.f32 -1.442695, %v4668_v36 }
 0x128   : > { %v3872_v1 = vpop.eup %3871  ;;  %3897 = vrcp.f32 %v1806_v33  ;;  %v1804_v41 = vadd.f32 1.0, %v3870_v60  ;;  %v3094_v60 = vmul.f32 -1.442695, %v4670_v3 }
 0x129   : > { %v3874_v63 = vpop.eup %3873  ;;  %3899 = vrcp.f32 %v1740_v21  ;;  %v1745_v23 = vadd.f32 1.0, %v3872_v1 }
 0x12a   : > { %v3876_v25 = vpop.eup %3875  ;;  %3901 = vrcp.f32 %v1804_v41  ;;  %v1809_v12 = vadd.f32 1.0, %v3874_v63  ;;  %v3158_v41 = vmul.f32 -1.442695, %v4672_v20  ;;  %v4700_v63 = vpop.f32.mrf.mxu0 }
 0x12b   : > { %v3878_v48 = vpop.eup %3877  ;;  %3903 = vrcp.f32 %v1745_v23  ;;  %v1743_v49 = vadd.f32 1.0, %v3876_v25 }
 0x12c   : > { %v3880_v5 = vpop.eup %3879  ;;  %3905 = vrcp.f32 %v1809_v12  ;;  %v1807_v51 = vadd.f32 1.0, %v3878_v48  ;;  %v3099_v12 = vmul.f32 -1.442695, %v4674_v57  ;;  %v4706_v48 = vpop.f32.mrf.mxu1 }
 0x12d   : > { %v3882_v52 = vpop.eup %3881  ;;  %3907 = vrcp.f32 %v1743_v49  ;;  %v1746_v38 = vadd.f32 1.0, %v3880_v5 }
 0x12e   : > { %v3884_v54 = vpop.eup %3883  ;;  %3909 = vrcp.f32 %v1807_v51  ;;  %v1810_v7 = vadd.f32 1.0, %v3882_v52  ;;  %v3163_v51 = vmul.f32 -1.442695, %v4677_v62 }
 0x12f   : > { %v3886_v31 = vpop.eup %3885  ;;  %3911 = vrcp.f32 %v1746_v38  ;;  %v1744_v44 = vadd.f32 1.0, %v3884_v54  ;;  %v3097_v54 = vmul.f32 -1.442695, %v4684_v18 }
 0x130   : > { %v3888_v56 = vpop.eup %3887  ;;  %3913 = vrcp.f32 %v1810_v7  ;;  %v1808_v37 = vadd.f32 1.0, %v3886_v31 }
 0x131   : > { %v3890_v61 = vpop.eup %3889  ;;  %v2125_v2 = vmul.f32 %v3888_v56, %v4548_v45  ;;  %3915 = vrcp.f32 %v1744_v44  ;;  %v3096_v45 = vmul.f32 -1.442695, %v4666_v35  ;;  %v3161_v44 = vmul.f32 -1.442695, %v4688_v22 }
 0x132   : > { %v3892_v13 = vpop.eup %3891  ;;  %v2189_v6 = vmul.f32 %v3890_v61, %v4553_v47  ;;  %3917 = vrcp.f32 %v1808_v37  ;;  %v4726_v61 = vpop.f32.mrf.mxu1 }
 0x133   : > { %v3894_v43 = vpop.eup %3893  ;;  %v3347_v16 = vpack.c.bf16 %v2125_v2, %v2125_v2  ;;  %v2123_v28 = vmul.f32 %v3892_v13, %v4562_v55  ;;  %3919 = vpow2.f32 %v3095_v34  ;;  %v4720_v34 = vpop.f32.mrf.mxu0  ;;  %v3164_v13 = vmul.f32 -1.442695, %v4706_v48 }
 0x134   : > { %v3896_v17 = vpop.eup %3895  ;;  %v3411_v30 = vpack.c.bf16 %v2189_v6, %v2189_v6  ;;  %v2187_v47 = vmul.f32 %v3894_v43, %v4566_v9  ;;  %3921 = vpow2.f32 %v3159_v0  ;;  %v3100_v0 = vmul.f32 -1.442695, %v4700_v63 }
 0x135   : > { %v3898_v32 = vpop.eup %3897  ;;  %2766 = vst.msk [vmem:[%s4488_s19 + $0x48] sm:$0xf] %vm2747_vm1, %v3347_v16  ;;  %v3345_v33 = vpack.c.bf16 %v2123_v28, %v2123_v28  ;;  %v2126_v55 = vmul.f32 %v3896_v17, %v4570_v4  ;;  %3923 = vpow2.f32 %v3093_v40  ;;  %v3098_v43 = vmul.f32 -1.442695, %v4720_v34  ;;  %v4740_v17 = vpop.f32.mrf.mxu0 }
 0x136   : > { %v3900_v21 = vpop.eup %3899  ;;  %2830 = vst.msk [vmem:[%s4488_s19 + $0x148] sm:$0xf] %vm2747_vm1, %v3411_v30  ;;  %v3409_v1 = vpack.c.bf16 %v2187_v47, %v2187_v47  ;;  %v2190_v9 = vmul.f32 %v3898_v32, %v4572_v8  ;;  %3925 = vpow2.f32 %v3157_v10 }
 0x137   : > { %v3902_v23 = vpop.eup %3901  ;;  %2764 = vst.msk [vmem:[%s4488_s19 + $0x40] sm:$0xf] %vm2747_vm1, %v3345_v33  ;;  %v3348_v4 = vpack.c.bf16 %v2126_v55, %v2126_v55  ;;  %v2124_v25 = vmul.f32 %v3900_v21, %v4574_v24  ;;  %3927 = vpow2.f32 %v3096_v45  ;;  %v3162_v45 = vmul.f32 -1.442695, %v4726_v61 }
 0x138   : > { %v3904_v49 = vpop.eup %3903  ;;  %2828 = vst.msk [vmem:[%s4488_s19 + $0x140] sm:$0xf] %vm2747_vm1, %v3409_v1  ;;  %v3412_v8 = vpack.c.bf16 %v2190_v9, %v2190_v9  ;;  %v2188_v5 = vmul.f32 %v3902_v23, %v4576_v19  ;;  %3929 = vpow2.f32 %v3160_v53  ;;  %v4745_v53 = vpop.f32.mrf.mxu1 }
 0x139   : > { %v3906_v52 = vpop.eup %3905  ;;  %2767 = vst.msk [vmem:[%s4488_s19 + $0x4c] sm:$0xf] %vm2747_vm1, %v3348_v4  ;;  %v3346_v24 = vpack.c.bf16 %v2124_v25, %v2124_v25  ;;  %v2129_v38 = vmul.f32 %v3904_v49, %v4578_v39  ;;  %3931 = vpow2.f32 %v3094_v60 }
 0x13a   : > { %v3908_v7 = vpop.eup %3907  ;;  %2831 = vst.msk [vmem:[%s4488_s19 + $0x14c] sm:$0xf] %vm2747_vm1, %v3412_v8  ;;  %v3410_v31 = vpack.c.bf16 %v2188_v5, %v2188_v5  ;;  %v2193_v19 = vmul.f32 %v3906_v52, %v4581_v46  ;;  %3933 = vpow2.f32 %v3158_v41  ;;  %v4754_v41 = vpop.f32.mrf.mxu0 }
 0x13b   : > { %v3910_v56 = vpop.eup %3909  ;;  %2765 = vst.msk [vmem:[%s4488_s19 + $0x44] sm:$0xf] %vm2747_vm1, %v3346_v24  ;;  %v3351_v39 = vpack.c.bf16 %v2129_v38, %v2129_v38  ;;  %v2127_v37 = vmul.f32 %v3908_v7, %v4588_v29  ;;  %3935 = vpow2.f32 %v3099_v12  ;;  %v4758_v4 = vpop.f32.mrf.mxu1 }
 0x13c   : > { %v3912_v2 = vpop.eup %3911  ;;  %2829 = vst.msk [vmem:[%s4488_s19 + $0x144] sm:$0xf] %vm2747_vm1, %v3410_v31  ;;  %v3415_v46 = vpack.c.bf16 %v2193_v19, %v2193_v19  ;;  %v2191_v40 = vmul.f32 %v3910_v56, %v4592_v58  ;;  %3937 = vpow2.f32 %v3163_v51  ;;  %v4762_v52 = vpop.f32.mrf.mxu0 }
 0x13d   : > { %v3914_v6 = vpop.eup %3913  ;;  %2770 = vst.msk [vmem:[%s4488_s19 + $0x58] sm:$0xf] %vm2747_vm1, %v3351_v39  ;;  %v3349_v29 = vpack.c.bf16 %v2127_v37, %v2127_v37  ;;  %v2130_v10 = vmul.f32 %v3912_v2, %v4604_v15  ;;  %3939 = vpow2.f32 %v3097_v54  ;;  %v4764_v54 = vpop.f32.mrf.mxu1 }
 0x13e   : > { %v3916_v16 = vpop.eup %3915  ;;  %2834 = vst.msk [vmem:[%s4488_s19 + $0x158] sm:$0xf] %vm2747_vm1, %v3415_v46  ;;  %v3413_v28 = vpack.c.bf16 %v2191_v40, %v2191_v40  ;;  %v2194_v58 = vmul.f32 %v3914_v6, %v4610_v26  ;;  %3941 = vpow2.f32 %v3161_v44  ;;  %v4766_v37 = vpop.f32.mrf.mxu0 }
 0x13f   : > { %v3918_v30 = vpop.eup %3917  ;;  %2768 = vst.msk [vmem:[%s4488_s19 + $0x50] sm:$0xf] %vm2747_vm1, %v3349_v29  ;;  %v3352_v15 = vpack.c.bf16 %v2130_v10, %v2130_v10  ;;  %v2128_v47 = vmul.f32 %v3916_v16, %v4624_v42  ;;  %3943 = vpow2.f32 %v3100_v0  ;;  %v4768_v46 = vpop.f32.mrf.mxu1 }
 0x140   : > { %v3920_v32 = vpop.eup %3919  ;;  %2832 = vst.msk [vmem:[%s4488_s19 + $0x150] sm:$0xf] %vm2747_vm1, %v3413_v28  ;;  %v3416_v26 = vpack.c.bf16 %v2194_v58, %v2194_v58  ;;  %v2192_v33 = vmul.f32 %v3918_v30, %v4630_v27  ;;  %3945 = vpow2.f32 %v3164_v13  ;;  %v4770_v16 = vpop.f32.mrf.mxu0 }
 0x141   : > { %v3922_v55 = vpop.eup %3921  ;;  %2771 = vst.msk [vmem:[%s4488_s19 + $0x5c] sm:$0xf] %vm2747_vm1, %v3352_v15  ;;  %v3350_v60 = vpack.c.bf16 %v2128_v47, %v2128_v47  ;;  %v1749_v21 = vadd.f32 1.0, %v3920_v32  ;;  %3947 = vpow2.f32 %v3098_v43  ;;  %v4773_v30 = vpop.f32.mrf.mxu1  ;;  %v3167_v32 = vmul.f32 -1.442695, %v4745_v53 }
 0x142   : > { %v3924_v1 = vpop.eup %3923  ;;  %2835 = vst.msk [vmem:[%s4488_s19 + $0x15c] sm:$0xf] %vm2747_vm1, %v3416_v26  ;;  %v3414_v42 = vpack.c.bf16 %v2192_v33, %v2192_v33  ;;  %v1813_v9 = vadd.f32 1.0, %v3922_v55  ;;  %3949 = vpow2.f32 %v3162_v45  ;;  %v3103_v45 = vmul.f32 -1.442695, %v4740_v17 }
 0x143   : > { %v3926_v23 = vpop.eup %3925  ;;  %2769 = vst.msk [vmem:[%s4488_s19 + $0x54] sm:$0xf] %vm2747_vm1, %v3350_v60  ;;  %3951 = vrcp.f32 %v1749_v21  ;;  %v1747_v27 = vadd.f32 1.0, %v3924_v1  ;;  %v3101_v55 = vmul.f32 -1.442695, %v4754_v41 }
 0x144   : > { %v3928_v25 = vpop.eup %3927  ;;  %2833 = vst.msk [vmem:[%s4488_s19 + $0x154] sm:$0xf] %vm2747_vm1, %v3414_v42  ;;  %3953 = vrcp.f32 %v1813_v9  ;;  %v1811_v12 = vadd.f32 1.0, %v3926_v23  ;;  %v3165_v1 = vmul.f32 -1.442695, %v4758_v4  ;;  %v4780_v42 = vpop.f32.mrf.mxu0 }
 0x145   : > { %v3930_v49 = vpop.eup %3929  ;;  %3955 = vrcp.f32 %v1747_v27  ;;  %v1750_v8 = vadd.f32 1.0, %v3928_v25  ;;  %v4784_v25 = vpop.f32.mrf.mxu1 }
 0x146   : > { %v3932_v5 = vpop.eup %3931  ;;  %3957 = vrcp.f32 %v1811_v12  ;;  %v1814_v51 = vadd.f32 1.0, %v3930_v49 }
 0x147   : > { %v3934_v24 = vpop.eup %3933  ;;  %3959 = vrcp.f32 %v1750_v8  ;;  %v1748_v38 = vadd.f32 1.0, %v3932_v5  ;;  %v3168_v8 = vmul.f32 -1.442695, %v4764_v54 }
 0x148   : > { %v3936_v7 = vpop.eup %3935  ;;  %3961 = vrcp.f32 %v1814_v51  ;;  %v1812_v31 = vadd.f32 1.0, %v3934_v24  ;;  %v3102_v24 = vmul.f32 -1.442695, %v4766_v37 }
 0x149   : > { %v3938_v19 = vpop.eup %3937  ;;  %3963 = vrcp.f32 %v1748_v38  ;;  %v1753_v44 = vadd.f32 1.0, %v3936_v7 }
 0x14a   : > { %v3940_v56 = vpop.eup %3939  ;;  %3965 = vrcp.f32 %v1812_v31  ;;  %v1817_v39 = vadd.f32 1.0, %v3938_v19  ;;  %v3166_v31 = vmul.f32 -1.442695, %v4768_v46  ;;  %v4796_v19 = vpop.f32.mrf.mxu0 }
 0x14b   : > { %v3942_v0 = vpop.eup %3941  ;;  %3967 = vrcp.f32 %v1753_v44  ;;  %v1751_v2 = vadd.f32 1.0, %v3940_v56 }
 0x14c   : > { %v3944_v40 = vpop.eup %3943  ;;  %3969 = vrcp.f32 %v1817_v39  ;;  %v1815_v13 = vadd.f32 1.0, %v3942_v0  ;;  %v3107_v39 = vmul.f32 -1.442695, %v4770_v16  ;;  %v4802_v0 = vpop.f32.mrf.mxu1 }
 0x14d   : > { %v3946_v6 = vpop.eup %3945  ;;  %3971 = vrcp.f32 %v1751_v2  ;;  %v1754_v29 = vadd.f32 1.0, %v3944_v40 }
 0x14e   : > { %v3948_v10 = vpop.eup %3947  ;;  %3973 = vrcp.f32 %v1815_v13  ;;  %v1818_v43 = vadd.f32 1.0, %v3946_v6  ;;  %v3171_v13 = vmul.f32 -1.442695, %v4773_v30 }
 0x14f   : > { %v3950_v28 = vpop.eup %3949  ;;  %3975 = vrcp.f32 %v1754_v29  ;;  %v1752_v58 = vadd.f32 1.0, %v3948_v10  ;;  %v3105_v10 = vmul.f32 -1.442695, %v4780_v42 }
 0x150   : > { %v3952_v15 = vpop.eup %3951  ;;  %3977 = vrcp.f32 %v1818_v43  ;;  %v1816_v47 = vadd.f32 1.0, %v3950_v28 }
 0x151   : > { %v3954_v26 = vpop.eup %3953  ;;  %v2133_v33 = vmul.f32 %v3952_v15, %v4644_v59  ;;  %3979 = vrcp.f32 %v1752_v58  ;;  %v3104_v59 = vmul.f32 -1.442695, %v4762_v52  ;;  %v3169_v58 = vmul.f32 -1.442695, %v4784_v25 }
 0x152   : > { %v3956_v60 = vpop.eup %3955  ;;  %v2197_v21 = vmul.f32 %v3954_v26, %v4649_v11  ;;  %3981 = vrcp.f32 %v1816_v47  ;;  %v4822_v26 = vpop.f32.mrf.mxu1 }
 0x153   : > { %v3958_v9 = vpop.eup %3957  ;;  %v3355_v23 = vpack.c.bf16 %v2133_v33, %v2133_v33  ;;  %v2131_v27 = vmul.f32 %v3956_v60, %v4658_v14  ;;  %3983 = vpow2.f32 %v3103_v45  ;;  %v4816_v45 = vpop.f32.mrf.mxu0  ;;  %v3172_v60 = vmul.f32 -1.442695, %v4802_v0 }
 0x154   : > { %v3960_v12 = vpop.eup %3959  ;;  %v3419_v49 = vpack.c.bf16 %v2197_v21, %v2197_v21  ;;  %v2195_v11 = vmul.f32 %v3958_v9, %v4662_v50  ;;  %3985 = vpow2.f32 %v3167_v32  ;;  %v3108_v32 = vmul.f32 -1.442695, %v4796_v19 }
 0x155   : > { %v3962_v5 = vpop.eup %3961  ;;  %2774 = vst.msk [vmem:[%s4488_s19 + $0x68] sm:$0xf] %vm2747_vm1, %v3355_v23  ;;  %v3353_v51 = vpack.c.bf16 %v2131_v27, %v2131_v27  ;;  %v2134_v14 = vmul.f32 %v3960_v12, %v4666_v35  ;;  %3987 = vpow2.f32 %v3101_v55  ;;  %v3106_v9 = vmul.f32 -1.442695, %v4816_v45  ;;  %v4836_v12 = vpop.f32.mrf.mxu0 }
 0x156   : > { %v3964_v38 = vpop.eup %3963  ;;  %2838 = vst.msk [vmem:[%s4488_s19 + $0x168] sm:$0xf] %vm2747_vm1, %v3419_v49  ;;  %v3417_v7 = vpack.c.bf16 %v2195_v11, %v2195_v11  ;;  %v2198_v50 = vmul.f32 %v3962_v5, %v4668_v36  ;;  %3989 = vpow2.f32 %v3165_v1 }
 0x157   : > { %v3966_v44 = vpop.eup %3965  ;;  %2772 = vst.msk [vmem:[%s4488_s19 + $0x60] sm:$0xf] %vm2747_vm1, %v3353_v51  ;;  %v3356_v35 = vpack.c.bf16 %v2134_v14, %v2134_v14  ;;  %v2132_v56 = vmul.f32 %v3964_v38, %v4670_v3  ;;  %3991 = vpow2.f32 %v3104_v59  ;;  %v3170_v59 = vmul.f32 -1.442695, %v4822_v26 }
 0x158   : > { %v3968_v2 = vpop.eup %3967  ;;  %2836 = vst.msk [vmem:[%s4488_s19 + $0x160] sm:$0xf] %vm2747_vm1, %v3417_v7  ;;  %v3420_v36 = vpack.c.bf16 %v2198_v50, %v2198_v50  ;;  %v2196_v40 = vmul.f32 %v3966_v44, %v4672_v20  ;;  %3993 = vpow2.f32 %v3168_v8  ;;  %v4841_v8 = vpop.f32.mrf.mxu1 }
 0x159   : > { %v3970_v6 = vpop.eup %3969  ;;  %2775 = vst.msk [vmem:[%s4488_s19 + $0x6c] sm:$0xf] %vm2747_vm1, %v3356_v35  ;;  %v3354_v3 = vpack.c.bf16 %v2132_v56, %v2132_v56  ;;  %v2137_v29 = vmul.f32 %v3968_v2, %v4674_v57  ;;  %3995 = vpow2.f32 %v3102_v24 }
 0x15a   : > { %v3972_v43 = vpop.eup %3971  ;;  %2839 = vst.msk [vmem:[%s4488_s19 + $0x16c] sm:$0xf] %vm2747_vm1, %v3420_v36  ;;  %v3418_v28 = vpack.c.bf16 %v2196_v40, %v2196_v40  ;;  %v2201_v20 = vmul.f32 %v3970_v6, %v4677_v62  ;;  %3997 = vpow2.f32 %v3166_v31  ;;  %v4850_v31 = vpop.f32.mrf.mxu0 }
 0x15b   : > { %v3974_v15 = vpop.eup %3973  ;;  %2773 = vst.msk [vmem:[%s4488_s19 + $0x64] sm:$0xf] %vm2747_vm1, %v3354_v3  ;;  %v3359_v57 = vpack.c.bf16 %v2137_v29, %v2137_v29  ;;  %v2135_v47 = vmul.f32 %v3972_v43, %v4684_v18  ;;  %3999 = vpow2.f32 %v3107_v39  ;;  %v4854_v35 = vpop.f32.mrf.mxu1 }
 0x15c   : > { %v3976_v33 = vpop.eup %3975  ;;  %2837 = vst.msk [vmem:[%s4488_s19 + $0x164] sm:$0xf] %vm2747_vm1, %v3418_v28  ;;  %v3423_v62 = vpack.c.bf16 %v2201_v20, %v2201_v20  ;;  %v2199_v55 = vmul.f32 %v3974_v15, %v4688_v22  ;;  %4001 = vpow2.f32 %v3171_v13  ;;  %v4858_v6 = vpop.f32.mrf.mxu0 }
 0x15d   : > { %v3978_v21 = vpop.eup %3977  ;;  %2778 = vst.msk [vmem:[%s4488_s19 + $0x78] sm:$0xf] %vm2747_vm1, %v3359_v57  ;;  %v3357_v18 = vpack.c.bf16 %v2135_v47, %v2135_v47  ;;  %v2138_v1 = vmul.f32 %v3976_v33, %v4700_v63  ;;  %4003 = vpow2.f32 %v3105_v10  ;;  %v4860_v10 = vpop.f32.mrf.mxu1 }
 0x15e   : > { %v3980_v23 = vpop.eup %3979  ;;  %2842 = vst.msk [vmem:[%s4488_s19 + $0x178] sm:$0xf] %vm2747_vm1, %v3423_v62  ;;  %v3421_v27 = vpack.c.bf16 %v2199_v55, %v2199_v55  ;;  %v2202_v22 = vmul.f32 %v3978_v21, %v4706_v48  ;;  %4005 = vpow2.f32 %v3169_v58  ;;  %v4862_v47 = vpop.f32.mrf.mxu0 }
 0x15f   : > { %v3982_v49 = vpop.eup %3981  ;;  %2776 = vst.msk [vmem:[%s4488_s19 + $0x70] sm:$0xf] %vm2747_vm1, %v3357_v18  ;;  %v3360_v63 = vpack.c.bf16 %v2138_v1, %v2138_v1  ;;  %v2136_v11 = vmul.f32 %v3980_v23, %v4720_v34  ;;  %4007 = vpow2.f32 %v3108_v32  ;;  %v4864_v62 = vpop.f32.mrf.mxu1 }
 0x160   : > { %v3984_v5 = vpop.eup %3983  ;;  %2840 = vst.msk [vmem:[%s4488_s19 + $0x170] sm:$0xf] %vm2747_vm1, %v3421_v27  ;;  %v3424_v48 = vpack.c.bf16 %v2202_v22, %v2202_v22  ;;  %v2200_v51 = vmul.f32 %v3982_v49, %v4726_v61  ;;  %4009 = vpow2.f32 %v3172_v60  ;;  %v4866_v23 = vpop.f32.mrf.mxu0 }
 0x161   : > { %v3986_v14 = vpop.eup %3985  ;;  %2779 = vst.msk [vmem:[%s4488_s19 + $0x7c] sm:$0xf] %vm2747_vm1, %v3360_v63  ;;  %v3358_v24 = vpack.c.bf16 %v2136_v11, %v2136_v11  ;;  %v1757_v38 = vadd.f32 1.0, %v3984_v5  ;;  %4011 = vpow2.f32 %v3106_v9  ;;  %v4869_v49 = vpop.f32.mrf.mxu1  ;;  %v3175_v5 = vmul.f32 -1.442695, %v4841_v8 }
 0x162   : > { %v3988_v7 = vpop.eup %3987  ;;  %2843 = vst.msk [vmem:[%s4488_s19 + $0x17c] sm:$0xf] %vm2747_vm1, %v3424_v48  ;;  %v3422_v34 = vpack.c.bf16 %v2200_v51, %v2200_v51  ;;  %v1821_v50 = vadd.f32 1.0, %v3986_v14  ;;  %4013 = vpow2.f32 %v3170_v59  ;;  %v3111_v59 = vmul.f32 -1.442695, %v4836_v12 }
 0x163   : > { %v3990_v44 = vpop.eup %3989  ;;  %2777 = vst.msk [vmem:[%s4488_s19 + $0x74] sm:$0xf] %vm2747_vm1, %v3358_v24  ;;  %4015 = vrcp.f32 %v1757_v38  ;;  %v1755_v61 = vadd.f32 1.0, %v3988_v7  ;;  %v3109_v14 = vmul.f32 -1.442695, %v4850_v31 }
 0x164   : > { %v3992_v56 = vpop.eup %3991  ;;  %2841 = vst.msk [vmem:[%s4488_s19 + $0x174] sm:$0xf] %vm2747_vm1, %v3422_v34  ;;  %4017 = vrcp.f32 %v1821_v50  ;;  %v1819_v39 = vadd.f32 1.0, %v3990_v44  ;;  %v3173_v7 = vmul.f32 -1.442695, %v4854_v35  ;;  %v4876_v34 = vpop.f32.mrf.mxu0 }
 0x165   : > { %v3994_v2 = vpop.eup %3993  ;;  %4019 = vrcp.f32 %v1755_v61  ;;  %v1758_v36 = vadd.f32 1.0, %v3992_v56  ;;  %v4880_v56 = vpop.f32.mrf.mxu1 }
 0x166   : > { %v3996_v40 = vpop.eup %3995  ;;  %4021 = vrcp.f32 %v1819_v39  ;;  %v1822_v13 = vadd.f32 1.0, %v3994_v2 }
 0x167   : > { %v3998_v3 = vpop.eup %3997  ;;  %4023 = vrcp.f32 %v1758_v36  ;;  %v1756_v29 = vadd.f32 1.0, %v3996_v40  ;;  %v3176_v36 = vmul.f32 -1.442695, %v4860_v10 }
 0x168   : > { %v4000_v43 = vpop.eup %3999  ;;  %4025 = vrcp.f32 %v1822_v13  ;;  %v1820_v28 = vadd.f32 1.0, %v3998_v3  ;;  %v3110_v3 = vmul.f32 -1.442695, %v4862_v47 }
 0x169   : > { %v4002_v20 = vpop.eup %4001  ;;  %4027 = vrcp.f32 %v1756_v29  ;;  %v1761_v58 = vadd.f32 1.0, %v4000_v43 }
 0x16a   : > { %v4004_v15 = vpop.eup %4003  ;;  %4029 = vrcp.f32 %v1820_v28  ;;  %v1825_v57 = vadd.f32 1.0, %v4002_v20  ;;  %v3174_v28 = vmul.f32 -1.442695, %v4864_v62  ;;  %v4892_v20 = vpop.f32.mrf.mxu0 }
 0x16b   : > { %v4006_v32 = vpop.eup %4005  ;;  %4031 = vrcp.f32 %v1761_v58  ;;  %v1759_v33 = vadd.f32 1.0, %v4004_v15 }
 0x16c   : > { %v4008_v55 = vpop.eup %4007  ;;  %4033 = vrcp.f32 %v1825_v57  ;;  %v1823_v60 = vadd.f32 1.0, %v4006_v32  ;;  %v3115_v57 = vmul.f32 -1.442695, %v4866_v23  ;;  %v4898_v32 = vpop.f32.mrf.mxu1 }
 0x16d   : > { %v4010_v21 = vpop.eup %4009  ;;  %4035 = vrcp.f32 %v1759_v33  ;;  %v1762_v18 = vadd.f32 1.0, %v4008_v55 }
 0x16e   : > { %v4012_v1 = vpop.eup %4011  ;;  %4037 = vrcp.f32 %v1823_v60  ;;  %v1826_v9 = vadd.f32 1.0, %v4010_v21  ;;  %v3179_v60 = vmul.f32 -1.442695, %v4869_v49 }
 0x16f   : > { %v4014_v27 = vpop.eup %4013  ;;  %4039 = vrcp.f32 %v1762_v18  ;;  %v1760_v22 = vadd.f32 1.0, %v4012_v1  ;;  %v3113_v1 = vmul.f32 -1.442695, %v4876_v34 }
 0x170   : > { %v4016_v63 = vpop.eup %4015  ;;  %4041 = vrcp.f32 %v1826_v9  ;;  %v1824_v11 = vadd.f32 1.0, %v4014_v27 }
 0x171   : > { %v4018_v48 = vpop.eup %4017  ;;  %v2141_v51 = vmul.f32 %v4016_v63, %v4740_v17  ;;  %4043 = vrcp.f32 %v1760_v22  ;;  %v3112_v17 = vmul.f32 -1.442695, %v4858_v6  ;;  %v3177_v22 = vmul.f32 -1.442695, %v4880_v56 }
 0x172   : > { %v4020_v24 = vpop.eup %4019  ;;  %v2205_v38 = vmul.f32 %v4018_v48, %v4745_v53  ;;  %4045 = vrcp.f32 %v1824_v11  ;;  %v4918_v48 = vpop.f32.mrf.mxu1 }
 0x173   : > { %v4022_v50 = vpop.eup %4021  ;;  %v3363_v44 = vpack.c.bf16 %v2141_v51, %v2141_v51  ;;  %v2139_v61 = vmul.f32 %v4020_v24, %v4754_v41  ;;  %4047 = vpow2.f32 %v3111_v59  ;;  %v4912_v59 = vpop.f32.mrf.mxu0  ;;  %v3180_v24 = vmul.f32 -1.442695, %v4898_v32 }
 0x174   : > { %v4024_v39 = vpop.eup %4023  ;;  %v3427_v2 = vpack.c.bf16 %v2205_v38, %v2205_v38  ;;  %v2203_v53 = vmul.f32 %v4022_v50, %v4758_v4  ;;  %4049 = vpow2.f32 %v3175_v5  ;;  %v3116_v5 = vmul.f32 -1.442695, %v4892_v20 }
 0x175   : > { %v4026_v40 = vpop.eup %4025  ;;  %2782 = vst.msk [vmem:[%s4488_s19 + $0x88] sm:$0xf] %vm2747_vm1, %v3363_v44  ;;  %v3361_v13 = vpack.c.bf16 %v2139_v61, %v2139_v61  ;;  %v2142_v41 = vmul.f32 %v4024_v39, %v4762_v52  ;;  %4051 = vpow2.f32 %v3109_v14  ;;  %v3114_v50 = vmul.f32 -1.442695, %v4912_v59  ;;  %v4932_v39 = vpop.f32.mrf.mxu0 }
 0x176   : > { %v4028_v29 = vpop.eup %4027  ;;  %2846 = vst.msk [vmem:[%s4488_s19 + $0x188] sm:$0xf] %vm2747_vm1, %v3427_v2  ;;  %v3425_v43 = vpack.c.bf16 %v2203_v53, %v2203_v53  ;;  %v2206_v4 = vmul.f32 %v4026_v40, %v4764_v54  ;;  %4053 = vpow2.f32 %v3173_v7 }
 0x177   : > { %v4030_v58 = vpop.eup %4029  ;;  %2780 = vst.msk [vmem:[%s4488_s19 + $0x80] sm:$0xf] %vm2747_vm1, %v3361_v13  ;;  %v3364_v52 = vpack.c.bf16 %v2142_v41, %v2142_v41  ;;  %v2140_v15 = vmul.f32 %v4028_v29, %v4766_v37  ;;  %4055 = vpow2.f32 %v3112_v17  ;;  %v3178_v17 = vmul.f32 -1.442695, %v4918_v48 }
 0x178   : > { %v4032_v33 = vpop.eup %4031  ;;  %2844 = vst.msk [vmem:[%s4488_s19 + $0x180] sm:$0xf] %vm2747_vm1, %v3425_v43  ;;  %v3428_v54 = vpack.c.bf16 %v2206_v4, %v2206_v4  ;;  %v2204_v55 = vmul.f32 %v4030_v58, %v4768_v46  ;;  %4057 = vpow2.f32 %v3176_v36  ;;  %v4937_v36 = vpop.f32.mrf.mxu1 }
 0x179   : > { %v4034_v21 = vpop.eup %4033  ;;  %2783 = vst.msk [vmem:[%s4488_s19 + $0x8c] sm:$0xf] %vm2747_vm1, %v3364_v52  ;;  %v3362_v37 = vpack.c.bf16 %v2140_v15, %v2140_v15  ;;  %v2145_v18 = vmul.f32 %v4032_v33, %v4770_v16  ;;  %4059 = vpow2.f32 %v3110_v3 }
 0x17a   : > { %v4036_v9 = vpop.eup %4035  ;;  %2847 = vst.msk [vmem:[%s4488_s19 + $0x18c] sm:$0xf] %vm2747_vm1, %v3428_v54  ;;  %v3426_v27 = vpack.c.bf16 %v2204_v55, %v2204_v55  ;;  %v2209_v46 = vmul.f32 %v4034_v21, %v4773_v30  ;;  %4061 = vpow2.f32 %v3174_v28  ;;  %v4946_v28 = vpop.f32.mrf.mxu0 }
 0x17b   : > { %v4038_v63 = vpop.eup %4037  ;;  %2781 = vst.msk [vmem:[%s4488_s19 + $0x84] sm:$0xf] %vm2747_vm1, %v3362_v37  ;;  %v3367_v16 = vpack.c.bf16 %v2145_v18, %v2145_v18  ;;  %v2143_v11 = vmul.f32 %v4036_v9, %v4780_v42  ;;  %4063 = vpow2.f32 %v3115_v57  ;;  %v4950_v52 = vpop.f32.mrf.mxu1 }
 0x17c   : > { %v4040_v51 = vpop.eup %4039  ;;  %2845 = vst.msk [vmem:[%s4488_s19 + $0x184] sm:$0xf] %vm2747_vm1, %v3426_v27  ;;  %v3431_v30 = vpack.c.bf16 %v2209_v46, %v2209_v46  ;;  %v2207_v14 = vmul.f32 %v4038_v63, %v4784_v25  ;;  %4065 = vpow2.f32 %v3179_v60  ;;  %v4954_v21 = vpop.f32.mrf.mxu0 }
 0x17d   : > { %v4042_v38 = vpop.eup %4041  ;;  %2786 = vst.msk [vmem:[%s4488_s19 + $0x98] sm:$0xf] %vm2747_vm1, %v3367_v16  ;;  %v3365_v42 = vpack.c.bf16 %v2143_v11, %v2143_v11  ;;  %v2146_v7 = vmul.f32 %v4040_v51, %v4796_v19  ;;  %4067 = vpow2.f32 %v3113_v1  ;;  %v4956_v1 = vpop.f32.mrf.mxu1 }
 0x17e   : > { %v4044_v44 = vpop.eup %4043  ;;  %2850 = vst.msk [vmem:[%s4488_s19 + $0x198] sm:$0xf] %vm2747_vm1, %v3431_v30  ;;  %v3429_v61 = vpack.c.bf16 %v2207_v14, %v2207_v14  ;;  %v2210_v25 = vmul.f32 %v4042_v38, %v4802_v0  ;;  %4069 = vpow2.f32 %v3177_v22  ;;  %v4958_v11 = vpop.f32.mrf.mxu0 }
 0x17f   : > { %v4046_v2 = vpop.eup %4045  ;;  %2784 = vst.msk [vmem:[%s4488_s19 + $0x90] sm:$0xf] %vm2747_vm1, %v3365_v42  ;;  %v3368_v19 = vpack.c.bf16 %v2146_v7, %v2146_v7  ;;  %v2144_v53 = vmul.f32 %v4044_v44, %v4816_v45  ;;  %4071 = vpow2.f32 %v3116_v5  ;;  %v4960_v30 = vpop.f32.mrf.mxu1 }
 0x180   : > { %v4048_v40 = vpop.eup %4047  ;;  %2848 = vst.msk [vmem:[%s4488_s19 + $0x190] sm:$0xf] %vm2747_vm1, %v3429_v61  ;;  %v3432_v0 = vpack.c.bf16 %v2210_v25, %v2210_v25  ;;  %v2208_v13 = vmul.f32 %v4046_v2, %v4822_v26  ;;  %4073 = vpow2.f32 %v3180_v24  ;;  %v4962_v44 = vpop.f32.mrf.mxu0 }
 0x181   : > { %v4050_v41 = vpop.eup %4049  ;;  %2787 = vst.msk [vmem:[%s4488_s19 + $0x9c] sm:$0xf] %vm2747_vm1, %v3368_v19  ;;  %v3366_v3 = vpack.c.bf16 %v2144_v53, %v2144_v53  ;;  %v1765_v29 = vadd.f32 1.0, %v4048_v40  ;;  %4075 = vpow2.f32 %v3114_v50  ;;  %v4965_v2 = vpop.f32.mrf.mxu1  ;;  %v3183_v40 = vmul.f32 -1.442695, %v4937_v36 }
 0x182   : > { %v4052_v43 = vpop.eup %4051  ;;  %2851 = vst.msk [vmem:[%s4488_s19 + $0x19c] sm:$0xf] %vm2747_vm1, %v3432_v0  ;;  %v3430_v45 = vpack.c.bf16 %v2208_v13, %v2208_v13  ;;  %v1829_v4 = vadd.f32 1.0, %v4050_v41  ;;  %4077 = vpow2.f32 %v3178_v17  ;;  %v3119_v17 = vmul.f32 -1.442695, %v4932_v39 }
 0x183   : > { %v4054_v58 = vpop.eup %4053  ;;  %2785 = vst.msk [vmem:[%s4488_s19 + $0x94] sm:$0xf] %vm2747_vm1, %v3366_v3  ;;  %4079 = vrcp.f32 %v1765_v29  ;;  %v1763_v26 = vadd.f32 1.0, %v4052_v43  ;;  %v3117_v41 = vmul.f32 -1.442695, %v4946_v28 }
 0x184   : > { %v4056_v15 = vpop.eup %4055  ;;  %2849 = vst.msk [vmem:[%s4488_s19 + $0x194] sm:$0xf] %vm2747_vm1, %v3430_v45  ;;  %4081 = vrcp.f32 %v1829_v4  ;;  %v1827_v57 = vadd.f32 1.0, %v4054_v58  ;;  %v3181_v43 = vmul.f32 -1.442695, %v4950_v52  ;;  %v4972_v45 = vpop.f32.mrf.mxu0 }
 0x185   : > { %v4058_v33 = vpop.eup %4057  ;;  %4083 = vrcp.f32 %v1763_v26  ;;  %v1766_v54 = vadd.f32 1.0, %v4056_v15  ;;  %v4976_v15 = vpop.f32.mrf.mxu1 }
 0x186   : > { %v4060_v55 = vpop.eup %4059  ;;  %4085 = vrcp.f32 %v1827_v57  ;;  %v1830_v60 = vadd.f32 1.0, %v4058_v33 }
 0x187   : > { %v4062_v37 = vpop.eup %4061  ;;  %4087 = vrcp.f32 %v1766_v54  ;;  %v1764_v18 = vadd.f32 1.0, %v4060_v55  ;;  %v3184_v54 = vmul.f32 -1.442695, %v4956_v1 }
 0x188   : > { %v4064_v9 = vpop.eup %4063  ;;  %4089 = vrcp.f32 %v1830_v60  ;;  %v1828_v27 = vadd.f32 1.0, %v4062_v37  ;;  %v3118_v37 = vmul.f32 -1.442695, %v4958_v11 }
 0x189   : > { %v4066_v46 = vpop.eup %4065  ;;  %4091 = vrcp.f32 %v1764_v18  ;;  %v1769_v22 = vadd.f32 1.0, %v4064_v9 }
 0x18a   : > { %v4068_v63 = vpop.eup %4067  ;;  %4093 = vrcp.f32 %v1828_v27  ;;  %v1833_v16 = vadd.f32 1.0, %v4066_v46  ;;  %v3182_v27 = vmul.f32 -1.442695, %v4960_v30  ;;  %v4988_v46 = vpop.f32.mrf.mxu0 }
 0x18b   : > { %v4070_v5 = vpop.eup %4069  ;;  %4095 = vrcp.f32 %v1769_v22  ;;  %v1767_v51 = vadd.f32 1.0, %v4068_v63 }
 0x18c   : > { %v4072_v14 = vpop.eup %4071  ;;  %4097 = vrcp.f32 %v1833_v16  ;;  %v1831_v24 = vadd.f32 1.0, %v4070_v5  ;;  %v3123_v16 = vmul.f32 -1.442695, %v4962_v44  ;;  %v4994_v5 = vpop.f32.mrf.mxu1 }
 0x18d   : > { %v4074_v38 = vpop.eup %4073  ;;  %4099 = vrcp.f32 %v1767_v51  ;;  %v1770_v42 = vadd.f32 1.0, %v4072_v14 }
 0x18e   : > { %v4076_v7 = vpop.eup %4075  ;;  %4101 = vrcp.f32 %v1831_v24  ;;  %v1834_v50 = vadd.f32 1.0, %v4074_v38  ;;  %v3187_v24 = vmul.f32 -1.442695, %v4965_v2 }
 0x18f   : > { %v4078_v61 = vpop.eup %4077  ;;  %4103 = vrcp.f32 %v1770_v42  ;;  %v1768_v25 = vadd.f32 1.0, %v4076_v7  ;;  %v3121_v7 = vmul.f32 -1.442695, %v4972_v45 }
 0x190   : > { %v4080_v19 = vpop.eup %4079  ;;  %4105 = vrcp.f32 %v1834_v50  ;;  %v1832_v53 = vadd.f32 1.0, %v4078_v61 }
 0x191   : > { %v4082_v0 = vpop.eup %4081  ;;  %v2149_v13 = vmul.f32 %v4080_v19, %v4836_v12  ;;  %4107 = vrcp.f32 %v1768_v25  ;;  %v3120_v12 = vmul.f32 -1.442695, %v4954_v21  ;;  %v3185_v25 = vmul.f32 -1.442695, %v4976_v15 }
 0x192   : > { %v4084_v3 = vpop.eup %4083  ;;  %v2213_v29 = vmul.f32 %v4082_v0, %v4841_v8  ;;  %4109 = vrcp.f32 %v1832_v53  ;;  %v5014_v0 = vpop.f32.mrf.mxu1 }
 0x193   : > { %v4086_v4 = vpop.eup %4085  ;;  %v3371_v58 = vpack.c.bf16 %v2149_v13, %v2149_v13  ;;  %v2147_v26 = vmul.f32 %v4084_v3, %v4850_v31  ;;  %4111 = vpow2.f32 %v3119_v17  ;;  %v5008_v17 = vpop.f32.mrf.mxu0  ;;  %v3188_v3 = vmul.f32 -1.442695, %v4994_v5 }
 0x194   : > { %v4088_v57 = vpop.eup %4087  ;;  %v3435_v33 = vpack.c.bf16 %v2213_v29, %v2213_v29  ;;  %v2211_v8 = vmul.f32 %v4086_v4, %v4854_v35  ;;  %4113 = vpow2.f32 %v3183_v40  ;;  %v3124_v40 = vmul.f32 -1.442695, %v4988_v46 }
 0x195   : > { %v4090_v55 = vpop.eup %4089  ;;  %2790 = vst.msk [vmem:[%s4488_s19 + $0xa8] sm:$0xf] %vm2747_vm1, %v3371_v58  ;;  %v3369_v60 = vpack.c.bf16 %v2147_v26, %v2147_v26  ;;  %v2150_v31 = vmul.f32 %v4088_v57, %v4858_v6  ;;  %4115 = vpow2.f32 %v3117_v41  ;;  %v3122_v4 = vmul.f32 -1.442695, %v5008_v17  ;;  %v5028_v57 = vpop.f32.mrf.mxu0 }
 0x196   : > { %v4092_v18 = vpop.eup %4091  ;;  %2854 = vst.msk [vmem:[%s4488_s19 + $0x1a8] sm:$0xf] %vm2747_vm1, %v3435_v33  ;;  %v3433_v9 = vpack.c.bf16 %v2211_v8, %v2211_v8  ;;  %v2214_v35 = vmul.f32 %v4090_v55, %v4860_v10  ;;  %4117 = vpow2.f32 %v3181_v43 }
 0x197   : > { %v4094_v22 = vpop.eup %4093  ;;  %2788 = vst.msk [vmem:[%s4488_s19 + $0xa0] sm:$0xf] %vm2747_vm1, %v3369_v60  ;;  %v3372_v6 = vpack.c.bf16 %v2150_v31, %v2150_v31  ;;  %v2148_v63 = vmul.f32 %v4092_v18, %v4862_v47  ;;  %4119 = vpow2.f32 %v3120_v12  ;;  %v3186_v12 = vmul.f32 -1.442695, %v5014_v0 }
 0x198   : > { %v4096_v51 = vpop.eup %4095  ;;  %2852 = vst.msk [vmem:[%s4488_s19 + $0x1a0] sm:$0xf] %vm2747_vm1, %v3433_v9  ;;  %v3436_v10 = vpack.c.bf16 %v2214_v35, %v2214_v35  ;;  %v2212_v14 = vmul.f32 %v4094_v22, %v4864_v62  ;;  %4121 = vpow2.f32 %v3184_v54  ;;  %v5033_v54 = vpop.f32.mrf.mxu1 }
 0x199   : > { %v4098_v38 = vpop.eup %4097  ;;  %2791 = vst.msk [vmem:[%s4488_s19 + $0xac] sm:$0xf] %vm2747_vm1, %v3372_v6  ;;  %v3370_v47 = vpack.c.bf16 %v2148_v63, %v2148_v63  ;;  %v2153_v42 = vmul.f32 %v4096_v51, %v4866_v23  ;;  %4123 = vpow2.f32 %v3118_v37 }
 0x19a   : > { %v4100_v50 = vpop.eup %4099  ;;  %2855 = vst.msk [vmem:[%s4488_s19 + $0x1ac] sm:$0xf] %vm2747_vm1, %v3436_v10  ;;  %v3434_v61 = vpack.c.bf16 %v2212_v14, %v2212_v14  ;;  %v2217_v62 = vmul.f32 %v4098_v38, %v4869_v49  ;;  %4125 = vpow2.f32 %v3182_v27  ;;  %v5042_v27 = vpop.f32.mrf.mxu0 }
 0x19b   : > { %v4102_v19 = vpop.eup %4101  ;;  %2789 = vst.msk [vmem:[%s4488_s19 + $0xa4] sm:$0xf] %vm2747_vm1, %v3370_v47  ;;  %v3375_v23 = vpack.c.bf16 %v2153_v42, %v2153_v42  ;;  %v2151_v53 = vmul.f32 %v4100_v50, %v4876_v34  ;;  %4127 = vpow2.f32 %v3123_v16  ;;  %v5046_v6 = vpop.f32.mrf.mxu1 }
 0x19c   : > { %v4104_v13 = vpop.eup %4103  ;;  %2853 = vst.msk [vmem:[%s4488_s19 + $0x1a4] sm:$0xf] %vm2747_vm1, %v3434_v61  ;;  %v3439_v49 = vpack.c.bf16 %v2217_v62, %v2217_v62  ;;  %v2215_v41 = vmul.f32 %v4102_v19, %v4880_v56  ;;  %4129 = vpow2.f32 %v3187_v24  ;;  %v5050_v38 = vpop.f32.mrf.mxu0 }
 0x19d   : > { %v4106_v29 = vpop.eup %4105  ;;  %2794 = vst.msk [vmem:[%s4488_s19 + $0xb8] sm:$0xf] %vm2747_vm1, %v3375_v23  ;;  %v3373_v34 = vpack.c.bf16 %v2151_v53, %v2151_v53  ;;  %v2154_v43 = vmul.f32 %v4104_v13, %v4892_v20  ;;  %4131 = vpow2.f32 %v3121_v7  ;;  %v5052_v7 = vpop.f32.mrf.mxu1 }
 0x19e   : > { %v4108_v58 = vpop.eup %4107  ;;  %2858 = vst.msk [vmem:[%s4488_s19 + $0x1b8] sm:$0xf] %vm2747_vm1, %v3439_v49  ;;  %v3437_v26 = vpack.c.bf16 %v2215_v41, %v2215_v41  ;;  %v2218_v56 = vmul.f32 %v4106_v29, %v4898_v32  ;;  %4133 = vpow2.f32 %v3185_v25  ;;  %v5054_v53 = vpop.f32.mrf.mxu0 }
 0x19f   : > { %v4110_v33 = vpop.eup %4109  ;;  %2792 = vst.msk [vmem:[%s4488_s19 + $0xb0] sm:$0xf] %vm2747_vm1, %v3373_v34  ;;  %v3376_v20 = vpack.c.bf16 %v2154_v43, %v2154_v43  ;;  %v2152_v8 = vmul.f32 %v4108_v58, %v4912_v59  ;;  %4135 = vpow2.f32 %v3124_v40  ;;  %v5056_v49 = vpop.f32.mrf.mxu1 }
 0x1a0   : > { %v4112_v55 = vpop.eup %4111  ;;  %2856 = vst.msk [vmem:[%s4488_s19 + $0x1b0] sm:$0xf] %vm2747_vm1, %v3437_v26  ;;  %v3440_v32 = vpack.c.bf16 %v2218_v56, %v2218_v56  ;;  %v2216_v60 = vmul.f32 %v4110_v33, %v4918_v48  ;;  %4137 = vpow2.f32 %v3188_v3  ;;  %v5058_v58 = vpop.f32.mrf.mxu0 }
 0x1a1   : > { %v4114_v31 = vpop.eup %4113  ;;  %2795 = vst.msk [vmem:[%s4488_s19 + $0xbc] sm:$0xf] %vm2747_vm1, %v3376_v20  ;;  %v3374_v37 = vpack.c.bf16 %v2152_v8, %v2152_v8  ;;  %v1773_v18 = vadd.f32 1.0, %v4112_v55  ;;  %4139 = vpow2.f32 %v3122_v4  ;;  %v5061_v33 = vpop.f32.mrf.mxu1  ;;  %v3191_v55 = vmul.f32 -1.442695, %v5033_v54 }
 0x1a2   : > { %v4116_v9 = vpop.eup %4115  ;;  %2859 = vst.msk [vmem:[%s4488_s19 + $0x1bc] sm:$0xf] %vm2747_vm1, %v3440_v32  ;;  %v3438_v59 = vpack.c.bf16 %v2216_v60, %v2216_v60  ;;  %v1837_v35 = vadd.f32 1.0, %v4114_v31  ;;  %4141 = vpow2.f32 %v3186_v12  ;;  %v3127_v12 = vmul.f32 -1.442695, %v5028_v57 }
 0x1a3   : > { %v4118_v22 = vpop.eup %4117  ;;  %2793 = vst.msk [vmem:[%s4488_s19 + $0xb4] sm:$0xf] %vm2747_vm1, %v3374_v37  ;;  %4143 = vrcp.f32 %v1773_v18  ;;  %v1771_v48 = vadd.f32 1.0, %v4116_v9  ;;  %v3125_v31 = vmul.f32 -1.442695, %v5042_v27 }
 0x1a4   : > { %v4120_v63 = vpop.eup %4119  ;;  %2857 = vst.msk [vmem:[%s4488_s19 + $0x1b4] sm:$0xf] %vm2747_vm1, %v3438_v59  ;;  %4145 = vrcp.f32 %v1837_v35  ;;  %v1835_v16 = vadd.f32 1.0, %v4118_v22  ;;  %v3189_v9 = vmul.f32 -1.442695, %v5046_v6  ;;  %v5068_v59 = vpop.f32.mrf.mxu0 }
 0x1a5   : > { %v4122_v51 = vpop.eup %4121  ;;  %4147 = vrcp.f32 %v1771_v48  ;;  %v1774_v10 = vadd.f32 1.0, %v4120_v63  ;;  %v5072_v63 = vpop.f32.mrf.mxu1 }
 0x1a6   : > { %v4124_v14 = vpop.eup %4123  ;;  %4149 = vrcp.f32 %v1835_v16  ;;  %v1838_v24 = vadd.f32 1.0, %v4122_v51 }
 0x1a7   : > { %v4126_v47 = vpop.eup %4125  ;;  %4151 = vrcp.f32 %v1774_v10  ;;  %v1772_v42 = vadd.f32 1.0, %v4124_v14  ;;  %v3192_v10 = vmul.f32 -1.442695, %v5052_v7 }
 0x1a8   : > { %v4128_v50 = vpop.eup %4127  ;;  %4153 = vrcp.f32 %v1838_v24  ;;  %v1836_v61 = vadd.f32 1.0, %v4126_v47  ;;  %v3126_v47 = vmul.f32 -1.442695, %v5054_v53 }
 0x1a9   : > { %v4130_v62 = vpop.eup %4129  ;;  %4155 = vrcp.f32 %v1772_v42  ;;  %v1777_v25 = vadd.f32 1.0, %v4128_v50 }
 0x1aa   : > { %v4132_v19 = vpop.eup %4131  ;;  %4157 = vrcp.f32 %v1836_v61  ;;  %v1841_v23 = vadd.f32 1.0, %v4130_v62  ;;  %v3190_v61 = vmul.f32 -1.442695, %v5056_v49  ;;  %v5084_v62 = vpop.f32.mrf.mxu0 }
 0x1ab   : > { %v4134_v40 = vpop.eup %4133  ;;  %4159 = vrcp.f32 %v1777_v25  ;;  %v1775_v13 = vadd.f32 1.0, %v4132_v19 }
 0x1ac   : > { %v4136_v41 = vpop.eup %4135  ;;  %4161 = vrcp.f32 %v1841_v23  ;;  %v1839_v3 = vadd.f32 1.0, %v4134_v40  ;;  %v3131_v23 = vmul.f32 -1.442695, %v5058_v58  ;;  %v5090_v40 = vpop.f32.mrf.mxu1 }
 0x1ad   : > { %v4138_v29 = vpop.eup %4137  ;;  %4163 = vrcp.f32 %v1775_v13  ;;  %v1778_v34 = vadd.f32 1.0, %v4136_v41 }
 0x1ae   : > { %v4140_v43 = vpop.eup %4139  ;;  %4165 = vrcp.f32 %v1839_v3  ;;  %v1842_v4 = vadd.f32 1.0, %v4138_v29  ;;  %v3195_v3 = vmul.f32 -1.442695, %v5061_v33 }
 0x1af   : > { %v4142_v26 = vpop.eup %4141  ;;  %4167 = vrcp.f32 %v1778_v34  ;;  %v1776_v56 = vadd.f32 1.0, %v4140_v43  ;;  %v3129_v43 = vmul.f32 -1.442695, %v5068_v59 }
 0x1b0   : > { %v4144_v20 = vpop.eup %4143  ;;  %4169 = vrcp.f32 %v1842_v4  ;;  %v1840_v8 = vadd.f32 1.0, %v4142_v26 }
 0x1b1   : > { %v4146_v32 = vpop.eup %4145  ;;  %v2157_v60 = vmul.f32 %v4144_v20, %v4932_v39  ;;  %4171 = vrcp.f32 %v1776_v56  ;;  %v3128_v39 = vmul.f32 -1.442695, %v5050_v38  ;;  %v3193_v56 = vmul.f32 -1.442695, %v5072_v63 }
 0x1b2   : > { %v4148_v37 = vpop.eup %4147  ;;  %v2221_v18 = vmul.f32 %v4146_v32, %v4937_v36  ;;  %4173 = vrcp.f32 %v1840_v8  ;;  %v5110_v32 = vpop.f32.mrf.mxu1 }
 0x1b3   : > { %v4150_v35 = vpop.eup %4149  ;;  %v3379_v22 = vpack.c.bf16 %v2157_v60, %v2157_v60  ;;  %v2155_v48 = vmul.f32 %v4148_v37, %v4946_v28  ;;  %4175 = vpow2.f32 %v3127_v12  ;;  %v5104_v12 = vpop.f32.mrf.mxu0  ;;  %v3196_v37 = vmul.f32 -1.442695, %v5090_v40 }
 0x1b4   : > { %v4152_v16 = vpop.eup %4151  ;;  %v3443_v51 = vpack.c.bf16 %v2221_v18, %v2221_v18  ;;  %v2219_v36 = vmul.f32 %v4150_v35, %v4950_v52  ;;  %4177 = vpow2.f32 %v3191_v55  ;;  %v3132_v55 = vmul.f32 -1.442695, %v5084_v62 }
 0x1b5   : > { %v4154_v14 = vpop.eup %4153  ;;  %2798 = vst.msk [vmem:[%s4488_s19 + $0xc8] sm:$0xf] %vm2747_vm1, %v3379_v22  ;;  %v3377_v24 = vpack.c.bf16 %v2155_v48, %v2155_v48  ;;  %v2158_v28 = vmul.f32 %v4152_v16, %v4954_v21  ;;  %4179 = vpow2.f32 %v3125_v31  ;;  %v3130_v35 = vmul.f32 -1.442695, %v5104_v12 }
 0x1b6   : > { %v4156_v42 = vpop.eup %4155  ;;  %2862 = vst.msk [vmem:[%s4488_s19 + $0x1c8] sm:$0xf] %vm2747_vm1, %v3443_v51  ;;  %v3441_v50 = vpack.c.bf16 %v2219_v36, %v2219_v36  ;;  %v2222_v52 = vmul.f32 %v4154_v14, %v4956_v1  ;;  %4181 = vpow2.f32 %v3189_v9 }
 0x1b7   : > { %v4158_v25 = vpop.eup %4157  ;;  %2796 = vst.msk [vmem:[%s4488_s19 + $0xc0] sm:$0xf] %vm2747_vm1, %v3377_v24  ;;  %v3380_v21 = vpack.c.bf16 %v2158_v28, %v2158_v28  ;;  %v2156_v19 = vmul.f32 %v4156_v42, %v4958_v11  ;;  %4183 = vpow2.f32 %v3128_v39  ;;  %v3194_v39 = vmul.f32 -1.442695, %v5110_v32 }
 0x1b8   : > { %v4160_v13 = vpop.eup %4159  ;;  %2860 = vst.msk [vmem:[%s4488_s19 + $0x1c0] sm:$0xf] %vm2747_vm1, %v3441_v50  ;;  %v3444_v1 = vpack.c.bf16 %v2222_v52, %v2222_v52  ;;  %v2220_v41 = vmul.f32 %v4158_v25, %v4960_v30  ;;  %4185 = vpow2.f32 %v3192_v10 }
 0x1b9   : > { %v4162_v29 = vpop.eup %4161  ;;  %2799 = vst.msk [vmem:[%s4488_s19 + $0xcc] sm:$0xf] %vm2747_vm1, %v3380_v21  ;;  %v3378_v11 = vpack.c.bf16 %v2156_v19, %v2156_v19  ;;  %v2161_v34 = vmul.f32 %v4160_v13, %v4962_v44  ;;  %4187 = vpow2.f32 %v3126_v47 }
 0x1ba   : > { %v4164_v4 = vpop.eup %4163  ;;  %2863 = vst.msk [vmem:[%s4488_s19 + $0x1cc] sm:$0xf] %vm2747_vm1, %v3444_v1  ;;  %v3442_v26 = vpack.c.bf16 %v2220_v41, %v2220_v41  ;;  %v2225_v30 = vmul.f32 %v4162_v29, %v4965_v2  ;;  %4189 = vpow2.f32 %v3190_v61 }
 0x1bb   : > { %v4166_v20 = vpop.eup %4165  ;;  %2797 = vst.msk [vmem:[%s4488_s19 + $0xc4] sm:$0xf] %vm2747_vm1, %v3378_v11  ;;  %v3383_v44 = vpack.c.bf16 %v2161_v34, %v2161_v34  ;;  %v2159_v8 = vmul.f32 %v4164_v4, %v4972_v45  ;;  %4191 = vpow2.f32 %v3131_v23 }
 0x1bc   : > { %v4168_v60 = vpop.eup %4167  ;;  %2861 = vst.msk [vmem:[%s4488_s19 + $0x1c4] sm:$0xf] %vm2747_vm1, %v3442_v26  ;;  %v3447_v2 = vpack.c.bf16 %v2225_v30, %v2225_v30  ;;  %v2223_v31 = vmul.f32 %v4166_v20, %v4976_v15  ;;  %4193 = vpow2.f32 %v3195_v3 }
 0x1bd   : > { %v4170_v18 = vpop.eup %4169  ;;  %2802 = vst.msk [vmem:[%s4488_s19 + $0xd8] sm:$0xf] %vm2747_vm1, %v3383_v44  ;;  %v3381_v45 = vpack.c.bf16 %v2159_v8, %v2159_v8  ;;  %v2162_v9 = vmul.f32 %v4168_v60, %v4988_v46  ;;  %4195 = vpow2.f32 %v3129_v43 }
 0x1be   : > { %v4172_v22 = vpop.eup %4171  ;;  %2866 = vst.msk [vmem:[%s4488_s19 + $0x1d8] sm:$0xf] %vm2747_vm1, %v3447_v2  ;;  %v3445_v48 = vpack.c.bf16 %v2223_v31, %v2223_v31  ;;  %v2226_v15 = vmul.f32 %v4170_v18, %v4994_v5  ;;  %4197 = vpow2.f32 %v3193_v56 }
 0x1bf   : > { %v4174_v16 = vpop.eup %4173  ;;  %2800 = vst.msk [vmem:[%s4488_s19 + $0xd0] sm:$0xf] %vm2747_vm1, %v3381_v45  ;;  %v3384_v51 = vpack.c.bf16 %v2162_v9, %v2162_v9  ;;  %v2160_v46 = vmul.f32 %v4172_v22, %v5008_v17  ;;  %4199 = vpow2.f32 %v3132_v55 }
 0x1c0   : > { %v4176_v36 = vpop.eup %4175  ;;  %2864 = vst.msk [vmem:[%s4488_s19 + $0x1d0] sm:$0xf] %vm2747_vm1, %v3445_v48  ;;  %v3448_v10 = vpack.c.bf16 %v2226_v15, %v2226_v15  ;;  %v2224_v14 = vmul.f32 %v4174_v16, %v5014_v0  ;;  %4201 = vpow2.f32 %v3196_v37 }
 0x1c1   : > { %v4178_v5 = vpop.eup %4177  ;;  %2803 = vst.msk [vmem:[%s4488_s19 + $0xdc] sm:$0xf] %vm2747_vm1, %v3384_v51  ;;  %v3382_v24 = vpack.c.bf16 %v2160_v46, %v2160_v46  ;;  %v1781_v28 = vadd.f32 1.0, %v4176_v36  ;;  %4203 = vpow2.f32 %v3130_v35 }
 0x1c2   : > { %v4180_v47 = vpop.eup %4179  ;;  %2867 = vst.msk [vmem:[%s4488_s19 + $0x1dc] sm:$0xf] %vm2747_vm1, %v3448_v10  ;;  %v3446_v17 = vpack.c.bf16 %v2224_v14, %v2224_v14  ;;  %v1845_v42 = vadd.f32 1.0, %v4178_v5  ;;  %4205 = vpow2.f32 %v3194_v39 }
 0x1c3   : > { %v4182_v50 = vpop.eup %4181  ;;  %2801 = vst.msk [vmem:[%s4488_s19 + $0xd4] sm:$0xf] %vm2747_vm1, %v3382_v24  ;;  %4207 = vrcp.f32 %v1781_v28  ;;  %v1779_v52 = vadd.f32 1.0, %v4180_v47 }
 0x1c4   : > { %v4184_v0 = vpop.eup %4183  ;;  %2865 = vst.msk [vmem:[%s4488_s19 + $0x1d4] sm:$0xf] %vm2747_vm1, %v3446_v17  ;;  %4209 = vrcp.f32 %v1845_v42  ;;  %v1843_v61 = vadd.f32 1.0, %v4182_v50 }
 0x1c5   : > { %v4186_v25 = vpop.eup %4185  ;;  %4211 = vrcp.f32 %v1779_v52  ;;  %v1782_v21 = vadd.f32 1.0, %v4184_v0 }
 0x1c6   : > { %v4188_v19 = vpop.eup %4187  ;;  %4213 = vrcp.f32 %v1843_v61  ;;  %v1846_v23 = vadd.f32 1.0, %v4186_v25 }
 0x1c7   : > { %v4190_v13 = vpop.eup %4189  ;;  %4215 = vrcp.f32 %v1782_v21  ;;  %v1780_v1 = vadd.f32 1.0, %v4188_v19 }
 0x1c8   : > { %v4192_v41 = vpop.eup %4191  ;;  %4217 = vrcp.f32 %v1846_v23  ;;  %v1844_v3 = vadd.f32 1.0, %v4190_v13 }
 0x1c9   : > { %v4194_v29 = vpop.eup %4193  ;;  %4219 = vrcp.f32 %v1780_v1  ;;  %v1785_v11 = vadd.f32 1.0, %v4192_v41 }
 0x1ca   : > { %v4196_v34 = vpop.eup %4195  ;;  %4221 = vrcp.f32 %v1844_v3  ;;  %v1849_v43 = vadd.f32 1.0, %v4194_v29 }
 0x1cb   : > { %v4198_v4 = vpop.eup %4197  ;;  %4223 = vrcp.f32 %v1785_v11  ;;  %v1783_v26 = vadd.f32 1.0, %v4196_v34 }
 0x1cc   : > { %v4200_v30 = vpop.eup %4199  ;;  %4225 = vrcp.f32 %v1849_v43  ;;  %v1847_v56 = vadd.f32 1.0, %v4198_v4 }
 0x1cd   : > { %v4202_v20 = vpop.eup %4201  ;;  %4227 = vrcp.f32 %v1783_v26  ;;  %v1786_v44 = vadd.f32 1.0, %v4200_v30 }
 0x1ce   : > { %v4204_v8 = vpop.eup %4203  ;;  %4229 = vrcp.f32 %v1847_v56  ;;  %v1850_v55 = vadd.f32 1.0, %v4202_v20 }
 0x1cf   : > { %v4206_v60 = vpop.eup %4205  ;;  %4231 = vrcp.f32 %v1786_v44  ;;  %v1784_v2 = vadd.f32 1.0, %v4204_v8 }
 0x1d0   : > { %v4208_v31 = vpop.eup %4207  ;;  %4233 = vrcp.f32 %v1850_v55  ;;  %v1848_v37 = vadd.f32 1.0, %v4206_v60 }
 0x1d1   : > { %v4210_v18 = vpop.eup %4209  ;;  %v2165_v45 = vmul.f32 %v4208_v31, %v5028_v57  ;;  %4235 = vrcp.f32 %v1784_v2 }
 0x1d2   : > { %v4212_v9 = vpop.eup %4211  ;;  %v2229_v35 = vmul.f32 %v4210_v18, %v5033_v54  ;;  %4237 = vrcp.f32 %v1848_v37 }
 0x1d3   : > { %v4214_v22 = vpop.eup %4213  ;;  %v3387_v48 = vpack.c.bf16 %v2165_v45, %v2165_v45  ;;  %v2163_v15 = vmul.f32 %v4212_v9, %v5042_v27 }
 0x1d4   : > { %v4216_v39 = vpop.eup %4215  ;;  %v3451_v16 = vpack.c.bf16 %v2229_v35, %v2229_v35  ;;  %v2227_v51 = vmul.f32 %v4214_v22, %v5046_v6 }
 0x1d5   : > { %v4218_v46 = vpop.eup %4217  ;;  %2806 = vst.msk [vmem:[%s4488_s19 + $0xe8] sm:$0xf] %vm2747_vm1, %v3387_v48  ;;  %v3385_v57 = vpack.c.bf16 %v2163_v15, %v2163_v15  ;;  %v2166_v36 = vmul.f32 %v4216_v39, %v5050_v38 }
 0x1d6   : > { %v4220_v10 = vpop.eup %4219  ;;  %2870 = vst.msk [vmem:[%s4488_s19 + $0x1e8] sm:$0xf] %vm2747_vm1, %v3451_v16  ;;  %v3449_v54 = vpack.c.bf16 %v2227_v51, %v2227_v51  ;;  %v2230_v14 = vmul.f32 %v4218_v46, %v5052_v7 }
 0x1d7   : > { %v4222_v27 = vpop.eup %4221  ;;  %2804 = vst.msk [vmem:[%s4488_s19 + $0xe0] sm:$0xf] %vm2747_vm1, %v3385_v57  ;;  %v3388_v5 = vpack.c.bf16 %v2166_v36, %v2166_v36  ;;  %v2164_v6 = vmul.f32 %v4220_v10, %v5054_v53 }
 0x1d8   : > { %v4224_v24 = vpop.eup %4223  ;;  %2868 = vst.msk [vmem:[%s4488_s19 + $0x1e0] sm:$0xf] %vm2747_vm1, %v3449_v54  ;;  %v3452_v28 = vpack.c.bf16 %v2230_v14, %v2230_v14  ;;  %v2228_v38 = vmul.f32 %v4222_v27, %v5056_v49 }
 0x1d9   : > { %v4226_v47 = vpop.eup %4225  ;;  %2807 = vst.msk [vmem:[%s4488_s19 + $0xec] sm:$0xf] %vm2747_vm1, %v3388_v5  ;;  %v3386_v17 = vpack.c.bf16 %v2164_v6, %v2164_v6  ;;  %v2169_v7 = vmul.f32 %v4224_v24, %v5058_v58 }
 0x1da   : > { %v4228_v42 = vpop.eup %4227  ;;  %2871 = vst.msk [vmem:[%s4488_s19 + $0x1ec] sm:$0xf] %vm2747_vm1, %v3452_v28  ;;  %v3450_v50 = vpack.c.bf16 %v2228_v38, %v2228_v38  ;;  %v2233_v53 = vmul.f32 %v4226_v47, %v5061_v33 }
 0x1db   : > { %v4230_v52 = vpop.eup %4229  ;;  %2805 = vst.msk [vmem:[%s4488_s19 + $0xe4] sm:$0xf] %vm2747_vm1, %v3386_v17  ;;  %v3391_v0 = vpack.c.bf16 %v2169_v7, %v2169_v7  ;;  %v2167_v49 = vmul.f32 %v4228_v42, %v5068_v59 }
 0x1dc   : > { %v4232_v61 = vpop.eup %4231  ;;  %2869 = vst.msk [vmem:[%s4488_s19 + $0x1e4] sm:$0xf] %vm2747_vm1, %v3450_v50  ;;  %v3455_v25 = vpack.c.bf16 %v2233_v53, %v2233_v53  ;;  %v2231_v58 = vmul.f32 %v4230_v52, %v5072_v63 }
 0x1dd   : > { %v4234_v21 = vpop.eup %4233  ;;  %2810 = vst.msk [vmem:[%s4488_s19 + $0xf8] sm:$0xf] %vm2747_vm1, %v3391_v0  ;;  %v3389_v33 = vpack.c.bf16 %v2167_v49, %v2167_v49  ;;  %v2170_v19 = vmul.f32 %v4232_v61, %v5084_v62 }
 0x1de   : > { %v4236_v23 = vpop.eup %4235  ;;  %2874 = vst.msk [vmem:[%s4488_s19 + $0x1f8] sm:$0xf] %vm2747_vm1, %v3455_v25  ;;  %v3453_v59 = vpack.c.bf16 %v2231_v58, %v2231_v58  ;;  %v2234_v13 = vmul.f32 %v4234_v21, %v5090_v40 }
 0x1df   : > { %v4238_v1 = vpop.eup %4237  ;;  %2808 = vst.msk [vmem:[%s4488_s19 + $0xf0] sm:$0xf] %vm2747_vm1, %v3389_v33  ;;  %v3392_v63 = vpack.c.bf16 %v2170_v19, %v2170_v19  ;;  %v2168_v41 = vmul.f32 %v4236_v23, %v5104_v12 }
 0x1e0   : > { %2872 = vst.msk [vmem:[%s4488_s19 + $0x1f0] sm:$0xf] %vm2747_vm1, %v3453_v59  ;;  %v3456_v3 = vpack.c.bf16 %v2234_v13, %v2234_v13  ;;  %v2232_v29 = vmul.f32 %v4238_v1, %v5110_v32 }
 0x1e1   : > { %2811 = vst.msk [vmem:[%s4488_s19 + $0xfc] sm:$0xf] %vm2747_vm1, %v3392_v63  ;;  %v3390_v62 = vpack.c.bf16 %v2168_v41, %v2168_v41 }
 0x1e2   : > { %2875 = vst.msk [vmem:[%s4488_s19 + $0x1fc] sm:$0xf] %vm2747_vm1, %v3456_v3  ;;  %v3454_v11 = vpack.c.bf16 %v2232_v29, %v2232_v29 }
 0x1e3   : > { %2809 = vst.msk [vmem:[%s4488_s19 + $0xf4] sm:$0xf] %vm2747_vm1, %v3390_v62 }
 0x1e4   : > { %2873 = vst.msk [vmem:[%s4488_s19 + $0x1f4] sm:$0xf] %vm2747_vm1, %v3454_v11 }
 0x1e5 PF: > { %s12_s9 = sadd.s32 1, %s4245_s9  }
 0x1e6   : > { %p9_p4 = scmp.ge.s32.totalorder %s12_s9, 4  }
 0x1e8   :  { %11 = sbr.rel (!%p9_p4) target bundleno = 1 (0x1), region = 58 }

// kernel: forward.8
= control target key start
LH: loop header
LB: loop body
LE: loop exit
PB: predicated region body
PF: predicated region fallthrough
CT: control target
= control target key end

     0   :  { %s1061_s12 = smov 0   ;;  %s1257_s0 = inlined_call_operand.vmem [shape: bf16[2,256,96], index: 0, kind: input, shape index: {}]   ;;  %s1258_s1 = inlined_call_operand.vmem [shape: bf16[2,1,96], index: 1, kind: input, shape index: {}]   ;;  %s1259_s2 = inlined_call_operand.vmem [shape: bf16[96,24], index: 2, kind: input, shape index: {}]   ;;  %s1260_s3 = inlined_call_operand.vmem [shape: bf16[2,256,24], index: 3, kind: output, shape index: {}]  }
   0x1 LB: > { %s825_s13 = sadd.s32 4294967295, %s1039_s12   ;;  %p829_p0 = scmp.ge.s32.totalorder %s1039_s12, 1  ;;  %s1039_s12 = sphi %s1061_s12, %s13_s12  }
   0x2   : > { %p145_p1 = scmp.lt.s32.totalorder %s1039_s12, 3 }
   0x4   : > { %p146_p2 = pnand %p829_p0, %p145_p1 }
   0x5   : > { %p172_p3 = scmp.lt.s32.totalorder (!%p146_p2), %s825_s13, 1 }
   0x6   : > { %149 = sbr.rel (%p146_p2) target bundleno = 262 (0x106), region = 32 }
   0xb   : > { %v1027_v0 = vld [vmem:[%s1259_s2 + $0x28] sm:$0xff]   ;;  %v222_v1 = vlaneseq  ;;  %v1028_v2 = vld [vmem:[%s1259_s2 + $0x20] sm:$0xff]   ;;  %s1262_s13 = smov (!%p172_p3, %s825_s13), 1  ;;  %v1029_v4 = vld [vmem:[%s1259_s2 + $0x18] sm:$0xff]   ;;  %vm390_vm0 = vcmask 785408   ;;  %vm728_vm1 = vcmask 191488  }
   0xc   : > { %963 = vmatprep.subr.bf16.mxu0 %v1027_v0  ;;  %1007 = vmatprep.subr.bf16.mxu1 %v1027_v0  ;;  %s907_s20 = sshll.u32 %s1262_s13, 7  ;;  %s179_s23 = scalar_lea.vmem %s1258_s1, %s1262_s13  ;;  %v1030_v8 = vld [vmem:[%s1259_s2 + $0x10] sm:$0xff]   ;;  %v1031_v15 = vld [vmem:[%s1259_s2 + $0x8] sm:$0xff]   ;;  %v1032_v20 = vld [vmem:[%s1259_s2] sm:$0xff]  }
   0xd   : > { %964 = vmatpush3.bf16.msra.mxu0 %v1027_v0  ;;  %1013 = vmatpush3.bf16.msra.mxu1 %v1027_v0  ;;  %v223_v3 = vshrl.u32 %v222_v1, 7  ;;  %s1090_s26 = scalar_lea.vmem %s1257_s0, %s907_s20  ;;  %v218_v6 = vld [vmem:[%s179_s23] sm:$0x1]  ;;  %s1188_s8 = scalar_lea.vmem %s1260_s3, %s907_s20 }
   0xe   : > { %965 = vmatprep.subr.bf16.mxu0 %v1028_v2  ;;  %1008 = vmatprep.subr.bf16.mxu1 %v1028_v2  ;;  %v220_v7 = vpack.i.b16 %v218_v6, %v218_v6  ;;  %v186_v9 = vld [vmem:[%s1090_s26] sm:$0xf]  ;;  %v187_v11 = vld [vmem:[%s1090_s26 + $0x4] sm:$0xf]  ;;  %v188_v21 = vld [vmem:[%s1090_s26 + $0x8] sm:$0xf] }
   0xf   : > { %v224_v5 = vsub.s32 0, %v223_v3  ;;  %v202_v12 = vld [vmem:[%s1090_s26 + $0x40] sm:$0xf]  ;;  %v203_v13 = vld [vmem:[%s1090_s26 + $0x44] sm:$0xf] }
  0x10   : > { %v189_v22 = vld [vmem:[%s1090_s26 + $0xc] sm:$0xf]  ;;  %v204_v25 = vld [vmem:[%s1090_s26 + $0x48] sm:$0xf]  ;;  %v190_v27 = vld [vmem:[%s1090_s26 + $0x10] sm:$0xf] }
  0x11   : > { %966 = vmatpush3.bf16.msra.mxu0 %v1028_v2  ;;  %1014 = vmatpush3.bf16.msra.mxu1 %v1028_v2  ;;  %v225_v10 = vrot.slane %v220_v7, %v224_v5  ;;  %v205_v26 = vld [vmem:[%s1090_s26 + $0x4c] sm:$0xf]  ;;  %v191_v28 = vld [vmem:[%s1090_s26 + $0x14] sm:$0xf]  ;;  %v206_v29 = vld [vmem:[%s1090_s26 + $0x50] sm:$0xf] }
  0x12   : > { %967 = vmatprep.subr.bf16.mxu0 %v1029_v4  ;;  %1009 = vmatprep.subr.bf16.mxu1 %v1029_v4  ;;  %v207_v30 = vld [vmem:[%s1090_s26 + $0x54] sm:$0xf]  ;;  %v192_v41 = vld [vmem:[%s1090_s26 + $0x18] sm:$0xf]  ;;  %v193_v42 = vld [vmem:[%s1090_s26 + $0x1c] sm:$0xf] }
  0x13   : > { %v1099_v14 = vcombine.low %v225_v10, %v225_v10  ;;  %v208_v45 = vld [vmem:[%s1090_s26 + $0x58] sm:$0xf]  ;;  %v209_v46 = vld [vmem:[%s1090_s26 + $0x5c] sm:$0xf]  ;;  %v194_v47 = vld [vmem:[%s1090_s26 + $0x20] sm:$0xf] }
  0x14   : > { %v195_v48 = vld [vmem:[%s1090_s26 + $0x24] sm:$0xf]  ;;  %v210_v49 = vld [vmem:[%s1090_s26 + $0x60] sm:$0xf]  ;;  %v196_v61 = vld [vmem:[%s1090_s26 + $0x28] sm:$0xf] }
  0x15   : > { %968 = vmatpush3.bf16.msra.mxu0 %v1029_v4  ;;  %1015 = vmatpush3.bf16.msra.mxu1 %v1029_v4  ;;  %v230_v16 = vmul.bf16 %v1099_v14, %v186_v9  ;;  %v231_v17 = vmul.bf16 %v1099_v14, %v187_v11  ;;  %v246_v18 = vmul.bf16 %v1099_v14, %v202_v12  ;;  %v211_v50 = vld [vmem:[%s1090_s26 + $0x64] sm:$0xf]  ;;  %v197_v62 = vld [vmem:[%s1090_s26 + $0x2c] sm:$0xf]  ;;  %v212_v1 = vld [vmem:[%s1090_s26 + $0x68] sm:$0xf] }
  0x16   : > { %969 = vmatprep.subr.bf16.mxu0 %v1030_v8  ;;  %1010 = vmatprep.subr.bf16.mxu1 %v1030_v8  ;;  %v247_v19 = vmul.bf16 %v1099_v14, %v203_v13  ;;  %v232_v31 = vmul.bf16 %v1099_v14, %v188_v21  ;;  %v233_v32 = vmul.bf16 %v1099_v14, %v189_v22  ;;  %v213_v2 = vld [vmem:[%s1090_s26 + $0x6c] sm:$0xf]  ;;  %v198_v3 = vld [vmem:[%s1090_s26 + $0x30] sm:$0xf]  ;;  %v199_v4 = vld [vmem:[%s1090_s26 + $0x34] sm:$0xf] }
  0x17   : > { %v835_v23 = vcombine.low %v230_v16, %v231_v17  ;;  %v248_v33 = vmul.bf16 %v1099_v14, %v204_v25  ;;  %v249_v34 = vmul.bf16 %v1099_v14, %v205_v26  ;;  %v234_v35 = vmul.bf16 %v1099_v14, %v190_v27  ;;  %v214_v5 = vld [vmem:[%s1090_s26 + $0x70] sm:$0xf]  ;;  %v215_v6 = vld [vmem:[%s1090_s26 + $0x74] sm:$0xf]  ;;  %v201_v21 = vld [vmem:[%s1090_s26 + $0x3c] sm:$0xf] }
  0x18   : > { %v843_v24 = vcombine.low %v246_v18, %v247_v19  ;;  %v235_v36 = vmul.bf16 %v1099_v14, %v191_v28  ;;  %v250_v37 = vmul.bf16 %v1099_v14, %v206_v29  ;;  %v251_v38 = vmul.bf16 %v1099_v14, %v207_v30  ;;  %v200_v18 = vld [vmem:[%s1090_s26 + $0x38] sm:$0xf] }
  0x19   : > { %970 = vmatpush3.bf16.msra.mxu0 %v1030_v8  ;;  %1016 = vmatpush3.bf16.msra.mxu1 %v1030_v8  ;;  %v836_v39 = vcombine.low %v232_v31, %v233_v32  ;;  %v844_v40 = vcombine.low %v248_v33, %v249_v34  ;;  %v236_v51 = vmul.bf16 %v1099_v14, %v192_v41  ;;  %v216_v22 = vld [vmem:[%s1090_s26 + $0x78] sm:$0xf] }
  0x1a   : > { %971 = vmatprep.subr.bf16.mxu0 %v1031_v15  ;;  %1011 = vmatprep.subr.bf16.mxu1 %v1031_v15  ;;  %v837_v43 = vcombine.low %v234_v35, %v235_v36  ;;  %v845_v44 = vcombine.low %v250_v37, %v251_v38  ;;  %v237_v52 = vmul.bf16 %v1099_v14, %v193_v42 }
  0x1b   : > { %975 = vmatprep.mubr.msk.bf16.mxu0 %vm390_vm0, %v835_v23  ;;  %991 = vmatprep.mubr.msk.bf16.mxu1 %vm390_vm0, %v843_v24  ;;  %v252_v53 = vmul.bf16 %v1099_v14, %v208_v45  ;;  %v253_v54 = vmul.bf16 %v1099_v14, %v209_v46  ;;  %v238_v55 = vmul.bf16 %v1099_v14, %v194_v47  ;;  %v217_v23 = vld [vmem:[%s1090_s26 + $0x7c] sm:$0xf] }
  0x1c   : > { %v239_v56 = vmul.bf16 %v1099_v14, %v195_v48  ;;  %v254_v57 = vmul.bf16 %v1099_v14, %v210_v49  ;;  %v255_v58 = vmul.bf16 %v1099_v14, %v211_v50  ;;  %v838_v59 = vcombine.low %v236_v51, %v237_v52 }
  0x1d   : > { %972 = vmatpush3.bf16.msra.mxu0 %v1031_v15  ;;  %1017 = vmatpush3.bf16.msra.mxu1 %v1031_v15  ;;  %v846_v60 = vcombine.low %v252_v53, %v253_v54  ;;  %v240_v7 = vmul.bf16 %v1099_v14, %v196_v61  ;;  %v241_v8 = vmul.bf16 %v1099_v14, %v197_v62 }
  0x1e   : > { %973 = vmatprep.subr.bf16.mxu0 %v1032_v20  ;;  %1012 = vmatprep.subr.bf16.mxu1 %v1032_v20  ;;  %v839_v63 = vcombine.low %v238_v55, %v239_v56  ;;  %v847_v0 = vcombine.low %v254_v57, %v255_v58  ;;  %v256_v9 = vmul.bf16 %v1099_v14, %v212_v1 }
  0x1f   : > { %v257_v10 = vmul.bf16 %v1099_v14, %v213_v2  ;;  %v242_v11 = vmul.bf16 %v1099_v14, %v198_v3  ;;  %v243_v12 = vmul.bf16 %v1099_v14, %v199_v4  ;;  %v258_v13 = vmul.bf16 %v1099_v14, %v214_v5 }
  0x20   : > { %v259_v15 = vmul.bf16 %v1099_v14, %v215_v6  ;;  %v840_v16 = vcombine.low %v240_v7, %v241_v8  ;;  %v244_v24 = vmul.bf16 %v1099_v14, %v200_v18  ;;  %v245_v25 = vmul.bf16 %v1099_v14, %v201_v21 }
  0x21   : > { %974 = vmatpush3.bf16.msra.mxu0 %v1032_v20  ;;  %1018 = vmatpush3.bf16.msra.mxu1 %v1032_v20  ;;  %v848_v17 = vcombine.low %v256_v9, %v257_v10  ;;  %v841_v19 = vcombine.low %v242_v11, %v243_v12  ;;  %v260_v26 = vmul.bf16 %v1099_v14, %v216_v22 }
  0x22   : > { %v849_v20 = vcombine.low %v258_v13, %v259_v15  ;;  %v261_v27 = vmul.bf16 %v1099_v14, %v217_v23  ;;  %v842_v28 = vcombine.low %v244_v24, %v245_v25 }
  0x24   : > { %976 = vmatmul.mubr.msk.bf16.vlgmr.msra.gmra.mxu0 %vm390_vm0, %v836_v39  ;;  %992 = vmatmul.mubr.msk.bf16.vlgmr.msra.gmra.mxu1 %vm390_vm0, %v844_v40  ;;  %v850_v29 = vcombine.low %v260_v26, %v261_v27 }
  0x25   : > { %979 = vmatprep.mubr.msk.bf16.mxu0 %vm390_vm0, %v837_v43  ;;  %995 = vmatprep.mubr.msk.bf16.mxu1 %vm390_vm0, %v845_v44 }
  0x2c   : > { %980 = vmatmul.mubr.msk.bf16.gmra.mxu0 %vm390_vm0, %v838_v59  ;;  %996 = vmatmul.mubr.msk.bf16.gmra.mxu1 %vm390_vm0, %v846_v60 }
  0x2d   : > { %983 = vmatprep.mubr.msk.bf16.mxu0 %vm390_vm0, %v839_v63  ;;  %999 = vmatprep.mubr.msk.bf16.mxu1 %vm390_vm0, %v847_v0 }
  0x34   : > { %984 = vmatmul.mubr.msk.bf16.gmra.mxu0 %vm390_vm0, %v840_v16  ;;  %1000 = vmatmul.mubr.msk.bf16.gmra.mxu1 %vm390_vm0, %v848_v17 }
  0x35   : > { %987 = vmatprep.mubr.msk.bf16.mxu0 %vm390_vm0, %v841_v19  ;;  %1003 = vmatprep.mubr.msk.bf16.mxu1 %vm390_vm0, %v849_v20 }
  0x3c   : > { %988 = vmatmul.mubr.msk.bf16.gmra.mxu0 %vm390_vm0, %v842_v28  ;;  %1004 = vmatmul.mubr.msk.bf16.gmra.mxu1 %vm390_vm0, %v850_v29 }
  0xe4   : > { %v977_v14 = vpop.f32.mrf.mxu0  ;;  %v993_v30 = vpop.f32.mrf.mxu1 }
  0xe5   : > { %v911_v31 = vpack.c.bf16 %v977_v14, %v977_v14  ;;  %v927_v32 = vpack.c.bf16 %v993_v30, %v993_v30 }
  0xe6   : > { %v473_v33 = vpop.f32.mrf.mxu0  ;;  %v537_v34 = vpop.f32.mrf.mxu1 }
  0xe7   : > { %731 = vst.msk [vmem:[%s1188_s8 + $0x8] sm:$0xf] %vm728_vm1, %v911_v31  ;;  %747 = vst.msk [vmem:[%s1188_s8 + $0x48] sm:$0xf] %vm728_vm1, %v927_v32  ;;  %v909_v35 = vpack.c.bf16 %v473_v33, %v473_v33  ;;  %v925_v36 = vpack.c.bf16 %v537_v34, %v537_v34 }
  0xe8   : > { %v978_v37 = vpop.f32.mrf.mxu0  ;;  %v994_v38 = vpop.f32.mrf.mxu1 }
  0xe9   : > { %729 = vst.msk [vmem:[%s1188_s8] sm:$0xf] %vm728_vm1, %v909_v35  ;;  %745 = vst.msk [vmem:[%s1188_s8 + $0x40] sm:$0xf] %vm728_vm1, %v925_v36  ;;  %v912_v39 = vpack.c.bf16 %v978_v37, %v978_v37  ;;  %v928_v40 = vpack.c.bf16 %v994_v38, %v994_v38 }
  0xea   : > { %v476_v41 = vpop.f32.mrf.mxu0  ;;  %v540_v42 = vpop.f32.mrf.mxu1 }
  0xeb   : > { %732 = vst.msk [vmem:[%s1188_s8 + $0xc] sm:$0xf] %vm728_vm1, %v912_v39  ;;  %748 = vst.msk [vmem:[%s1188_s8 + $0x4c] sm:$0xf] %vm728_vm1, %v928_v40  ;;  %v910_v43 = vpack.c.bf16 %v476_v41, %v476_v41  ;;  %v926_v44 = vpack.c.bf16 %v540_v42, %v540_v42 }
  0xec   : > { %v981_v45 = vpop.f32.mrf.mxu0  ;;  %v997_v46 = vpop.f32.mrf.mxu1 }
  0xed   : > { %730 = vst.msk [vmem:[%s1188_s8 + $0x4] sm:$0xf] %vm728_vm1, %v910_v43  ;;  %746 = vst.msk [vmem:[%s1188_s8 + $0x44] sm:$0xf] %vm728_vm1, %v926_v44  ;;  %v915_v47 = vpack.c.bf16 %v981_v45, %v981_v45  ;;  %v931_v48 = vpack.c.bf16 %v997_v46, %v997_v46 }
  0xee   : > { %v489_v49 = vpop.f32.mrf.mxu0  ;;  %v553_v50 = vpop.f32.mrf.mxu1 }
  0xef   : > { %735 = vst.msk [vmem:[%s1188_s8 + $0x18] sm:$0xf] %vm728_vm1, %v915_v47  ;;  %751 = vst.msk [vmem:[%s1188_s8 + $0x58] sm:$0xf] %vm728_vm1, %v931_v48  ;;  %v913_v51 = vpack.c.bf16 %v489_v49, %v489_v49  ;;  %v929_v52 = vpack.c.bf16 %v553_v50, %v553_v50 }
  0xf0   : > { %v982_v53 = vpop.f32.mrf.mxu0  ;;  %v998_v54 = vpop.f32.mrf.mxu1 }
  0xf1   : > { %733 = vst.msk [vmem:[%s1188_s8 + $0x10] sm:$0xf] %vm728_vm1, %v913_v51  ;;  %749 = vst.msk [vmem:[%s1188_s8 + $0x50] sm:$0xf] %vm728_vm1, %v929_v52  ;;  %v916_v55 = vpack.c.bf16 %v982_v53, %v982_v53  ;;  %v932_v56 = vpack.c.bf16 %v998_v54, %v998_v54 }
  0xf2   : > { %v492_v57 = vpop.f32.mrf.mxu0  ;;  %v556_v58 = vpop.f32.mrf.mxu1 }
  0xf3   : > { %736 = vst.msk [vmem:[%s1188_s8 + $0x1c] sm:$0xf] %vm728_vm1, %v916_v55  ;;  %752 = vst.msk [vmem:[%s1188_s8 + $0x5c] sm:$0xf] %vm728_vm1, %v932_v56  ;;  %v914_v59 = vpack.c.bf16 %v492_v57, %v492_v57  ;;  %v930_v60 = vpack.c.bf16 %v556_v58, %v556_v58 }
  0xf4   : > { %v985_v61 = vpop.f32.mrf.mxu0  ;;  %v1001_v62 = vpop.f32.mrf.mxu1 }
  0xf5   : > { %734 = vst.msk [vmem:[%s1188_s8 + $0x14] sm:$0xf] %vm728_vm1, %v914_v59  ;;  %750 = vst.msk [vmem:[%s1188_s8 + $0x54] sm:$0xf] %vm728_vm1, %v930_v60  ;;  %v919_v63 = vpack.c.bf16 %v985_v61, %v985_v61  ;;  %v935_v0 = vpack.c.bf16 %v1001_v62, %v1001_v62 }
  0xf6   : > { %v505_v1 = vpop.f32.mrf.mxu0  ;;  %v569_v2 = vpop.f32.mrf.mxu1 }
  0xf7   : > { %739 = vst.msk [vmem:[%s1188_s8 + $0x28] sm:$0xf] %vm728_vm1, %v919_v63  ;;  %755 = vst.msk [vmem:[%s1188_s8 + $0x68] sm:$0xf] %vm728_vm1, %v935_v0  ;;  %v917_v3 = vpack.c.bf16 %v505_v1, %v505_v1  ;;  %v933_v4 = vpack.c.bf16 %v569_v2, %v569_v2 }
  0xf8   : > { %v986_v5 = vpop.f32.mrf.mxu0  ;;  %v1002_v6 = vpop.f32.mrf.mxu1 }
  0xf9   : > { %737 = vst.msk [vmem:[%s1188_s8 + $0x20] sm:$0xf] %vm728_vm1, %v917_v3  ;;  %753 = vst.msk [vmem:[%s1188_s8 + $0x60] sm:$0xf] %vm728_vm1, %v933_v4  ;;  %v920_v7 = vpack.c.bf16 %v986_v5, %v986_v5  ;;  %v936_v8 = vpack.c.bf16 %v1002_v6, %v1002_v6 }
  0xfa   : > { %v508_v9 = vpop.f32.mrf.mxu0  ;;  %v572_v10 = vpop.f32.mrf.mxu1 }
  0xfb   : > { %740 = vst.msk [vmem:[%s1188_s8 + $0x2c] sm:$0xf] %vm728_vm1, %v920_v7  ;;  %756 = vst.msk [vmem:[%s1188_s8 + $0x6c] sm:$0xf] %vm728_vm1, %v936_v8  ;;  %v918_v11 = vpack.c.bf16 %v508_v9, %v508_v9  ;;  %v934_v12 = vpack.c.bf16 %v572_v10, %v572_v10 }
  0xfc   : > { %v989_v13 = vpop.f32.mrf.mxu0  ;;  %v1005_v15 = vpop.f32.mrf.mxu1 }
  0xfd   : > { %738 = vst.msk [vmem:[%s1188_s8 + $0x24] sm:$0xf] %vm728_vm1, %v918_v11  ;;  %754 = vst.msk [vmem:[%s1188_s8 + $0x64] sm:$0xf] %vm728_vm1, %v934_v12  ;;  %v923_v16 = vpack.c.bf16 %v989_v13, %v989_v13  ;;  %v939_v17 = vpack.c.bf16 %v1005_v15, %v1005_v15 }
  0xfe   : > { %v521_v18 = vpop.f32.mrf.mxu0  ;;  %v585_v19 = vpop.f32.mrf.mxu1 }
  0xff   : > { %743 = vst.msk [vmem:[%s1188_s8 + $0x38] sm:$0xf] %vm728_vm1, %v923_v16  ;;  %759 = vst.msk [vmem:[%s1188_s8 + $0x78] sm:$0xf] %vm728_vm1, %v939_v17  ;;  %v921_v20 = vpack.c.bf16 %v521_v18, %v521_v18  ;;  %v937_v21 = vpack.c.bf16 %v585_v19, %v585_v19 }
 0x100   : > { %v990_v22 = vpop.f32.mrf.mxu0  ;;  %v1006_v23 = vpop.f32.mrf.mxu1 }
 0x101   : > { %741 = vst.msk [vmem:[%s1188_s8 + $0x30] sm:$0xf] %vm728_vm1, %v921_v20  ;;  %757 = vst.msk [vmem:[%s1188_s8 + $0x70] sm:$0xf] %vm728_vm1, %v937_v21  ;;  %v924_v24 = vpack.c.bf16 %v990_v22, %v990_v22  ;;  %v940_v25 = vpack.c.bf16 %v1006_v23, %v1006_v23 }
 0x102   : > { %v524_v26 = vpop.f32.mrf.mxu0  ;;  %v588_v27 = vpop.f32.mrf.mxu1 }
 0x103   : > { %744 = vst.msk [vmem:[%s1188_s8 + $0x3c] sm:$0xf] %vm728_vm1, %v924_v24  ;;  %760 = vst.msk [vmem:[%s1188_s8 + $0x7c] sm:$0xf] %vm728_vm1, %v940_v25  ;;  %v922_v28 = vpack.c.bf16 %v524_v26, %v524_v26  ;;  %v938_v29 = vpack.c.bf16 %v588_v27, %v588_v27 }
 0x105   : > { %742 = vst.msk [vmem:[%s1188_s8 + $0x34] sm:$0xf] %vm728_vm1, %v922_v28  ;;  %758 = vst.msk [vmem:[%s1188_s8 + $0x74] sm:$0xf] %vm728_vm1, %v938_v29 }
 0x106 PF: > { %s13_s12 = sadd.s32 1, %s1039_s12  }
 0x107   : > { %p10_p4 = scmp.ge.s32.totalorder %s13_s12, 4  }
 0x109   :  { %12 = sbr.rel (!%p10_p4) target bundleno = 1 (0x1), region = 65 }

// kernel: forward.9
= control target key start
LH: loop header
LB: loop body
LE: loop exit
PB: predicated region body
PF: predicated region fallthrough
CT: control target
= control target key end

     0   :  { %s1745_s9 = smov 0   ;;  %s2172_s0 = inlined_call_operand.vmem [shape: bf16[2,256,24], index: 0, kind: input, shape index: {}]   ;;  %s2173_s1 = inlined_call_operand.vmem [shape: bf16[24,144], index: 1, kind: input, shape index: {}]   ;;  %s2174_s2 = inlined_call_operand.vmem [shape: bf16[2,256,144], index: 2, kind: output, shape index: {}]  }
   0x1 LB: > { %s1253_s10 = sadd.s32 4294967295, %s1727_s9   ;;  %p1257_p0 = scmp.ge.s32.totalorder %s1727_s9, 1  ;;  %s1727_s9 = sphi %s1745_s9, %s12_s9  }
   0x2   : > { %p112_p1 = scmp.lt.s32.totalorder %s1727_s9, 3 }
   0x4   : > { %p113_p2 = pnand %p1257_p0, %p112_p1 }
   0x5   : > { %p134_p3 = scmp.lt.s32.totalorder (!%p113_p2), %s1253_s10, 1 }
   0x6   : > { %116 = sbr.rel (%p113_p2) target bundleno = 363 (0x16b), region = 28 }
   0xb   : > { %v179_v0 = vld [vmem:[%s2173_s1 + $0x10] sm:$0xff]  ;;  %vm324_vm0 = vcmask 1043456   ;;  %v1446_v3 = vld [vmem:[%s2173_s1 + $0x4] ss:$8 sps:$4 sm:$0xff]   ;;  %v1729_v4 = vmov 0   ;;  %s2178_s10 = smov (!%p134_p3, %s1253_s10), 1 }
   0xc   : > { %v1281_v1 = vcombine.high %v179_v0, %v179_v0  ;;  %v1280_v2 = vcombine.low %v179_v0, %v179_v0  ;;  %363 = vmatprep.mubr.bf16.mxu0 %v1729_v4  ;;  %443 = vmatprep.mubr.bf16.mxu1 %v1729_v4  ;;  %v1448_v6 = vld [vmem:[%s2173_s1] ss:$8 sps:$4 sm:$0xff]   ;;  %s1397_s17 = sshll.u32 %s2178_s10, 7  ;;  %vm275_vm1 = vcmask 195584   ;;  %vm1164_vm2 = vcmask 130052   ;;  %s1398_s21 = sshll.u32 %s2178_s10, 8 }
   0xd   : > { %s1771_s20 = scalar_lea.vmem %s2172_s0, %s1397_s17  ;;  %vm1887_vm3 = vmor %vm1164_vm2, %vm324_vm0  ;;  %s1895_s24 = scalar_lea.vmem %s2174_s2, %s1398_s21 }
   0xe   : > { %1282 = vmatprep.subr.msk.bf16.mxu0 %vm324_vm0, %v1281_v1  ;;  %1431 = vmatprep.subr.msk.bf16.mxu1 %vm324_vm0, %v1281_v1  ;;  %v326_v5 = vsel %vm324_vm0, %v1280_v2, 0  ;;  %v1449_v7 = vld [vmem:[%s1771_s20] sm:$0xff]   ;;  %v1451_v9 = vld [vmem:[%s1771_s20 + $0x8] sm:$0xff]   ;;  %v1453_v11 = vld [vmem:[%s1771_s20 + $0x10] sm:$0xff]  }
   0xf   : > { %344 = vmatpush1.bf16.msra.mxu0 %v326_v5  ;;  %1433 = vmatpush1.bf16.msra.mxu1 %v326_v5  ;;  %v1450_v8 = vld [vmem:[%s1771_s20 + $0x40] sm:$0xff]   ;;  %v1452_v10 = vld [vmem:[%s1771_s20 + $0x48] sm:$0xff]   ;;  %v1454_v12 = vld [vmem:[%s1771_s20 + $0x50] sm:$0xff]  }
  0x10   : > { %345 = vmatprep.subr.bf16.mxu0 %v1446_v3  ;;  %1432 = vmatprep.subr.bf16.mxu1 %v1446_v3  ;;  %v1455_v13 = vld [vmem:[%s1771_s20 + $0x18] sm:$0xff]   ;;  %v1457_v15 = vld [vmem:[%s1771_s20 + $0x20] sm:$0xff]   ;;  %v1459_v17 = vld [vmem:[%s1771_s20 + $0x28] sm:$0xff]  }
  0x11   : > { %v1456_v14 = vld [vmem:[%s1771_s20 + $0x58] sm:$0xff]   ;;  %v1458_v16 = vld [vmem:[%s1771_s20 + $0x60] sm:$0xff]   ;;  %v1460_v18 = vld [vmem:[%s1771_s20 + $0x68] sm:$0xff]  }
  0x12   : > { %v1461_v19 = vld [vmem:[%s1771_s20 + $0x30] sm:$0xff]   ;;  %v1463_v21 = vld [vmem:[%s1771_s20 + $0x38] sm:$0xff]  }
  0x13   : > { %346 = vmatpush1.bf16.msra.mxu0 %v1448_v6  ;;  %1434 = vmatpush1.bf16.msra.mxu1 %v1448_v6  ;;  %v1462_v20 = vld [vmem:[%s1771_s20 + $0x70] sm:$0xff]   ;;  %v1464_v22 = vld [vmem:[%s1771_s20 + $0x78] sm:$0xff]  }
  0x16   : > { %1283 = vmatmul.mubr.msk.bf16.vlgmr.msra.gmra.mxu0 %vm275_vm1, %v1449_v7  ;;  %1291 = vmatmul.mubr.msk.bf16.vlgmr.msra.gmra.mxu1 %vm275_vm1, %v1450_v8 }
  0x17   : > { %373 = vmatprep.mubr.bf16.mxu0 %v1729_v4  ;;  %453 = vmatprep.mubr.bf16.mxu1 %v1729_v4 }
  0x1e   : > { %1284 = vmatmul.mubr.msk.bf16.gmra.mxu0 %vm275_vm1, %v1451_v9  ;;  %1292 = vmatmul.mubr.msk.bf16.gmra.mxu1 %vm275_vm1, %v1452_v10 }
  0x1f   : > { %383 = vmatprep.mubr.bf16.mxu0 %v1729_v4  ;;  %463 = vmatprep.mubr.bf16.mxu1 %v1729_v4 }
  0x26   : > { %1285 = vmatmul.mubr.msk.bf16.gmra.mxu0 %vm275_vm1, %v1453_v11  ;;  %1293 = vmatmul.mubr.msk.bf16.gmra.mxu1 %vm275_vm1, %v1454_v12 }
  0x27   : > { %393 = vmatprep.mubr.bf16.mxu0 %v1729_v4  ;;  %473 = vmatprep.mubr.bf16.mxu1 %v1729_v4 }
  0x2e   : > { %1286 = vmatmul.mubr.msk.bf16.gmra.mxu0 %vm275_vm1, %v1455_v13  ;;  %1294 = vmatmul.mubr.msk.bf16.gmra.mxu1 %vm275_vm1, %v1456_v14 }
  0x2f   : > { %403 = vmatprep.mubr.bf16.mxu0 %v1729_v4  ;;  %483 = vmatprep.mubr.bf16.mxu1 %v1729_v4 }
  0x36   : > { %1287 = vmatmul.mubr.msk.bf16.gmra.mxu0 %vm275_vm1, %v1457_v15  ;;  %1295 = vmatmul.mubr.msk.bf16.gmra.mxu1 %vm275_vm1, %v1458_v16 }
  0x37   : > { %413 = vmatprep.mubr.bf16.mxu0 %v1729_v4  ;;  %493 = vmatprep.mubr.bf16.mxu1 %v1729_v4 }
  0x3e   : > { %1288 = vmatmul.mubr.msk.bf16.gmra.mxu0 %vm275_vm1, %v1459_v17  ;;  %1296 = vmatmul.mubr.msk.bf16.gmra.mxu1 %vm275_vm1, %v1460_v18 }
  0x3f   : > { %423 = vmatprep.mubr.bf16.mxu0 %v1729_v4  ;;  %503 = vmatprep.mubr.bf16.mxu1 %v1729_v4 }
  0x46   : > { %1289 = vmatmul.mubr.msk.bf16.gmra.mxu0 %vm275_vm1, %v1461_v19  ;;  %1297 = vmatmul.mubr.msk.bf16.gmra.mxu1 %vm275_vm1, %v1462_v20 }
  0x47   : > { %433 = vmatprep.mubr.bf16.mxu0 %v1729_v4  ;;  %513 = vmatprep.mubr.bf16.mxu1 %v1729_v4 }
  0x4e   : > { %1290 = vmatmul.mubr.msk.bf16.gmra.mxu0 %vm275_vm1, %v1463_v21  ;;  %1298 = vmatmul.mubr.msk.bf16.gmra.mxu1 %vm275_vm1, %v1464_v22 }
  0xd6   : > { %v1805_v23 = vpop.f32.mrf.mxu0  ;;  %v1807_v24 = vpop.f32.mrf.mxu1 }
  0xd7   : > { %v1299_v25 = vmul.f32 -1.442695, %v1805_v23  ;;  %v1331_v26 = vmul.f32 -1.442695, %v1807_v24 }
  0xd8   : > { %v1811_v27 = vpop.f32.mrf.mxu0  ;;  %v1813_v28 = vpop.f32.mrf.mxu1 }
  0xd9   : > { %1465 = vpow2.f32 %v1299_v25  ;;  %v1300_v29 = vmul.f32 -1.442695, %v1811_v27  ;;  %v1332_v30 = vmul.f32 -1.442695, %v1813_v28 }
  0xda   : > { %1467 = vpow2.f32 %v1331_v26  ;;  %v1817_v31 = vpop.f32.mrf.mxu0  ;;  %v1819_v32 = vpop.f32.mrf.mxu1 }
  0xdb   : > { %1469 = vpow2.f32 %v1300_v29  ;;  %v1301_v33 = vmul.f32 -1.442695, %v1817_v31  ;;  %v1333_v34 = vmul.f32 -1.442695, %v1819_v32 }
  0xdc   : > { %1471 = vpow2.f32 %v1332_v30  ;;  %v1823_v35 = vpop.f32.mrf.mxu0  ;;  %v1825_v36 = vpop.f32.mrf.mxu1 }
  0xdd   : > { %1473 = vpow2.f32 %v1301_v33  ;;  %v1302_v37 = vmul.f32 -1.442695, %v1823_v35  ;;  %v1334_v38 = vmul.f32 -1.442695, %v1825_v36 }
  0xde   : > { %1475 = vpow2.f32 %v1333_v34  ;;  %v1829_v39 = vpop.f32.mrf.mxu0  ;;  %v1831_v40 = vpop.f32.mrf.mxu1 }
  0xdf   : > { %1477 = vpow2.f32 %v1302_v37  ;;  %v1303_v41 = vmul.f32 -1.442695, %v1829_v39  ;;  %v1335_v42 = vmul.f32 -1.442695, %v1831_v40 }
  0xe0   : > { %1479 = vpow2.f32 %v1334_v38  ;;  %v1835_v43 = vpop.f32.mrf.mxu0  ;;  %v1837_v44 = vpop.f32.mrf.mxu1 }
  0xe1   : > { %1481 = vpow2.f32 %v1303_v41  ;;  %v1304_v45 = vmul.f32 -1.442695, %v1835_v43  ;;  %v1336_v46 = vmul.f32 -1.442695, %v1837_v44 }
  0xe2   : > { %1483 = vpow2.f32 %v1335_v42  ;;  %v1841_v47 = vpop.f32.mrf.mxu0  ;;  %v1843_v48 = vpop.f32.mrf.mxu1 }
  0xe3   : > { %1485 = vpow2.f32 %v1304_v45  ;;  %v1305_v49 = vmul.f32 -1.442695, %v1841_v47  ;;  %v1337_v50 = vmul.f32 -1.442695, %v1843_v48 }
  0xe4   : > { %1487 = vpow2.f32 %v1336_v46  ;;  %v1847_v51 = vpop.f32.mrf.mxu0  ;;  %v1849_v52 = vpop.f32.mrf.mxu1 }
  0xe5   : > { %1489 = vpow2.f32 %v1305_v49  ;;  %v1306_v53 = vmul.f32 -1.442695, %v1847_v51  ;;  %v1338_v54 = vmul.f32 -1.442695, %v1849_v52 }
  0xe6   : > { %v1466_v55 = vpop.eup %1465  ;;  %1491 = vpow2.f32 %v1337_v50  ;;  %v1853_v56 = vpop.f32.mrf.mxu0 }
  0xe7   : > { %v1855_v57 = vpop.f32.mrf.mxu1  ;;  %v1468_v58 = vpop.eup %1467  ;;  %v716_v59 = vadd.f32 1.0, %v1466_v55  ;;  %1493 = vpow2.f32 %v1306_v53  ;;  %v1307_v41 = vmul.f32 -1.442695, %v1853_v56 }
  0xe8   : > { %v1470_v60 = vpop.eup %1469  ;;  %v748_v61 = vadd.f32 1.0, %v1468_v58  ;;  %1495 = vpow2.f32 %v1338_v54  ;;  %v1857_v62 = vpop.f32.mrf.mxu0  ;;  %v1339_v49 = vmul.f32 -1.442695, %v1855_v57 }
  0xe9   : > { %v1472_v63 = vpop.eup %1471  ;;  %1497 = vrcp.f32 %v716_v59  ;;  %v717_v0 = vadd.f32 1.0, %v1470_v60  ;;  %v1859_v1 = vpop.f32.mrf.mxu1  ;;  %v1308_v53 = vmul.f32 -1.442695, %v1857_v62 }
  0xea   : > { %v1474_v2 = vpop.eup %1473  ;;  %1499 = vrcp.f32 %v748_v61  ;;  %v749_v3 = vadd.f32 1.0, %v1472_v63  ;;  %v1861_v8 = vpop.f32.mrf.mxu0  ;;  %v1340_v55 = vmul.f32 -1.442695, %v1859_v1 }
  0xeb   : > { %v1476_v4 = vpop.eup %1475  ;;  %1501 = vrcp.f32 %v717_v0  ;;  %v718_v5 = vadd.f32 1.0, %v1474_v2  ;;  %v1863_v11 = vpop.f32.mrf.mxu1  ;;  %v1309_v63 = vmul.f32 -1.442695, %v1861_v8 }
  0xec   : > { %v1478_v6 = vpop.eup %1477  ;;  %1503 = vrcp.f32 %v749_v3  ;;  %v750_v7 = vadd.f32 1.0, %v1476_v4  ;;  %v1865_v18 = vpop.f32.mrf.mxu0 }
  0xed   : > { %v1480_v9 = vpop.eup %1479  ;;  %1505 = vrcp.f32 %v718_v5  ;;  %v719_v10 = vadd.f32 1.0, %v1478_v6  ;;  %v1867_v21 = vpop.f32.mrf.mxu1 }
  0xee   : > { %v1482_v12 = vpop.eup %1481  ;;  %1507 = vrcp.f32 %v750_v7  ;;  %v751_v13 = vadd.f32 1.0, %v1480_v9  ;;  %v1869_v34 = vpop.f32.mrf.mxu0  ;;  %v1310_v7 = vmul.f32 -1.442695, %v1865_v18 }
  0xef   : > { %v1484_v14 = vpop.eup %1483  ;;  %1509 = vrcp.f32 %v719_v10  ;;  %v720_v15 = vadd.f32 1.0, %v1482_v12  ;;  %v1872_v42 = vpop.f32.mrf.mxu1 }
  0xf0   : > { %v1486_v16 = vpop.eup %1485  ;;  %1511 = vrcp.f32 %v751_v13  ;;  %v752_v17 = vadd.f32 1.0, %v1484_v14  ;;  %v1878_v58 = vpop.f32.mrf.mxu0 }
  0xf1   : > { %v1488_v19 = vpop.eup %1487  ;;  %1513 = vrcp.f32 %v720_v15  ;;  %v721_v20 = vadd.f32 1.0, %v1486_v16  ;;  %v1883_v0 = vpop.f32.mrf.mxu1  ;;  %v1311_v15 = vmul.f32 -1.442695, %v1869_v34 }
  0xf2   : > { %v1490_v22 = vpop.eup %1489  ;;  %1515 = vrcp.f32 %v752_v17  ;;  %v753_v25 = vadd.f32 1.0, %v1488_v19  ;;  %v1901_v12 = vpop.f32.mrf.mxu0 }
  0xf3   : > { %v1492_v26 = vpop.eup %1491  ;;  %1517 = vrcp.f32 %v721_v20  ;;  %v722_v29 = vadd.f32 1.0, %v1490_v22  ;;  %v1909_v16 = vpop.f32.mrf.mxu1  ;;  %v1343_v22 = vmul.f32 -1.442695, %v1872_v42 }
  0xf4   : > { %v1494_v30 = vpop.eup %1493  ;;  %1519 = vrcp.f32 %v753_v25  ;;  %v754_v33 = vadd.f32 1.0, %v1492_v26 }
  0xf5   : > { %v1496_v37 = vpop.eup %1495  ;;  %1521 = vrcp.f32 %v722_v29  ;;  %v723_v38 = vadd.f32 1.0, %v1494_v30  ;;  %v1344_v30 = vmul.f32 -1.442695, %v1883_v0 }
  0xf6   : > { %v1498_v45 = vpop.eup %1497  ;;  %1523 = vrcp.f32 %v754_v33  ;;  %v755_v46 = vadd.f32 1.0, %v1496_v37  ;;  %v1919_v33 = vpop.f32.mrf.mxu0 }
  0xf7   : > { %v1500_v50 = vpop.eup %1499  ;;  %1525 = vrcp.f32 %v723_v38  ;;  %v908_v60 = vmul.f32 %v1498_v45, %v1805_v23  ;;  %v1313_v38 = vmul.f32 -1.442695, %v1901_v12 }
  0xf8   : > { %v1502_v54 = vpop.eup %1501  ;;  %1527 = vrcp.f32 %v755_v46  ;;  %v940_v4 = vmul.f32 %v1500_v50, %v1807_v24  ;;  %v1342_v24 = vmul.f32 -1.442695, %v1867_v21  ;;  %v1345_v50 = vmul.f32 -1.442695, %v1909_v16 }
  0xf9   : > { %v1504_v59 = vpop.eup %1503  ;;  %v909_v61 = vmul.f32 %v1502_v54, %v1811_v27  ;;  %1529 = vpow2.f32 %v1307_v41  ;;  %v1341_v27 = vmul.f32 -1.442695, %v1863_v11  ;;  %v1927_v41 = vpop.f32.mrf.mxu1 }
  0xfa   : > { %v1506_v2 = vpop.eup %1505  ;;  %v941_v23 = vmul.f32 %v1504_v59, %v1813_v28  ;;  %1531 = vpow2.f32 %v1339_v49  ;;  %v1346_v59 = vmul.f32 -1.442695, %v1927_v41 }
  0xfb   : > { %v1508_v5 = vpop.eup %1507  ;;  %v1399_v6 = vpack.c.bf16 %v909_v61, %v908_v60  ;;  %1533 = vpow2.f32 %v1308_v53  ;;  %v910_v28 = vmul.f32 %v1506_v2, %v1817_v31  ;;  %v1314_v53 = vmul.f32 -1.442695, %v1919_v33  ;;  %v1937_v60 = vpop.f32.mrf.mxu0 }
  0xfc   : > { %v1510_v9 = vpop.eup %1509  ;;  %v1415_v10 = vpack.c.bf16 %v941_v23, %v940_v4  ;;  %1535 = vpow2.f32 %v1340_v55  ;;  %v942_v19 = vmul.f32 %v1508_v5, %v1819_v32 }
  0xfd   : > { %v1512_v13 = vpop.eup %1511  ;;  %1166 = vst.msk [vmem:[%s1895_s24] sm:$0xff] %vm1887_vm3, %v1399_v6  ;;  %v911_v14 = vmul.f32 %v1510_v9, %v1823_v35  ;;  %1537 = vpow2.f32 %v1309_v63  ;;  %v1312_v35 = vmul.f32 -1.442695, %v1878_v58  ;;  %v1944_v63 = vpop.f32.mrf.mxu1 }
  0xfe   : > { %v1514_v17 = vpop.eup %1513  ;;  %1182 = vst.msk [vmem:[%s1895_s24 + $0x80] sm:$0xff] %vm1887_vm3, %v1415_v10  ;;  %v943_v20 = vmul.f32 %v1512_v13, %v1825_v36  ;;  %1539 = vpow2.f32 %v1341_v27  ;;  %v1951_v9 = vpop.f32.mrf.mxu0 }
  0xff   : > { %v1516_v31 = vpop.eup %1515  ;;  %v1400_v25 = vpack.c.bf16 %v911_v14, %v910_v28  ;;  %1541 = vpow2.f32 %v1310_v7  ;;  %v912_v32 = vmul.f32 %v1514_v17, %v1829_v39 }
 0x100   : > { %v1518_v26 = vpop.eup %1517  ;;  %v1416_v29 = vpack.c.bf16 %v943_v20, %v942_v19  ;;  %1543 = vpow2.f32 %v1342_v24  ;;  %v944_v46 = vmul.f32 %v1516_v31, %v1831_v40  ;;  %v1956_v24 = vpop.f32.mrf.mxu1 }
 0x101   : > { %v1520_v37 = vpop.eup %1519  ;;  %1167 = vst.msk [vmem:[%s1895_s24 + $0x8] sm:$0xff] %vm1887_vm3, %v1400_v25  ;;  %v913_v36 = vmul.f32 %v1518_v26, %v1835_v43  ;;  %1545 = vpow2.f32 %v1311_v15  ;;  %v1961_v19 = vpop.f32.mrf.mxu0 }
 0x102   : > { %v1522_v45 = vpop.eup %1521  ;;  %1183 = vst.msk [vmem:[%s1895_s24 + $0x88] sm:$0xff] %vm1887_vm3, %v1416_v29  ;;  %v945_v49 = vmul.f32 %v1520_v37, %v1837_v44  ;;  %1547 = vpow2.f32 %v1343_v22  ;;  %v1963_v31 = vpop.f32.mrf.mxu1 }
 0x103   : > { %v1524_v39 = vpop.eup %1523  ;;  %v1401_v43 = vpack.c.bf16 %v913_v36, %v912_v32  ;;  %1549 = vpow2.f32 %v1312_v35  ;;  %v914_v40 = vmul.f32 %v1522_v45, %v1841_v47  ;;  %v1965_v32 = vpop.f32.mrf.mxu0 }
 0x104   : > { %v1526_v54 = vpop.eup %1525  ;;  %v1417_v55 = vpack.c.bf16 %v945_v49, %v944_v46  ;;  %1551 = vpow2.f32 %v1344_v30  ;;  %v946_v4 = vmul.f32 %v1524_v39, %v1843_v48  ;;  %v1967_v45 = vpop.f32.mrf.mxu1 }
 0x105   : > { %v1528_v61 = vpop.eup %1527  ;;  %1168 = vst.msk [vmem:[%s1895_s24 + $0x10] sm:$0xff] %vm1887_vm3, %v1401_v43  ;;  %v915_v44 = vmul.f32 %v1526_v54, %v1847_v51  ;;  %1553 = vpow2.f32 %v1313_v38  ;;  %v1969_v54 = vpop.f32.mrf.mxu0 }
 0x106   : > { %v1530_v2 = vpop.eup %1529  ;;  %1184 = vst.msk [vmem:[%s1895_s24 + $0x90] sm:$0xff] %vm1887_vm3, %v1417_v55  ;;  %v947_v23 = vmul.f32 %v1528_v61, %v1849_v52  ;;  %1555 = vpow2.f32 %v1345_v50  ;;  %v1315_v61 = vmul.f32 -1.442695, %v1937_v60 }
 0x107   : > { %v1532_v27 = vpop.eup %1531  ;;  %v1402_v5 = vpack.c.bf16 %v915_v44, %v914_v40  ;;  %v724_v6 = vadd.f32 1.0, %v1530_v2  ;;  %1557 = vpow2.f32 %v1314_v53  ;;  %v1972_v40 = vpop.f32.mrf.mxu1 }
 0x108   : > { %v1534_v47 = vpop.eup %1533  ;;  %v1418_v51 = vpack.c.bf16 %v947_v23, %v946_v4  ;;  %v756_v7 = vadd.f32 1.0, %v1532_v27  ;;  %1559 = vpow2.f32 %v1346_v59  ;;  %v1347_v4 = vmul.f32 -1.442695, %v1944_v63 }
 0x109   : > { %v1536_v10 = vpop.eup %1535  ;;  %1169 = vst.msk [vmem:[%s1895_s24 + $0x18] sm:$0xff] %vm1887_vm3, %v1402_v5  ;;  %1561 = vrcp.f32 %v724_v6  ;;  %v725_v48 = vadd.f32 1.0, %v1534_v47  ;;  %v1316_v27 = vmul.f32 -1.442695, %v1951_v9  ;;  %v1348_v6 = vmul.f32 -1.442695, %v1956_v24  ;;  %v1977_v47 = vpop.f32.mrf.mxu0 }
 0x10a   : > { %v1538_v52 = vpop.eup %1537  ;;  %1185 = vst.msk [vmem:[%s1895_s24 + $0x98] sm:$0xff] %vm1887_vm3, %v1418_v51  ;;  %1563 = vrcp.f32 %v756_v7  ;;  %v757_v13 = vadd.f32 1.0, %v1536_v10 }
 0x10b   : > { %v1540_v28 = vpop.eup %1539  ;;  %1565 = vrcp.f32 %v725_v48  ;;  %v726_v14 = vadd.f32 1.0, %v1538_v52  ;;  %v1317_v48 = vmul.f32 -1.442695, %v1961_v19  ;;  %v1982_v52 = vpop.f32.mrf.mxu1 }
 0x10c   : > { %v1542_v15 = vpop.eup %1541  ;;  %1567 = vrcp.f32 %v757_v13  ;;  %v758_v17 = vadd.f32 1.0, %v1540_v28 }
 0x10d   : > { %v1544_v20 = vpop.eup %1543  ;;  %1569 = vrcp.f32 %v726_v14  ;;  %v727_v22 = vadd.f32 1.0, %v1542_v15  ;;  %v1349_v15 = vmul.f32 -1.442695, %v1963_v31 }
 0x10e   : > { %v1546_v25 = vpop.eup %1545  ;;  %1571 = vrcp.f32 %v758_v17  ;;  %v759_v35 = vadd.f32 1.0, %v1544_v20 }
 0x10f   : > { %v1548_v26 = vpop.eup %1547  ;;  %1573 = vrcp.f32 %v727_v22  ;;  %v728_v29 = vadd.f32 1.0, %v1546_v25  ;;  %v1350_v25 = vmul.f32 -1.442695, %v1967_v45 }
 0x110   : > { %v1550_v30 = vpop.eup %1549  ;;  %1575 = vrcp.f32 %v759_v35  ;;  %v760_v37 = vadd.f32 1.0, %v1548_v26  ;;  %v1989_v35 = vpop.f32.mrf.mxu0 }
 0x111   : > { %v1552_v36 = vpop.eup %1551  ;;  %1577 = vrcp.f32 %v728_v29  ;;  %v729_v38 = vadd.f32 1.0, %v1550_v30  ;;  %v1319_v29 = vmul.f32 -1.442695, %v1969_v54  ;;  %v1997_v30 = vpop.f32.mrf.mxu1 }
 0x112   : > { %v1554_v46 = vpop.eup %1553  ;;  %1579 = vrcp.f32 %v760_v37  ;;  %v761_v49 = vadd.f32 1.0, %v1552_v36 }
 0x113   : > { %v1556_v50 = vpop.eup %1555  ;;  %1581 = vrcp.f32 %v729_v38  ;;  %v730_v39 = vadd.f32 1.0, %v1554_v46  ;;  %v1351_v46 = vmul.f32 -1.442695, %v1972_v40 }
 0x114   : > { %v1558_v43 = vpop.eup %1557  ;;  %1583 = vrcp.f32 %v761_v49  ;;  %v762_v53 = vadd.f32 1.0, %v1556_v50 }
 0x115   : > { %v1560_v55 = vpop.eup %1559  ;;  %1585 = vrcp.f32 %v730_v39  ;;  %v731_v59 = vadd.f32 1.0, %v1558_v43  ;;  %v1352_v43 = vmul.f32 -1.442695, %v1982_v52 }
 0x116   : > { %v1562_v44 = vpop.eup %1561  ;;  %1587 = vrcp.f32 %v762_v53  ;;  %v763_v2 = vadd.f32 1.0, %v1560_v55  ;;  %v2007_v53 = vpop.f32.mrf.mxu0 }
 0x117   : > { %v1564_v23 = vpop.eup %1563  ;;  %1589 = vrcp.f32 %v731_v59  ;;  %v916_v7 = vmul.f32 %v1562_v44, %v1853_v56  ;;  %v1318_v56 = vmul.f32 -1.442695, %v1965_v32  ;;  %v1321_v59 = vmul.f32 -1.442695, %v1989_v35 }
 0x118   : > { %v1566_v5 = vpop.eup %1565  ;;  %1591 = vrcp.f32 %v763_v2  ;;  %v948_v28 = vmul.f32 %v1564_v23, %v1855_v57  ;;  %v1353_v23 = vmul.f32 -1.442695, %v1997_v30 }
 0x119   : > { %v1568_v51 = vpop.eup %1567  ;;  %v917_v10 = vmul.f32 %v1566_v5, %v1857_v62  ;;  %1593 = vpow2.f32 %v1315_v61  ;;  %v2015_v61 = vpop.f32.mrf.mxu1 }
 0x11a   : > { %v1570_v13 = vpop.eup %1569  ;;  %v949_v14 = vmul.f32 %v1568_v51, %v1859_v1  ;;  %1595 = vpow2.f32 %v1347_v4  ;;  %v1354_v51 = vmul.f32 -1.442695, %v2015_v61 }
 0x11b   : > { %v1572_v17 = vpop.eup %1571  ;;  %v1403_v20 = vpack.c.bf16 %v917_v10, %v916_v7  ;;  %1597 = vpow2.f32 %v1316_v27  ;;  %v918_v57 = vmul.f32 %v1570_v13, %v1861_v8  ;;  %v1322_v27 = vmul.f32 -1.442695, %v2007_v53  ;;  %v2025_v7 = vpop.f32.mrf.mxu0 }
 0x11c   : > { %v1574_v62 = vpop.eup %1573  ;;  %v1419_v22 = vpack.c.bf16 %v949_v14, %v948_v28  ;;  %1599 = vpow2.f32 %v1348_v6  ;;  %v950_v36 = vmul.f32 %v1572_v17, %v1863_v11 }
 0x11d   : > { %v1576_v26 = vpop.eup %1575  ;;  %1170 = vst.msk [vmem:[%s1895_s24 + $0x20] sm:$0xff] %vm1887_vm3, %v1403_v20  ;;  %v919_v1 = vmul.f32 %v1574_v62, %v1865_v18  ;;  %1601 = vpow2.f32 %v1317_v48  ;;  %v1320_v18 = vmul.f32 -1.442695, %v1977_v47  ;;  %v2032_v48 = vpop.f32.mrf.mxu1 }
 0x11e   : > { %v1578_v37 = vpop.eup %1577  ;;  %1186 = vst.msk [vmem:[%s1895_s24 + $0xa0] sm:$0xff] %vm1887_vm3, %v1419_v22  ;;  %v951_v38 = vmul.f32 %v1576_v26, %v1867_v21  ;;  %1603 = vpow2.f32 %v1349_v15  ;;  %v2039_v62 = vpop.f32.mrf.mxu0 }
 0x11f   : > { %v1580_v8 = vpop.eup %1579  ;;  %v1404_v49 = vpack.c.bf16 %v919_v1, %v918_v57  ;;  %1605 = vpow2.f32 %v1318_v56  ;;  %v920_v11 = vmul.f32 %v1578_v37, %v1869_v34 }
 0x120   : > { %v1582_v50 = vpop.eup %1581  ;;  %v1420_v39 = vpack.c.bf16 %v951_v38, %v950_v36  ;;  %1607 = vpow2.f32 %v1350_v25  ;;  %v952_v2 = vmul.f32 %v1580_v8, %v1872_v42  ;;  %v2044_v25 = vpop.f32.mrf.mxu1 }
 0x121   : > { %v1584_v55 = vpop.eup %1583  ;;  %1171 = vst.msk [vmem:[%s1895_s24 + $0x28] sm:$0xff] %vm1887_vm3, %v1404_v49  ;;  %v921_v21 = vmul.f32 %v1582_v50, %v1878_v58  ;;  %1609 = vpow2.f32 %v1319_v29  ;;  %v2049_v36 = vpop.f32.mrf.mxu0 }
 0x122   : > { %v1586_v44 = vpop.eup %1585  ;;  %1187 = vst.msk [vmem:[%s1895_s24 + $0xa8] sm:$0xff] %vm1887_vm3, %v1420_v39  ;;  %v953_v4 = vmul.f32 %v1584_v55, %v1883_v0  ;;  %1611 = vpow2.f32 %v1351_v46  ;;  %v2051_v8 = vpop.f32.mrf.mxu1 }
 0x123   : > { %v1588_v34 = vpop.eup %1587  ;;  %v1405_v58 = vpack.c.bf16 %v921_v21, %v920_v11  ;;  %1613 = vpow2.f32 %v1320_v18  ;;  %v922_v42 = vmul.f32 %v1586_v44, %v1901_v12  ;;  %v2053_v11 = vpop.f32.mrf.mxu0 }
 0x124   : > { %v1590_v5 = vpop.eup %1589  ;;  %v1421_v6 = vpack.c.bf16 %v953_v4, %v952_v2  ;;  %1615 = vpow2.f32 %v1352_v43  ;;  %v954_v28 = vmul.f32 %v1588_v34, %v1909_v16  ;;  %v2055_v44 = vpop.f32.mrf.mxu1 }
 0x125   : > { %v1592_v10 = vpop.eup %1591  ;;  %1172 = vst.msk [vmem:[%s1895_s24 + $0x30] sm:$0xff] %vm1887_vm3, %v1405_v58  ;;  %v923_v0 = vmul.f32 %v1590_v5, %v1919_v33  ;;  %1617 = vpow2.f32 %v1321_v59  ;;  %v2057_v5 = vpop.f32.mrf.mxu0 }
 0x126   : > { %v1594_v13 = vpop.eup %1593  ;;  %1188 = vst.msk [vmem:[%s1895_s24 + $0xb0] sm:$0xff] %vm1887_vm3, %v1421_v6  ;;  %v955_v14 = vmul.f32 %v1592_v10, %v1927_v41  ;;  %1619 = vpow2.f32 %v1353_v23  ;;  %v1323_v10 = vmul.f32 -1.442695, %v2025_v7 }
 0x127   : > { %v1596_v15 = vpop.eup %1595  ;;  %v1406_v17 = vpack.c.bf16 %v923_v0, %v922_v42  ;;  %v732_v20 = vadd.f32 1.0, %v1594_v13  ;;  %1621 = vpow2.f32 %v1322_v27  ;;  %v2060_v42 = vpop.f32.mrf.mxu1 }
 0x128   : > { %v1598_v12 = vpop.eup %1597  ;;  %v1422_v33 = vpack.c.bf16 %v955_v14, %v954_v28  ;;  %v764_v56 = vadd.f32 1.0, %v1596_v15  ;;  %1623 = vpow2.f32 %v1354_v51  ;;  %v1355_v28 = vmul.f32 -1.442695, %v2032_v48 }
 0x129   : > { %v1600_v22 = vpop.eup %1599  ;;  %1173 = vst.msk [vmem:[%s1895_s24 + $0x38] sm:$0xff] %vm1887_vm3, %v1406_v17  ;;  %1625 = vrcp.f32 %v732_v20  ;;  %v733_v16 = vadd.f32 1.0, %v1598_v12  ;;  %v1324_v15 = vmul.f32 -1.442695, %v2039_v62  ;;  %v1356_v20 = vmul.f32 -1.442695, %v2044_v25  ;;  %v2065_v12 = vpop.f32.mrf.mxu0 }
 0x12a   : > { %v1602_v41 = vpop.eup %1601  ;;  %1189 = vst.msk [vmem:[%s1895_s24 + $0xb8] sm:$0xff] %vm1887_vm3, %v1422_v33  ;;  %1627 = vrcp.f32 %v764_v56  ;;  %v765_v26 = vadd.f32 1.0, %v1600_v22 }
 0x12b   : > { %v1604_v57 = vpop.eup %1603  ;;  %1629 = vrcp.f32 %v733_v16  ;;  %v734_v1 = vadd.f32 1.0, %v1602_v41  ;;  %v1325_v16 = vmul.f32 -1.442695, %v2049_v36  ;;  %v2070_v41 = vpop.f32.mrf.mxu1 }
 0x12c   : > { %v1606_v29 = vpop.eup %1605  ;;  %1631 = vrcp.f32 %v765_v26  ;;  %v766_v37 = vadd.f32 1.0, %v1604_v57 }
 0x12d   : > { %v1608_v38 = vpop.eup %1607  ;;  %1633 = vrcp.f32 %v734_v1  ;;  %v735_v46 = vadd.f32 1.0, %v1606_v29  ;;  %v1357_v29 = vmul.f32 -1.442695, %v2051_v8 }
 0x12e   : > { %v1610_v49 = vpop.eup %1609  ;;  %1635 = vrcp.f32 %v766_v37  ;;  %v767_v18 = vadd.f32 1.0, %v1608_v38 }
 0x12f   : > { %v1612_v50 = vpop.eup %1611  ;;  %1637 = vrcp.f32 %v735_v46  ;;  %v736_v39 = vadd.f32 1.0, %v1610_v49  ;;  %v1358_v49 = vmul.f32 -1.442695, %v2055_v44 }
 0x130   : > { %v1614_v43 = vpop.eup %1613  ;;  %1639 = vrcp.f32 %v767_v18  ;;  %v768_v55 = vadd.f32 1.0, %v1612_v50  ;;  %v2077_v18 = vpop.f32.mrf.mxu0 }
 0x131   : > { %v1616_v21 = vpop.eup %1615  ;;  %1641 = vrcp.f32 %v736_v39  ;;  %v737_v59 = vadd.f32 1.0, %v1614_v43  ;;  %v1327_v39 = vmul.f32 -1.442695, %v2057_v5  ;;  %v2085_v43 = vpop.f32.mrf.mxu1 }
 0x132   : > { %v1618_v2 = vpop.eup %1617  ;;  %1643 = vrcp.f32 %v768_v55  ;;  %v769_v4 = vadd.f32 1.0, %v1616_v21 }
 0x133   : > { %v1620_v23 = vpop.eup %1619  ;;  %1645 = vrcp.f32 %v737_v59  ;;  %v738_v34 = vadd.f32 1.0, %v1618_v2  ;;  %v1359_v2 = vmul.f32 -1.442695, %v2060_v42 }
 0x134   : > { %v1622_v58 = vpop.eup %1621  ;;  %1647 = vrcp.f32 %v769_v4  ;;  %v770_v27 = vadd.f32 1.0, %v1620_v23 }
 0x135   : > { %v1624_v6 = vpop.eup %1623  ;;  %1649 = vrcp.f32 %v738_v34  ;;  %v739_v51 = vadd.f32 1.0, %v1622_v58  ;;  %v1360_v58 = vmul.f32 -1.442695, %v2070_v41 }
 0x136   : > { %v1626_v0 = vpop.eup %1625  ;;  %1651 = vrcp.f32 %v770_v27  ;;  %v771_v13 = vadd.f32 1.0, %v1624_v6  ;;  %v2095_v27 = vpop.f32.mrf.mxu0 }
 0x137   : > { %v1628_v14 = vpop.eup %1627  ;;  %1653 = vrcp.f32 %v739_v51  ;;  %v924_v56 = vmul.f32 %v1626_v0, %v1937_v60  ;;  %v1326_v60 = vmul.f32 -1.442695, %v2053_v11  ;;  %v1329_v51 = vmul.f32 -1.442695, %v2077_v18 }
 0x138   : > { %v1630_v17 = vpop.eup %1629  ;;  %1655 = vrcp.f32 %v771_v13  ;;  %v956_v57 = vmul.f32 %v1628_v14, %v1944_v63 }
 0x139   : > { %v1632_v33 = vpop.eup %1631  ;;  %v925_v22 = vmul.f32 %v1630_v17, %v1951_v9  ;;  %1657 = vpow2.f32 %v1323_v10  ;;  %v2103_v10 = vpop.f32.mrf.mxu1 }
 0x13a   : > { %v1634_v26 = vpop.eup %1633  ;;  %v957_v1 = vmul.f32 %v1632_v33, %v1956_v24  ;;  %1659 = vpow2.f32 %v1355_v28  ;;  %v1362_v33 = vmul.f32 -1.442695, %v2103_v10 }
 0x13b   : > { %v1636_v37 = vpop.eup %1635  ;;  %v1407_v38 = vpack.c.bf16 %v925_v22, %v924_v56  ;;  %1661 = vpow2.f32 %v1324_v15  ;;  %v926_v63 = vmul.f32 %v1634_v26, %v1961_v19  ;;  %v1330_v15 = vmul.f32 -1.442695, %v2095_v27 }
 0x13c   : > { %v1638_v9 = vpop.eup %1637  ;;  %v1423_v46 = vpack.c.bf16 %v957_v1, %v956_v57  ;;  %1663 = vpow2.f32 %v1356_v20  ;;  %v958_v21 = vmul.f32 %v1636_v37, %v1963_v31 }
 0x13d   : > { %v1640_v50 = vpop.eup %1639  ;;  %1174 = vst.msk [vmem:[%s1895_s24 + $0x40] sm:$0xff] %vm1887_vm3, %v1407_v38  ;;  %v927_v24 = vmul.f32 %v1638_v9, %v1965_v32  ;;  %1665 = vpow2.f32 %v1325_v16  ;;  %v1328_v32 = vmul.f32 -1.442695, %v2065_v12 }
 0x13e   : > { %v1642_v55 = vpop.eup %1641  ;;  %1190 = vst.msk [vmem:[%s1895_s24 + $0xc0] sm:$0xff] %vm1887_vm3, %v1423_v46  ;;  %v959_v59 = vmul.f32 %v1640_v50, %v1967_v45  ;;  %1667 = vpow2.f32 %v1357_v29 }
 0x13f   : > { %v1644_v19 = vpop.eup %1643  ;;  %v1408_v4 = vpack.c.bf16 %v927_v24, %v926_v63  ;;  %1669 = vpow2.f32 %v1326_v60  ;;  %v928_v31 = vmul.f32 %v1642_v55, %v1969_v54  ;;  %v1361_v54 = vmul.f32 -1.442695, %v2085_v43 }
 0x140   : > { %v1646_v23 = vpop.eup %1645  ;;  %v1424_v34 = vpack.c.bf16 %v959_v59, %v958_v21  ;;  %1671 = vpow2.f32 %v1358_v49  ;;  %v960_v13 = vmul.f32 %v1644_v19, %v1972_v40 }
 0x141   : > { %v1648_v6 = vpop.eup %1647  ;;  %1175 = vst.msk [vmem:[%s1895_s24 + $0x48] sm:$0xff] %vm1887_vm3, %v1408_v4  ;;  %v929_v45 = vmul.f32 %v1646_v23, %v1977_v47  ;;  %1673 = vpow2.f32 %v1327_v39 }
 0x142   : > { %v1650_v0 = vpop.eup %1649  ;;  %1191 = vst.msk [vmem:[%s1895_s24 + $0xc8] sm:$0xff] %vm1887_vm3, %v1424_v34  ;;  %v961_v28 = vmul.f32 %v1648_v6, %v1982_v52  ;;  %1675 = vpow2.f32 %v1359_v2 }
 0x143   : > { %v1652_v14 = vpop.eup %1651  ;;  %v1409_v47 = vpack.c.bf16 %v929_v45, %v928_v31  ;;  %1677 = vpow2.f32 %v1328_v32  ;;  %v930_v40 = vmul.f32 %v1650_v0, %v1989_v35 }
 0x144   : > { %v1654_v17 = vpop.eup %1653  ;;  %v1425_v20 = vpack.c.bf16 %v961_v28, %v960_v13  ;;  %1679 = vpow2.f32 %v1360_v58  ;;  %v962_v16 = vmul.f32 %v1652_v14, %v1997_v30 }
 0x145   : > { %v1656_v56 = vpop.eup %1655  ;;  %1176 = vst.msk [vmem:[%s1895_s24 + $0x50] sm:$0xff] %vm1887_vm3, %v1409_v47  ;;  %v931_v52 = vmul.f32 %v1654_v17, %v2007_v53  ;;  %1681 = vpow2.f32 %v1329_v51 }
 0x146   : > { %v1658_v22 = vpop.eup %1657  ;;  %1192 = vst.msk [vmem:[%s1895_s24 + $0xd0] sm:$0xff] %vm1887_vm3, %v1425_v20  ;;  %v963_v26 = vmul.f32 %v1656_v56, %v2015_v61  ;;  %1683 = vpow2.f32 %v1361_v54 }
 0x147   : > { %v1660_v57 = vpop.eup %1659  ;;  %v1410_v1 = vpack.c.bf16 %v931_v52, %v930_v40  ;;  %v740_v29 = vadd.f32 1.0, %v1658_v22  ;;  %1685 = vpow2.f32 %v1330_v15 }
 0x148   : > { %v1662_v37 = vpop.eup %1661  ;;  %v1426_v35 = vpack.c.bf16 %v963_v26, %v962_v16  ;;  %v772_v38 = vadd.f32 1.0, %v1660_v57  ;;  %1687 = vpow2.f32 %v1362_v33 }
 0x149   : > { %v1664_v53 = vpop.eup %1663  ;;  %1177 = vst.msk [vmem:[%s1895_s24 + $0x58] sm:$0xff] %vm1887_vm3, %v1410_v1  ;;  %1689 = vrcp.f32 %v740_v29  ;;  %v741_v60 = vadd.f32 1.0, %v1662_v37 }
 0x14a   : > { %v1666_v9 = vpop.eup %1665  ;;  %1193 = vst.msk [vmem:[%s1895_s24 + $0xd8] sm:$0xff] %vm1887_vm3, %v1426_v35  ;;  %1691 = vrcp.f32 %v772_v38  ;;  %v773_v30 = vadd.f32 1.0, %v1664_v53 }
 0x14b   : > { %v1668_v61 = vpop.eup %1667  ;;  %1693 = vrcp.f32 %v741_v60  ;;  %v742_v46 = vadd.f32 1.0, %v1666_v9 }
 0x14c   : > { %v1670_v49 = vpop.eup %1669  ;;  %1695 = vrcp.f32 %v773_v30  ;;  %v774_v50 = vadd.f32 1.0, %v1668_v61 }
 0x14d   : > { %v1672_v63 = vpop.eup %1671  ;;  %1697 = vrcp.f32 %v742_v46  ;;  %v743_v24 = vadd.f32 1.0, %v1670_v49 }
 0x14e   : > { %v1674_v39 = vpop.eup %1673  ;;  %1699 = vrcp.f32 %v774_v50  ;;  %v775_v55 = vadd.f32 1.0, %v1672_v63 }
 0x14f   : > { %v1676_v21 = vpop.eup %1675  ;;  %1701 = vrcp.f32 %v743_v24  ;;  %v744_v59 = vadd.f32 1.0, %v1674_v39 }
 0x150   : > { %v1678_v2 = vpop.eup %1677  ;;  %1703 = vrcp.f32 %v775_v55  ;;  %v776_v19 = vadd.f32 1.0, %v1676_v21 }
 0x151   : > { %v1680_v4 = vpop.eup %1679  ;;  %1705 = vrcp.f32 %v744_v59  ;;  %v745_v32 = vadd.f32 1.0, %v1678_v2 }
 0x152   : > { %v1682_v23 = vpop.eup %1681  ;;  %1707 = vrcp.f32 %v776_v19  ;;  %v777_v34 = vadd.f32 1.0, %v1680_v4 }
 0x153   : > { %v1684_v58 = vpop.eup %1683  ;;  %1709 = vrcp.f32 %v745_v32  ;;  %v746_v6 = vadd.f32 1.0, %v1682_v23 }
 0x154   : > { %v1686_v31 = vpop.eup %1685  ;;  %1711 = vrcp.f32 %v777_v34  ;;  %v778_v45 = vadd.f32 1.0, %v1684_v58 }
 0x155   : > { %v1688_v51 = vpop.eup %1687  ;;  %1713 = vrcp.f32 %v746_v6  ;;  %v747_v0 = vadd.f32 1.0, %v1686_v31 }
 0x156   : > { %v1690_v13 = vpop.eup %1689  ;;  %1715 = vrcp.f32 %v778_v45  ;;  %v779_v28 = vadd.f32 1.0, %v1688_v51 }
 0x157   : > { %v1692_v54 = vpop.eup %1691  ;;  %1717 = vrcp.f32 %v747_v0  ;;  %v932_v15 = vmul.f32 %v1690_v13, %v2025_v7 }
 0x158   : > { %v1694_v14 = vpop.eup %1693  ;;  %1719 = vrcp.f32 %v779_v28  ;;  %v964_v33 = vmul.f32 %v1692_v54, %v2032_v48 }
 0x159   : > { %v1696_v47 = vpop.eup %1695  ;;  %v933_v17 = vmul.f32 %v1694_v14, %v2039_v62 }
 0x15a   : > { %v1698_v20 = vpop.eup %1697  ;;  %v965_v56 = vmul.f32 %v1696_v47, %v2044_v25 }
 0x15b   : > { %v1700_v40 = vpop.eup %1699  ;;  %v1411_v52 = vpack.c.bf16 %v933_v17, %v932_v15  ;;  %v934_v57 = vmul.f32 %v1698_v20, %v2049_v36 }
 0x15c   : > { %v1702_v22 = vpop.eup %1701  ;;  %v1427_v16 = vpack.c.bf16 %v965_v56, %v964_v33  ;;  %v966_v48 = vmul.f32 %v1700_v40, %v2051_v8 }
 0x15d   : > { %v1704_v26 = vpop.eup %1703  ;;  %1178 = vst.msk [vmem:[%s1895_s24 + $0x60] sm:$0xff] %vm1887_vm3, %v1411_v52  ;;  %v935_v7 = vmul.f32 %v1702_v22, %v2053_v11 }
 0x15e   : > { %v1706_v62 = vpop.eup %1705  ;;  %1194 = vst.msk [vmem:[%s1895_s24 + $0xe0] sm:$0xff] %vm1887_vm3, %v1427_v16  ;;  %v967_v25 = vmul.f32 %v1704_v26, %v2055_v44 }
 0x15f   : > { %v1708_v1 = vpop.eup %1707  ;;  %v1412_v29 = vpack.c.bf16 %v935_v7, %v934_v57  ;;  %v936_v36 = vmul.f32 %v1706_v62, %v2057_v5 }
 0x160   : > { %v1710_v37 = vpop.eup %1709  ;;  %v1428_v35 = vpack.c.bf16 %v967_v25, %v966_v48  ;;  %v968_v8 = vmul.f32 %v1708_v1, %v2060_v42 }
 0x161   : > { %v1712_v38 = vpop.eup %1711  ;;  %1179 = vst.msk [vmem:[%s1895_s24 + $0x68] sm:$0xff] %vm1887_vm3, %v1412_v29  ;;  %v937_v11 = vmul.f32 %v1710_v37, %v2065_v12 }
 0x162   : > { %v1714_v53 = vpop.eup %1713  ;;  %1195 = vst.msk [vmem:[%s1895_s24 + $0xe8] sm:$0xff] %vm1887_vm3, %v1428_v35  ;;  %v969_v44 = vmul.f32 %v1712_v38, %v2070_v41 }
 0x163   : > { %v1716_v60 = vpop.eup %1715  ;;  %v1413_v9 = vpack.c.bf16 %v937_v11, %v936_v36  ;;  %v938_v5 = vmul.f32 %v1714_v53, %v2077_v18 }
 0x164   : > { %v1718_v30 = vpop.eup %1717  ;;  %v1429_v61 = vpack.c.bf16 %v969_v44, %v968_v8  ;;  %v970_v42 = vmul.f32 %v1716_v60, %v2085_v43 }
 0x165   : > { %v1720_v46 = vpop.eup %1719  ;;  %1180 = vst.msk [vmem:[%s1895_s24 + $0x70] sm:$0xff] %vm1887_vm3, %v1413_v9  ;;  %v939_v12 = vmul.f32 %v1718_v30, %v2095_v27 }
 0x166   : > { %1196 = vst.msk [vmem:[%s1895_s24 + $0xf0] sm:$0xff] %vm1887_vm3, %v1429_v61  ;;  %v971_v49 = vmul.f32 %v1720_v46, %v2103_v10 }
 0x167   : > { %v1414_v41 = vpack.c.bf16 %v939_v12, %v938_v5 }
 0x168   : > { %v1430_v50 = vpack.c.bf16 %v971_v49, %v970_v42 }
 0x169   : > { %1181 = vst.msk [vmem:[%s1895_s24 + $0x78] sm:$0xff] %vm1887_vm3, %v1414_v41 }
 0x16a   : > { %1197 = vst.msk [vmem:[%s1895_s24 + $0xf8] sm:$0xff] %vm1887_vm3, %v1430_v50 }
 0x16b PF: > { %s12_s9 = sadd.s32 1, %s1727_s9  }
 0x16c   : > { %p9_p4 = scmp.ge.s32.totalorder %s12_s9, 4  }
 0x16e   :  { %11 = sbr.rel (!%p9_p4) target bundleno = 1 (0x1), region = 58 }

// kernel: forward.10
= control target key start
LH: loop header
LB: loop body
LE: loop exit
PB: predicated region body
PF: predicated region fallthrough
CT: control target
= control target key end

     0   :  { %s1365_s15 = smov 0   ;;  %s1606_s0 = inlined_call_operand.vmem [shape: bf16[2,256,144], index: 0, kind: input, shape index: {}]   ;;  %s1607_s1 = inlined_call_operand.vmem [shape: bf16[2,1,144], index: 1, kind: input, shape index: {}]   ;;  %s1608_s2 = inlined_call_operand.vmem [shape: bf16[144,24], index: 2, kind: input, shape index: {}]   ;;  %s1609_s3 = inlined_call_operand.vmem [shape: bf16[2,256,24], index: 3, kind: input, shape index: {}]   ;;  %s1610_s4 = inlined_call_operand.vmem [shape: bf16[2,256,24], index: 4, kind: output, shape index: {}]  }
   0x1 LB: > { %s1074_s16 = sadd.s32 4294967295, %s1336_s15   ;;  %p1078_p0 = scmp.ge.s32.totalorder %s1336_s15, 1  ;;  %s1336_s15 = sphi %s1365_s15, %s14_s15  }
   0x2   : > { %p181_p1 = scmp.lt.s32.totalorder %s1336_s15, 3 }
   0x4   : > { %p182_p2 = pnand %p1078_p0, %p181_p1 }
   0x5   : > { %p216_p3 = scmp.lt.s32.totalorder (!%p182_p2), %s1074_s16, 1 }
   0x6   : > { %185 = sbr.rel (%p182_p2) target bundleno = 306 (0x132), region = 36 }
   0xb   : > { %v1321_v0 = vld [vmem:[%s1608_s2 + $0x38] sm:$0xff]   ;;  %v1338_v1 = vmov 0   ;;  %v1322_v2 = vld [vmem:[%s1608_s2 + $0x30] sm:$0xff]   ;;  %s1612_s16 = smov (!%p216_p3, %s1074_s16), 1  ;;  %v1323_v3 = vld [vmem:[%s1608_s2 + $0x28] sm:$0xff]   ;;  %v281_v4 = vlaneseq  ;;  %vm624_vm0 = vcmask 130048  }
   0xc   : > { %673 = vmatprep.subr.bf16.mxu0 %v1338_v1  ;;  %1293 = vmatprep.subr.bf16.mxu1 %v1338_v1  ;;  %s1081_s23 = sshll.u32 %s1612_s16, 1  ;;  %v1324_v5 = vld [vmem:[%s1608_s2 + $0x20] sm:$0xff]   ;;  %v1339_v7 = vmov 1966171168   ;;  %v1325_v12 = vld [vmem:[%s1608_s2 + $0x18] sm:$0xff]   ;;  %s1179_s5 = sshll.u32 %s1612_s16, 8 }
   0xd   : > { %674 = vmatpush1.bf16.msra.mxu0 %v1321_v0  ;;  %1302 = vmatpush1.bf16.msra.mxu1 %v1321_v0  ;;  %s224_s26 = scalar_lea.vmem %s1607_s1, %s1081_s23  ;;  %v279_v8 = vunpack.c.l.s4 %v1339_v7  ;;  %v282_v9 = vshrl.u32 %v281_v4, 7  ;;  %v1326_v17 = vld [vmem:[%s1608_s2 + $0x10] sm:$0xff]   ;;  %s1411_s10 = scalar_lea.vmem %s1606_s0, %s1179_s5  ;;  %v1327_v20 = vld [vmem:[%s1608_s2 + $0x8] sm:$0xff]   ;;  %v1328_v32 = vld [vmem:[%s1608_s2] sm:$0xff]   ;;  %vm962_vm1 = vcmask 191488  }
   0xe   : > { %675 = vmatprep.subr.bf16.mxu0 %v1338_v1  ;;  %1294 = vmatprep.subr.bf16.mxu1 %v1338_v1  ;;  %v1086_v6 = vld.sshfl [vmem:[%s224_s26] sm:$0x11 pattern:$0x75316420]  ;;  %v237_v24 = vld [vmem:[%s1411_s10 + $0x8] sm:$0xff]  ;;  %v238_v33 = vld [vmem:[%s1411_s10 + $0x10] sm:$0xff] }
   0xf   : > { %v277_v10 = vcombine.high %v1086_v6, %v1086_v6  ;;  %v280_v11 = vunpack.c.0.s8 %v279_v8  ;;  %v297_v16 = vsub.s32 0, %v282_v9  ;;  %v236_v21 = vld [vmem:[%s1411_s10] sm:$0xff]  ;;  %v253_v26 = vld [vmem:[%s1411_s10 + $0x88] sm:$0xff]  ;;  %v239_v36 = vld [vmem:[%s1411_s10 + $0x18] sm:$0xff]  ;;  %s1180_s19 = sshll.u32 %s1612_s16, 7 }
  0x10   : > { %v252_v25 = vld [vmem:[%s1411_s10 + $0x80] sm:$0xff]  ;;  %v254_v37 = vld [vmem:[%s1411_s10 + $0x90] sm:$0xff]  ;;  %v255_v38 = vld [vmem:[%s1411_s10 + $0x98] sm:$0xff]  ;;  %s1516_s22 = scalar_lea.vmem %s1609_s3, %s1180_s19  ;;  %s1523_s24 = scalar_lea.vmem %s1610_s4, %s1180_s19 }
  0x11   : > { %676 = vmatpush1.bf16.msra.mxu0 %v1322_v2  ;;  %1303 = vmatpush1.bf16.msra.mxu1 %v1322_v2  ;;  %v283_v13 = vsub.s32 %v280_v11, %v282_v9  ;;  %v1329_v40 = vld [vmem:[%s1608_s2 + $0x40] sm:$0xff]   ;;  %v241_v49 = vld [vmem:[%s1411_s10 + $0x28] sm:$0xff]  ;;  %v242_v60 = vld [vmem:[%s1411_s10 + $0x30] sm:$0xff] }
  0x12   : > { %677 = vmatprep.subr.bf16.mxu0 %v1338_v1  ;;  %1295 = vmatprep.subr.bf16.mxu1 %v1338_v1  ;;  %v240_v48 = vld [vmem:[%s1411_s10 + $0x20] sm:$0xff]  ;;  %v257_v51 = vld [vmem:[%s1411_s10 + $0xa8] sm:$0xff]  ;;  %v243_v61 = vld [vmem:[%s1411_s10 + $0x38] sm:$0xff] }
  0x13   : > { %v284_v14 = vrot.slane %v1086_v6, %v283_v13  ;;  %v291_v15 = vrot.slane %v277_v10, %v283_v13  ;;  %v256_v50 = vld [vmem:[%s1411_s10 + $0xa0] sm:$0xff]  ;;  %v258_v62 = vld [vmem:[%s1411_s10 + $0xb0] sm:$0xff]  ;;  %v259_v63 = vld [vmem:[%s1411_s10 + $0xb8] sm:$0xff] }
  0x14   : > { %v244_v8 = vld [vmem:[%s1411_s10 + $0x40] sm:$0xff]  ;;  %v245_v9 = vld [vmem:[%s1411_s10 + $0x48] sm:$0xff] }
  0x15   : > { %678 = vmatpush1.bf16.msra.mxu0 %v1323_v3  ;;  %1304 = vmatpush1.bf16.msra.mxu1 %v1323_v3  ;;  %v293_v18 = vpack.i.b16 %v284_v14, %v284_v14  ;;  %v300_v19 = vpack.i.b16 %v291_v15, %v291_v15  ;;  %v260_v10 = vld [vmem:[%s1411_s10 + $0xc0] sm:$0xff]  ;;  %v261_v11 = vld [vmem:[%s1411_s10 + $0xc8] sm:$0xff] }
  0x16   : > { %679 = vmatprep.subr.bf16.mxu0 %v1338_v1  ;;  %1296 = vmatprep.subr.bf16.mxu1 %v1338_v1 }
  0x17   : > { %v298_v22 = vrot.slane %v293_v18, %v297_v16  ;;  %v305_v23 = vrot.slane %v300_v19, %v297_v16 }
  0x19   : > { %680 = vmatpush1.bf16.msra.mxu0 %v1324_v5  ;;  %1305 = vmatpush1.bf16.msra.mxu1 %v1324_v5  ;;  %v1424_v27 = vcombine.low %v298_v22, %v305_v23  ;;  %v262_v22 = vld [vmem:[%s1411_s10 + $0xd0] sm:$0xff]  ;;  %v263_v23 = vld [vmem:[%s1411_s10 + $0xd8] sm:$0xff] }
  0x1a   : > { %681 = vmatprep.subr.bf16.mxu0 %v1338_v1  ;;  %1297 = vmatprep.subr.bf16.mxu1 %v1338_v1 }
  0x1b   : > { %v312_v28 = vmul.bf16 %v1424_v27, %v236_v21  ;;  %v313_v29 = vmul.bf16 %v1424_v27, %v237_v24  ;;  %v328_v30 = vmul.bf16 %v1424_v27, %v252_v25  ;;  %v329_v31 = vmul.bf16 %v1424_v27, %v253_v26  ;;  %v247_v21 = vld [vmem:[%s1411_s10 + $0x58] sm:$0xff] }
  0x1c   : > { %v314_v39 = vmul.bf16 %v1424_v27, %v238_v33  ;;  %v315_v41 = vmul.bf16 %v1424_v27, %v239_v36  ;;  %v330_v42 = vmul.bf16 %v1424_v27, %v254_v37  ;;  %v331_v43 = vmul.bf16 %v1424_v27, %v255_v38  ;;  %v248_v33 = vld [vmem:[%s1411_s10 + $0x60] sm:$0xff]  ;;  %v265_v36 = vld [vmem:[%s1411_s10 + $0xe8] sm:$0xff] }
  0x1d   : > { %682 = vmatpush1.bf16.msra.mxu0 %v1325_v12  ;;  %1306 = vmatpush1.bf16.msra.mxu1 %v1325_v12  ;;  %v1089_v34 = vcombine.high %v312_v28, %v313_v29  ;;  %v1105_v35 = vcombine.high %v328_v30, %v329_v31  ;;  %v1088_v44 = vcombine.low %v312_v28, %v313_v29 }
  0x1e   : > { %683 = vmatprep.subr.bf16.mxu0 %v1338_v1  ;;  %1298 = vmatprep.subr.bf16.mxu1 %v1338_v1  ;;  %v1104_v45 = vcombine.low %v328_v30, %v329_v31  ;;  %v1091_v46 = vcombine.high %v314_v39, %v315_v41  ;;  %v1107_v47 = vcombine.high %v330_v42, %v331_v43 }
  0x1f   : > { %1129 = vmatprep.mubr.msk.bf16.mxu0 %vm624_vm0, %v1089_v34  ;;  %1137 = vmatprep.mubr.msk.bf16.mxu1 %vm624_vm0, %v1105_v35  ;;  %v316_v52 = vmul.bf16 %v1424_v27, %v240_v48  ;;  %v317_v53 = vmul.bf16 %v1424_v27, %v241_v49  ;;  %v332_v54 = vmul.bf16 %v1424_v27, %v256_v50  ;;  %v249_v34 = vld [vmem:[%s1411_s10 + $0x68] sm:$0xff]  ;;  %v264_v35 = vld [vmem:[%s1411_s10 + $0xe0] sm:$0xff]  ;;  %v267_v48 = vld [vmem:[%s1411_s10 + $0xf8] sm:$0xff] }
  0x20   : > { %v333_v55 = vmul.bf16 %v1424_v27, %v257_v51  ;;  %v1090_v56 = vcombine.low %v314_v39, %v315_v41  ;;  %v1106_v57 = vcombine.low %v330_v42, %v331_v43  ;;  %v318_v0 = vmul.bf16 %v1424_v27, %v242_v60 }
  0x21   : > { %684 = vmatpush1.bf16.msra.mxu0 %v1326_v17  ;;  %1307 = vmatpush1.bf16.msra.mxu1 %v1326_v17  ;;  %v1093_v58 = vcombine.high %v316_v52, %v317_v53  ;;  %v334_v2 = vmul.bf16 %v1424_v27, %v258_v62  ;;  %v335_v3 = vmul.bf16 %v1424_v27, %v259_v63 }
  0x22   : > { %685 = vmatprep.subr.bf16.mxu0 %v1338_v1  ;;  %1299 = vmatprep.subr.bf16.mxu1 %v1338_v1  ;;  %v1109_v59 = vcombine.high %v332_v54, %v333_v55  ;;  %v1092_v4 = vcombine.low %v316_v52, %v317_v53  ;;  %v1108_v5 = vcombine.low %v332_v54, %v333_v55 }
  0x23   : > { %v1111_v7 = vcombine.high %v334_v2, %v335_v3  ;;  %v320_v12 = vmul.bf16 %v1424_v27, %v244_v8  ;;  %v321_v13 = vmul.bf16 %v1424_v27, %v245_v9  ;;  %v336_v14 = vmul.bf16 %v1424_v27, %v260_v10 }
  0x24   : > { %v337_v15 = vmul.bf16 %v1424_v27, %v261_v11  ;;  %v1110_v17 = vcombine.low %v334_v2, %v335_v3  ;;  %v323_v25 = vmul.bf16 %v1424_v27, %v247_v21  ;;  %v338_v26 = vmul.bf16 %v1424_v27, %v262_v22 }
  0x25   : > { %686 = vmatpush1.bf16.msra.mxu0 %v1327_v20  ;;  %1308 = vmatpush1.bf16.msra.mxu1 %v1327_v20  ;;  %v1097_v18 = vcombine.high %v320_v12, %v321_v13  ;;  %v246_v20 = vld [vmem:[%s1411_s10 + $0x50] sm:$0xff]  ;;  %v339_v28 = vmul.bf16 %v1424_v27, %v263_v23  ;;  %v1096_v29 = vcombine.low %v320_v12, %v321_v13 }
  0x26   : > { %687 = vmatprep.subr.bf16.mxu0 %v1338_v1  ;;  %1300 = vmatprep.subr.bf16.mxu1 %v1338_v1  ;;  %v1113_v19 = vcombine.high %v336_v14, %v337_v15  ;;  %v322_v24 = vmul.bf16 %v1424_v27, %v246_v20  ;;  %v1112_v30 = vcombine.low %v336_v14, %v337_v15 }
  0x27   : > { %v324_v37 = vmul.bf16 %v1424_v27, %v248_v33  ;;  %v325_v38 = vmul.bf16 %v1424_v27, %v249_v34  ;;  %v340_v39 = vmul.bf16 %v1424_v27, %v264_v35  ;;  %v1114_v42 = vcombine.low %v338_v26, %v339_v28 }
  0x28   : > { %v1099_v31 = vcombine.high %v322_v24, %v323_v25  ;;  %v1098_v41 = vcombine.low %v322_v24, %v323_v25  ;;  %v343_v52 = vmul.bf16 %v1424_v27, %v267_v48 }
  0x29   : > { %688 = vmatpush1.bf16.msra.mxu0 %v1328_v32  ;;  %1309 = vmatpush1.bf16.msra.mxu1 %v1328_v32  ;;  %v1115_v32 = vcombine.high %v338_v26, %v339_v28  ;;  %v1101_v43 = vcombine.high %v324_v37, %v325_v38  ;;  %v1100_v53 = vcombine.low %v324_v37, %v325_v38 }
  0x2a   : > { %703 = vmatprep.subr.bf16.mxu0 %v1338_v1  ;;  %1301 = vmatprep.subr.bf16.mxu1 %v1338_v1  ;;  %v319_v1 = vmul.bf16 %v1424_v27, %v243_v61 }
  0x2c   : > { %v1095_v6 = vcombine.high %v318_v0, %v319_v1  ;;  %v1094_v16 = vcombine.low %v318_v0, %v319_v1 }
  0x2d   : > { %704 = vmatpush2.bf16.msra.mxu0 %v1329_v40  ;;  %1310 = vmatpush2.bf16.msra.mxu1 %v1329_v40  ;;  %v341_v40 = vmul.bf16 %v1424_v27, %v265_v36 }
  0x2f   : > { %v1116_v54 = vcombine.low %v340_v39, %v341_v40 }
  0x30   : > { %706 = vmatmul.mubr.bf16.vlgmr.msra.gmra.mxu0 %v1088_v44  ;;  %770 = vmatmul.mubr.bf16.vlgmr.msra.gmra.mxu1 %v1104_v45  ;;  %v1117_v44 = vcombine.high %v340_v39, %v341_v40  ;;  %v250_v45 = vld [vmem:[%s1411_s10 + $0x70] sm:$0xff] }
  0x31   : > { %1130 = vmatprep.mubr.msk.bf16.mxu0 %vm624_vm0, %v1091_v46  ;;  %1138 = vmatprep.mubr.msk.bf16.mxu1 %vm624_vm0, %v1107_v47  ;;  %v251_v46 = vld [vmem:[%s1411_s10 + $0x78] sm:$0xff]  ;;  %v266_v47 = vld [vmem:[%s1411_s10 + $0xf0] sm:$0xff]  ;;  %v326_v49 = vmul.bf16 %v1424_v27, %v250_v45 }
  0x32   : > { %v327_v50 = vmul.bf16 %v1424_v27, %v251_v46  ;;  %v342_v51 = vmul.bf16 %v1424_v27, %v266_v47  ;;  %v1215_v27 = vld [vmem:[%s1516_s22] sm:$0xff]  }
  0x33   : > { %v1216_v60 = vunpack.c.l.bf16 %v1215_v27  ;;  %v1217_v2 = vunpack.c.h.bf16 %v1215_v27 }
  0x34   : > { %v1103_v55 = vcombine.high %v326_v49, %v327_v50 }
  0x38   : > { %714 = vmatmul.mubr.bf16.gmra.mxu0 %v1090_v56  ;;  %778 = vmatmul.mubr.bf16.gmra.mxu1 %v1106_v57  ;;  %v1119_v56 = vcombine.high %v342_v51, %v343_v52  ;;  %v1102_v57 = vcombine.low %v326_v49, %v327_v50 }
  0x39   : > { %1131 = vmatprep.mubr.msk.bf16.mxu0 %vm624_vm0, %v1093_v58  ;;  %1139 = vmatprep.mubr.msk.bf16.mxu1 %vm624_vm0, %v1109_v59  ;;  %v1118_v58 = vcombine.low %v342_v51, %v343_v52  ;;  %v1285_v59 = vld [vmem:[%s1516_s22 + $0x40] sm:$0xff]   ;;  %v1280_v51 = vld [vmem:[%s1516_s22 + $0x18] sm:$0xff]  }
  0x3a   : > { %v1248_v61 = vunpack.c.l.bf16 %v1285_v59  ;;  %v1249_v3 = vunpack.c.h.bf16 %v1285_v59  ;;  %v1288_v52 = vld [vmem:[%s1516_s22 + $0x58] sm:$0xff]   ;;  %v1228_v27 = vunpack.c.l.bf16 %v1280_v51 }
  0x3b   : > { %v1260_v59 = vunpack.c.l.bf16 %v1288_v52 }
  0x40   : > { %722 = vmatmul.mubr.bf16.gmra.mxu0 %v1092_v4  ;;  %786 = vmatmul.mubr.bf16.gmra.mxu1 %v1108_v5 }
  0x41   : > { %1132 = vmatprep.mubr.msk.bf16.mxu0 %vm624_vm0, %v1095_v6  ;;  %1140 = vmatprep.mubr.msk.bf16.mxu1 %vm624_vm0, %v1111_v7  ;;  %v1278_v6 = vld [vmem:[%s1516_s22 + $0x8] sm:$0xff]  }
  0x42   : > { %v1286_v7 = vld [vmem:[%s1516_s22 + $0x48] sm:$0xff]   ;;  %v1220_v14 = vunpack.c.l.bf16 %v1278_v6  ;;  %v1221_v24 = vunpack.c.h.bf16 %v1278_v6 }
  0x43   : > { %v1252_v15 = vunpack.c.l.bf16 %v1286_v7  ;;  %v1253_v25 = vunpack.c.h.bf16 %v1286_v7 }
  0x48   : > { %730 = vmatmul.mubr.bf16.gmra.mxu0 %v1094_v16  ;;  %794 = vmatmul.mubr.bf16.gmra.mxu1 %v1110_v17 }
  0x49   : > { %1133 = vmatprep.mubr.msk.bf16.mxu0 %vm624_vm0, %v1097_v18  ;;  %1141 = vmatprep.mubr.msk.bf16.mxu1 %vm624_vm0, %v1113_v19 }
  0x50   : > { %738 = vmatmul.mubr.bf16.gmra.mxu0 %v1096_v29  ;;  %802 = vmatmul.mubr.bf16.gmra.mxu1 %v1112_v30  ;;  %v1279_v29 = vld [vmem:[%s1516_s22 + $0x10] sm:$0xff]  }
  0x51   : > { %1134 = vmatprep.mubr.msk.bf16.mxu0 %vm624_vm0, %v1099_v31  ;;  %1142 = vmatprep.mubr.msk.bf16.mxu1 %vm624_vm0, %v1115_v32  ;;  %v1287_v30 = vld [vmem:[%s1516_s22 + $0x50] sm:$0xff]   ;;  %v1224_v37 = vunpack.c.l.bf16 %v1279_v29  ;;  %v1225_v47 = vunpack.c.h.bf16 %v1279_v29 }
  0x52   : > { %v1256_v38 = vunpack.c.l.bf16 %v1287_v30  ;;  %v1257_v48 = vunpack.c.h.bf16 %v1287_v30 }
  0x58   : > { %746 = vmatmul.mubr.bf16.gmra.mxu0 %v1098_v41  ;;  %810 = vmatmul.mubr.bf16.gmra.mxu1 %v1114_v42 }
  0x59   : > { %1135 = vmatprep.mubr.msk.bf16.mxu0 %vm624_vm0, %v1101_v43  ;;  %1143 = vmatprep.mubr.msk.bf16.mxu1 %vm624_vm0, %v1117_v44 }
  0x60   : > { %754 = vmatmul.mubr.bf16.gmra.mxu0 %v1100_v53  ;;  %818 = vmatmul.mubr.bf16.gmra.mxu1 %v1116_v54 }
  0x61   : > { %1136 = vmatprep.mubr.msk.bf16.mxu0 %vm624_vm0, %v1103_v55  ;;  %1144 = vmatprep.mubr.msk.bf16.mxu1 %vm624_vm0, %v1119_v56 }
  0x68   : > { %762 = vmatmul.mubr.bf16.gmra.mxu0 %v1102_v57  ;;  %826 = vmatmul.mubr.bf16.gmra.mxu1 %v1118_v58 }
  0xf0   : > { %v707_v62 = vpop.f32.mrf.mxu0  ;;  %v771_v63 = vpop.f32.mrf.mxu1 }
  0xf1   : > { %v708_v0 = vadd.f32 %v1216_v60, %v707_v62  ;;  %v772_v1 = vadd.f32 %v1248_v61, %v771_v63 }
  0xf2   : > { %v709_v4 = vpop.f32.mrf.mxu0  ;;  %v773_v5 = vpop.f32.mrf.mxu1 }
  0xf3   : > { %v1182_v8 = vpack.c.bf16 %v708_v0, %v708_v0  ;;  %v1198_v9 = vpack.c.bf16 %v772_v1, %v772_v1  ;;  %v1229_v4 = vunpack.c.h.bf16 %v1280_v51  ;;  %v1261_v5 = vunpack.c.h.bf16 %v1288_v52 }
  0xf4   : > { %v710_v10 = vpop.f32.mrf.mxu0  ;;  %v774_v11 = vpop.f32.mrf.mxu1 }
  0xf5   : > { %963 = vst.msk [vmem:[%s1523_s24] sm:$0xf] %vm962_vm1, %v1182_v8  ;;  %979 = vst.msk [vmem:[%s1523_s24 + $0x40] sm:$0xf] %vm962_vm1, %v1198_v9  ;;  %v711_v12 = vadd.f32 %v1217_v2, %v710_v10  ;;  %v775_v13 = vadd.f32 %v1249_v3, %v774_v11  ;;  %v1281_v8 = vld [vmem:[%s1516_s22 + $0x20] sm:$0xff]  }
  0xf6   : > { %v712_v16 = vpop.f32.mrf.mxu0  ;;  %v776_v17 = vpop.f32.mrf.mxu1  ;;  %v1289_v9 = vld [vmem:[%s1516_s22 + $0x60] sm:$0xff]  }
  0xf7   : > { %v1183_v18 = vpack.c.bf16 %v711_v12, %v711_v12  ;;  %v1199_v19 = vpack.c.bf16 %v775_v13, %v775_v13  ;;  %v1232_v16 = vunpack.c.l.bf16 %v1281_v8  ;;  %v1264_v17 = vunpack.c.l.bf16 %v1289_v9 }
  0xf8   : > { %v715_v20 = vpop.f32.mrf.mxu0  ;;  %v779_v21 = vpop.f32.mrf.mxu1 }
  0xf9   : > { %964 = vst.msk [vmem:[%s1523_s24 + $0x4] sm:$0xf] %vm962_vm1, %v1183_v18  ;;  %980 = vst.msk [vmem:[%s1523_s24 + $0x44] sm:$0xf] %vm962_vm1, %v1199_v19  ;;  %v716_v22 = vadd.f32 %v1220_v14, %v715_v20  ;;  %v780_v23 = vadd.f32 %v1252_v15, %v779_v21 }
  0xfa   : > { %v717_v26 = vpop.f32.mrf.mxu0  ;;  %v781_v28 = vpop.f32.mrf.mxu1 }
  0xfb   : > { %v1184_v31 = vpack.c.bf16 %v716_v22, %v716_v22  ;;  %v1200_v32 = vpack.c.bf16 %v780_v23, %v780_v23  ;;  %v1233_v26 = vunpack.c.h.bf16 %v1281_v8  ;;  %v1265_v28 = vunpack.c.h.bf16 %v1289_v9 }
  0xfc   : > { %v718_v33 = vpop.f32.mrf.mxu0  ;;  %v782_v34 = vpop.f32.mrf.mxu1 }
  0xfd   : > { %965 = vst.msk [vmem:[%s1523_s24 + $0x8] sm:$0xf] %vm962_vm1, %v1184_v31  ;;  %981 = vst.msk [vmem:[%s1523_s24 + $0x48] sm:$0xf] %vm962_vm1, %v1200_v32  ;;  %v719_v35 = vadd.f32 %v1221_v24, %v718_v33  ;;  %v783_v36 = vadd.f32 %v1253_v25, %v782_v34  ;;  %v1282_v31 = vld [vmem:[%s1516_s22 + $0x28] sm:$0xff]  }
  0xfe   : > { %v720_v39 = vpop.f32.mrf.mxu0  ;;  %v784_v40 = vpop.f32.mrf.mxu1  ;;  %v1290_v32 = vld [vmem:[%s1516_s22 + $0x68] sm:$0xff]  }
  0xff   : > { %v1185_v41 = vpack.c.bf16 %v719_v35, %v719_v35  ;;  %v1201_v42 = vpack.c.bf16 %v783_v36, %v783_v36  ;;  %v1236_v39 = vunpack.c.l.bf16 %v1282_v31  ;;  %v1268_v40 = vunpack.c.l.bf16 %v1290_v32 }
 0x100   : > { %v723_v43 = vpop.f32.mrf.mxu0  ;;  %v787_v44 = vpop.f32.mrf.mxu1 }
 0x101   : > { %966 = vst.msk [vmem:[%s1523_s24 + $0xc] sm:$0xf] %vm962_vm1, %v1185_v41  ;;  %982 = vst.msk [vmem:[%s1523_s24 + $0x4c] sm:$0xf] %vm962_vm1, %v1201_v42  ;;  %v724_v45 = vadd.f32 %v1224_v37, %v723_v43  ;;  %v788_v46 = vadd.f32 %v1256_v38, %v787_v44 }
 0x102   : > { %v725_v49 = vpop.f32.mrf.mxu0  ;;  %v789_v50 = vpop.f32.mrf.mxu1 }
 0x103   : > { %v1186_v53 = vpack.c.bf16 %v724_v45, %v724_v45  ;;  %v1202_v54 = vpack.c.bf16 %v788_v46, %v788_v46  ;;  %v1237_v49 = vunpack.c.h.bf16 %v1282_v31  ;;  %v1269_v50 = vunpack.c.h.bf16 %v1290_v32 }
 0x104   : > { %v726_v55 = vpop.f32.mrf.mxu0  ;;  %v790_v56 = vpop.f32.mrf.mxu1 }
 0x105   : > { %967 = vst.msk [vmem:[%s1523_s24 + $0x10] sm:$0xf] %vm962_vm1, %v1186_v53  ;;  %983 = vst.msk [vmem:[%s1523_s24 + $0x50] sm:$0xf] %vm962_vm1, %v1202_v54  ;;  %v727_v57 = vadd.f32 %v1225_v47, %v726_v55  ;;  %v791_v58 = vadd.f32 %v1257_v48, %v790_v56  ;;  %v1283_v53 = vld [vmem:[%s1516_s22 + $0x30] sm:$0xff]  }
 0x106   : > { %v728_v60 = vpop.f32.mrf.mxu0  ;;  %v792_v61 = vpop.f32.mrf.mxu1  ;;  %v1291_v54 = vld [vmem:[%s1516_s22 + $0x70] sm:$0xff]  }
 0x107   : > { %v1187_v62 = vpack.c.bf16 %v727_v57, %v727_v57  ;;  %v1203_v63 = vpack.c.bf16 %v791_v58, %v791_v58  ;;  %v1240_v60 = vunpack.c.l.bf16 %v1283_v53  ;;  %v1272_v61 = vunpack.c.l.bf16 %v1291_v54 }
 0x108   : > { %v731_v0 = vpop.f32.mrf.mxu0  ;;  %v795_v1 = vpop.f32.mrf.mxu1 }
 0x109   : > { %968 = vst.msk [vmem:[%s1523_s24 + $0x14] sm:$0xf] %vm962_vm1, %v1187_v62  ;;  %984 = vst.msk [vmem:[%s1523_s24 + $0x54] sm:$0xf] %vm962_vm1, %v1203_v63  ;;  %v732_v2 = vadd.f32 %v1228_v27, %v731_v0  ;;  %v796_v3 = vadd.f32 %v1260_v59, %v795_v1 }
 0x10a   : > { %v733_v6 = vpop.f32.mrf.mxu0  ;;  %v797_v7 = vpop.f32.mrf.mxu1 }
 0x10b   : > { %v1188_v10 = vpack.c.bf16 %v732_v2, %v732_v2  ;;  %v1204_v11 = vpack.c.bf16 %v796_v3, %v796_v3  ;;  %v1241_v6 = vunpack.c.h.bf16 %v1283_v53  ;;  %v1273_v7 = vunpack.c.h.bf16 %v1291_v54 }
 0x10c   : > { %v734_v12 = vpop.f32.mrf.mxu0  ;;  %v798_v13 = vpop.f32.mrf.mxu1 }
 0x10d   : > { %969 = vst.msk [vmem:[%s1523_s24 + $0x18] sm:$0xf] %vm962_vm1, %v1188_v10  ;;  %985 = vst.msk [vmem:[%s1523_s24 + $0x58] sm:$0xf] %vm962_vm1, %v1204_v11  ;;  %v735_v14 = vadd.f32 %v1229_v4, %v734_v12  ;;  %v799_v15 = vadd.f32 %v1261_v5, %v798_v13  ;;  %v1284_v10 = vld [vmem:[%s1516_s22 + $0x38] sm:$0xff]  }
 0x10e   : > { %v736_v18 = vpop.f32.mrf.mxu0  ;;  %v800_v19 = vpop.f32.mrf.mxu1  ;;  %v1292_v11 = vld [vmem:[%s1516_s22 + $0x78] sm:$0xff]  }
 0x10f   : > { %v1189_v20 = vpack.c.bf16 %v735_v14, %v735_v14  ;;  %v1205_v21 = vpack.c.bf16 %v799_v15, %v799_v15  ;;  %v1244_v18 = vunpack.c.l.bf16 %v1284_v10  ;;  %v1276_v19 = vunpack.c.l.bf16 %v1292_v11 }
 0x110   : > { %v739_v22 = vpop.f32.mrf.mxu0  ;;  %v803_v23 = vpop.f32.mrf.mxu1 }
 0x111   : > { %970 = vst.msk [vmem:[%s1523_s24 + $0x1c] sm:$0xf] %vm962_vm1, %v1189_v20  ;;  %986 = vst.msk [vmem:[%s1523_s24 + $0x5c] sm:$0xf] %vm962_vm1, %v1205_v21  ;;  %v740_v24 = vadd.f32 %v1232_v16, %v739_v22  ;;  %v804_v25 = vadd.f32 %v1264_v17, %v803_v23 }
 0x112   : > { %v741_v29 = vpop.f32.mrf.mxu0  ;;  %v805_v30 = vpop.f32.mrf.mxu1 }
 0x113   : > { %v1190_v33 = vpack.c.bf16 %v740_v24, %v740_v24  ;;  %v1206_v34 = vpack.c.bf16 %v804_v25, %v804_v25  ;;  %v1245_v29 = vunpack.c.h.bf16 %v1284_v10  ;;  %v1277_v30 = vunpack.c.h.bf16 %v1292_v11 }
 0x114   : > { %v742_v35 = vpop.f32.mrf.mxu0  ;;  %v806_v36 = vpop.f32.mrf.mxu1 }
 0x115   : > { %971 = vst.msk [vmem:[%s1523_s24 + $0x20] sm:$0xf] %vm962_vm1, %v1190_v33  ;;  %987 = vst.msk [vmem:[%s1523_s24 + $0x60] sm:$0xf] %vm962_vm1, %v1206_v34  ;;  %v743_v37 = vadd.f32 %v1233_v26, %v742_v35  ;;  %v807_v38 = vadd.f32 %v1265_v28, %v806_v36 }
 0x116   : > { %v744_v41 = vpop.f32.mrf.mxu0  ;;  %v808_v42 = vpop.f32.mrf.mxu1 }
 0x117   : > { %v1191_v43 = vpack.c.bf16 %v743_v37, %v743_v37  ;;  %v1207_v44 = vpack.c.bf16 %v807_v38, %v807_v38 }
 0x118   : > { %v747_v45 = vpop.f32.mrf.mxu0  ;;  %v811_v46 = vpop.f32.mrf.mxu1 }
 0x119   : > { %972 = vst.msk [vmem:[%s1523_s24 + $0x24] sm:$0xf] %vm962_vm1, %v1191_v43  ;;  %988 = vst.msk [vmem:[%s1523_s24 + $0x64] sm:$0xf] %vm962_vm1, %v1207_v44  ;;  %v748_v47 = vadd.f32 %v1236_v39, %v747_v45  ;;  %v812_v48 = vadd.f32 %v1268_v40, %v811_v46 }
 0x11a   : > { %v749_v51 = vpop.f32.mrf.mxu0  ;;  %v813_v52 = vpop.f32.mrf.mxu1 }
 0x11b   : > { %v1192_v55 = vpack.c.bf16 %v748_v47, %v748_v47  ;;  %v1208_v56 = vpack.c.bf16 %v812_v48, %v812_v48 }
 0x11c   : > { %v750_v57 = vpop.f32.mrf.mxu0  ;;  %v814_v58 = vpop.f32.mrf.mxu1 }
 0x11d   : > { %973 = vst.msk [vmem:[%s1523_s24 + $0x28] sm:$0xf] %vm962_vm1, %v1192_v55  ;;  %989 = vst.msk [vmem:[%s1523_s24 + $0x68] sm:$0xf] %vm962_vm1, %v1208_v56  ;;  %v751_v27 = vadd.f32 %v1237_v49, %v750_v57  ;;  %v815_v59 = vadd.f32 %v1269_v50, %v814_v58 }
 0x11e   : > { %v752_v62 = vpop.f32.mrf.mxu0  ;;  %v816_v63 = vpop.f32.mrf.mxu1 }
 0x11f   : > { %v1193_v0 = vpack.c.bf16 %v751_v27, %v751_v27  ;;  %v1209_v1 = vpack.c.bf16 %v815_v59, %v815_v59 }
 0x120   : > { %v755_v2 = vpop.f32.mrf.mxu0  ;;  %v819_v3 = vpop.f32.mrf.mxu1 }
 0x121   : > { %974 = vst.msk [vmem:[%s1523_s24 + $0x2c] sm:$0xf] %vm962_vm1, %v1193_v0  ;;  %990 = vst.msk [vmem:[%s1523_s24 + $0x6c] sm:$0xf] %vm962_vm1, %v1209_v1  ;;  %v756_v4 = vadd.f32 %v1240_v60, %v755_v2  ;;  %v820_v5 = vadd.f32 %v1272_v61, %v819_v3 }
 0x122   : > { %v757_v8 = vpop.f32.mrf.mxu0  ;;  %v821_v9 = vpop.f32.mrf.mxu1 }
 0x123   : > { %v1194_v12 = vpack.c.bf16 %v756_v4, %v756_v4  ;;  %v1210_v13 = vpack.c.bf16 %v820_v5, %v820_v5 }
 0x124   : > { %v758_v14 = vpop.f32.mrf.mxu0  ;;  %v822_v15 = vpop.f32.mrf.mxu1 }
 0x125   : > { %975 = vst.msk [vmem:[%s1523_s24 + $0x30] sm:$0xf] %vm962_vm1, %v1194_v12  ;;  %991 = vst.msk [vmem:[%s1523_s24 + $0x70] sm:$0xf] %vm962_vm1, %v1210_v13  ;;  %v759_v16 = vadd.f32 %v1241_v6, %v758_v14  ;;  %v823_v17 = vadd.f32 %v1273_v7, %v822_v15 }
 0x126   : > { %v760_v20 = vpop.f32.mrf.mxu0  ;;  %v824_v21 = vpop.f32.mrf.mxu1 }
 0x127   : > { %v1195_v22 = vpack.c.bf16 %v759_v16, %v759_v16  ;;  %v1211_v23 = vpack.c.bf16 %v823_v17, %v823_v17 }
 0x128   : > { %v763_v24 = vpop.f32.mrf.mxu0  ;;  %v827_v25 = vpop.f32.mrf.mxu1 }
 0x129   : > { %976 = vst.msk [vmem:[%s1523_s24 + $0x34] sm:$0xf] %vm962_vm1, %v1195_v22  ;;  %992 = vst.msk [vmem:[%s1523_s24 + $0x74] sm:$0xf] %vm962_vm1, %v1211_v23  ;;  %v764_v26 = vadd.f32 %v1244_v18, %v763_v24  ;;  %v828_v28 = vadd.f32 %v1276_v19, %v827_v25 }
 0x12a   : > { %v765_v31 = vpop.f32.mrf.mxu0  ;;  %v829_v32 = vpop.f32.mrf.mxu1 }
 0x12b   : > { %v1196_v33 = vpack.c.bf16 %v764_v26, %v764_v26  ;;  %v1212_v34 = vpack.c.bf16 %v828_v28, %v828_v28 }
 0x12c   : > { %v766_v35 = vpop.f32.mrf.mxu0  ;;  %v830_v36 = vpop.f32.mrf.mxu1 }
 0x12d   : > { %977 = vst.msk [vmem:[%s1523_s24 + $0x38] sm:$0xf] %vm962_vm1, %v1196_v33  ;;  %993 = vst.msk [vmem:[%s1523_s24 + $0x78] sm:$0xf] %vm962_vm1, %v1212_v34  ;;  %v767_v37 = vadd.f32 %v1245_v29, %v766_v35  ;;  %v831_v38 = vadd.f32 %v1277_v30, %v830_v36 }
 0x12e   : > { %v768_v39 = vpop.f32.mrf.mxu0  ;;  %v832_v40 = vpop.f32.mrf.mxu1 }
 0x12f   : > { %v1197_v41 = vpack.c.bf16 %v767_v37, %v767_v37  ;;  %v1213_v42 = vpack.c.bf16 %v831_v38, %v831_v38 }
 0x131   : > { %978 = vst.msk [vmem:[%s1523_s24 + $0x3c] sm:$0xf] %vm962_vm1, %v1197_v41  ;;  %994 = vst.msk [vmem:[%s1523_s24 + $0x7c] sm:$0xf] %vm962_vm1, %v1213_v42 }
 0x132 PF: > { %s14_s15 = sadd.s32 1, %s1336_s15  }
 0x133   : > { %p11_p4 = scmp.ge.s32.totalorder %s14_s15, 4  }
 0x135   :  { %13 = sbr.rel (!%p11_p4) target bundleno = 1 (0x1), region = 72 }

</bundles_post_ra>
